<compile_context>
chip_gen: v7x
topology: tpu7x:2x2x1
jax: 0.10.0
libtpu: 0.0.40
codegen_flags: <defaults>
</compile_context>

<pallas_src>
import numpy as np

import jax
import jax.numpy as jnp
from jax.experimental import pallas as pl
from jax.experimental.pallas import tpu as pltpu


# --------------------------- in-kernel conv helpers ---------------------------

def _conv3x3_lanes(a, w_flat, b, tap_masks, W, P_pad, *, relu=False):
    """3x3 'same' conv on a channel-major slab.

    a:         (Cin, P_pad) f32, spatial flattened row-major (h*W + w) on lanes.
    w_flat:    (Cout, 9*Cin) bf16, rows ordered [(ky,kx), c] like HWIO.reshape(-1,Cout).T
    b:         (Cout, 1) f32
    tap_masks: list of 9 (1, P_pad) f32 validity masks (zero-padding + flat-pad).
    """
    cols = []
    for t in range(9):
        dy, dx = t // 3 - 1, t % 3 - 1
        s = dy * W + dx                       # shifted[p] = a[p + s]
        sh = a if s == 0 else pltpu.roll(a, (-s) % P_pad, axis=1)
        if (dy, dx) != (0, 0):
            sh = sh * tap_masks[t]            # zero out wrapped / out-of-image taps
        cols.append(sh)
    rhs = jnp.concatenate(cols, axis=0).astype(w_flat.dtype)     # (9*Cin, P_pad) bf16
    out = jnp.dot(w_flat, rhs, preferred_element_type=jnp.float32) + b
    return jnp.maximum(out, 0.0) if relu else out                # (Cout, P_pad) f32


def _make_backbone_kernel(*, W, P_pad, D, C):
    """Fused: sub_mean -> SFE1 -> SFE2 -> D x RDB -> GFF -> +f1 -> UPNet conv1+ReLU."""

    def kernel(*refs):
        x_ref, sub_s_ref, sub_b_ref, masks_ref = refs[:4]
        wb_refs = refs[4:-1]
        out_ref = refs[-1]

        masks_all = masks_ref[...]                               # (9, P_pad) f32
        tap_masks = [masks_all[t:t + 1, :] for t in range(9)]

        wb_iter = iter(wb_refs)

        def next_wb():
            w_ref = next(wb_iter)
            b_ref = next(wb_iter)
            return w_ref[...], b_ref[...]

        def conv3(a, relu=False):
            w, b = next_wb()
            return _conv3x3_lanes(a, w, b, tap_masks, W, P_pad, relu=relu)

        def conv1(a):
            w, b = next_wb()
            return jnp.dot(w, a.astype(w.dtype),
                           preferred_element_type=jnp.float32) + b

        # sub_mean folded as an exact per-channel affine (1x1 conv with diag weight).
        x = x_ref[...].astype(jnp.float32)
        x = x * sub_s_ref[...] + sub_b_ref[...]

        f1 = conv3(x)                                            # SFENet1
        x = conv3(f1)                                            # SFENet2

        rdb_outs = []
        for _ in range(D):
            x_in = x
            feat = x
            for _c in range(C):
                out = conv3(feat, relu=True)                     # RDB_Conv
                feat = jnp.concatenate([feat, out], axis=0)      # channel concat (sublanes)
            x = conv1(feat) + x_in                               # LFF 1x1 + residual
            rdb_outs.append(x)

        x = conv1(jnp.concatenate(rdb_outs, axis=0))             # GFF 1x1
        x = conv3(x)                                             # GFF 3x3
        x = x + f1                                               # global residual
        x = conv3(x, relu=True)                                  # UPNet stage-1 conv + ReLU
        out_ref[...] = x.astype(out_ref.dtype)

    return kernel


def _make_head_kernel(*, W, P_pad):
    """Fused: final UPNet 3x3 conv -> add_mean affine."""

    def kernel(y_ref, masks_ref, w_ref, b_ref, add_s_ref, add_b_ref, out_ref):
        masks_all = masks_ref[...]
        tap_masks = [masks_all[t:t + 1, :] for t in range(9)]
        a = y_ref[...].astype(jnp.float32)
        out = _conv3x3_lanes(a, w_ref[...], b_ref[...], tap_masks, W, P_pad)
        out = out * add_s_ref[...] + add_b_ref[...]              # add_mean (exact fold)
        out_ref[...] = out.astype(out_ref.dtype)

    return kernel


# ------------------------------ host-side helpers ------------------------------

def _pad_to_multiple(n, m=128):
    return ((n + m - 1) // m) * m


def _tap_masks(H, W, P_pad):
    """(9, P_pad) f32: mask[t, h*W+w] = 1 iff tap t of a 3x3 'same' conv is in-image."""
    P = H * W
    hh = np.repeat(np.arange(H), W)
    ww = np.tile(np.arange(W), H)
    m = np.zeros((9, P_pad), np.float32)
    for t in range(9):
        dy, dx = t // 3 - 1, t % 3 - 1
        valid = (hh + dy >= 0) & (hh + dy < H) & (ww + dx >= 0) & (ww + dx < W)
        m[t, :P] = valid.astype(np.float32)
    return jnp.asarray(m)


def _flat_w(w, dtype=jnp.bfloat16):
    kh, kw, cin, cout = w.shape
    return jnp.asarray(w.reshape(kh * kw * cin, cout).T, dtype)   # (Cout, KH*KW*Cin)


def _col_b(b):
    return jnp.asarray(b.reshape(-1, 1), jnp.float32)


def _const_spec(arr):
    zeros = (0,) * arr.ndim
    return pl.BlockSpec(arr.shape, lambda n: zeros)


# ------------------------------- parameters -----------------------------------

def _conv_init(key, kh, kw, cin, cout, scale=0.05):
    kw_key, kb_key = jax.random.split(key)
    w = scale * jax.random.normal(kw_key, (kh, kw, cin, cout), jnp.float32)
    b = scale * jax.random.normal(kb_key, (cout,), jnp.float32)
    return w, b


def make_params(seed, *, G0, D, C, G, in_channels, out_channels,
                rgb_range, rgb_mean, rgb_std):
    keys = iter(jax.random.split(jax.random.PRNGKey(seed), 64))
    p = {}

    mean = jnp.asarray(rgb_mean, jnp.float32)
    std = jnp.asarray(rgb_std, jnp.float32)
    # MeanShift(sign=-1): y = x/std - rgb_range*mean/std ; MeanShift(sign=+1): y = x/std + rgb_range*mean/std
    p["sub_scale"] = (1.0 / std).reshape(-1, 1)
    p["sub_shift"] = (-rgb_range * mean / std).reshape(-1, 1)
    p["add_scale"] = (1.0 / std).reshape(-1, 1)
    p["add_shift"] = (rgb_range * mean / std).reshape(-1, 1)

    p["sfe1_w"], p["sfe1_b"] = _conv_init(next(keys), 3, 3, in_channels, G0)
    p["sfe2_w"], p["sfe2_b"] = _conv_init(next(keys), 3, 3, G0, G0)
    for i in range(D):
        for c in range(C):
            p[f"rdb{i}_c{c}_w"], p[f"rdb{i}_c{c}_b"] = _conv_init(
                next(keys), 3, 3, G0 + c * G, G)
        p[f"rdb{i}_lff_w"], p[f"rdb{i}_lff_b"] = _conv_init(
            next(keys), 1, 1, G0 + C * G, G0)
    p["gff1_w"], p["gff1_b"] = _conv_init(next(keys), 1, 1, D * G0, G0)
    p["gff2_w"], p["gff2_b"] = _conv_init(next(keys), 3, 3, G0, G0)

    # TODO(synk): UPNet is supplied externally to RDN_MS_Factory; this is a
    # representative multi-scale upsampler: conv3x3+ReLU -> bilinear resize -> conv3x3.
    p["up1_w"], p["up1_b"] = _conv_init(next(keys), 3, 3, G0, G0)
    p["up2_w"], p["up2_b"] = _conv_init(next(keys), 3, 3, G0, out_channels)
    return p


# --------------------------------- forward ------------------------------------

def rdn_ms_forward(params, x_nchw, out_size, *, G0, D, C):
    N, Cin, H, W = x_nchw.shape
    Ho, Wo = out_size
    P1, P2 = H * W, Ho * Wo
    P1p, P2p = _pad_to_multiple(P1), _pad_to_multiple(P2)
    bf16 = jnp.bfloat16

    # ---- stage 1: fused backbone (one pallas_call, grid over batch) ----
    layer_names = ["sfe1", "sfe2"]
    for i in range(D):
        layer_names += [f"rdb{i}_c{c}" for c in range(C)]
        layer_names += [f"rdb{i}_lff"]
    layer_names += ["gff1", "gff2", "up1"]

    wb_inputs = []
    for nm in layer_names:
        wb_inputs.append(_flat_w(params[f"{nm}_w"]))
        wb_inputs.append(_col_b(params[f"{nm}_b"]))

    x = jnp.pad(x_nchw.reshape(N, Cin, P1), ((0, 0), (0, 0), (0, P1p - P1)))
    masks1 = _tap_masks(H, W, P1p)

    bk_inputs = [x, params["sub_scale"], params["sub_shift"], masks1] + wb_inputs
    bk_specs = ([pl.BlockSpec((None, Cin, P1p), lambda n: (n, 0, 0))]
                + [_const_spec(a) for a in bk_inputs[1:]])

    feat = pl.pallas_call(
        _make_backbone_kernel(W=W, P_pad=P1p, D=D, C=C),
        out_shape=jax.ShapeDtypeStruct((N, G0, P1p), bf16),
        grid=(N,),
        in_specs=bk_specs,
        out_specs=pl.BlockSpec((None, G0, P1p), lambda n: (n, 0, 0)),
        compiler_params=pltpu.CompilerParams(dimension_semantics=("parallel",)),
    )(*bk_inputs)

    # ---- multi-scale resize (stand-in UPNet middle stage, plain JAX) ----
    feat = feat[:, :, :P1].reshape(N, G0, H, W)
    up = jax.image.resize(feat, (N, G0, Ho, Wo), method="bilinear")
    up = jnp.pad(up.reshape(N, G0, P2), ((0, 0), (0, 0), (0, P2p - P2)))

    # ---- stage 2: fused final conv + add_mean ----
    masks2 = _tap_masks(Ho, Wo, P2p)
    Cout = params["up2_w"].shape[-1]
    hd_inputs = [up, masks2, _flat_w(params["up2_w"]), _col_b(params["up2_b"]),
                 params["add_scale"], params["add_shift"]]
    hd_specs = ([pl.BlockSpec((None, G0, P2p), lambda n: (n, 0, 0))]
                + [_const_spec(a) for a in hd_inputs[1:]])

    out = pl.pallas_call(
        _make_head_kernel(W=Wo, P_pad=P2p),
        out_shape=jax.ShapeDtypeStruct((N, Cout, P2p), jnp.float32),
        grid=(N,),
        in_specs=hd_specs,
        out_specs=pl.BlockSpec((None, Cout, P2p), lambda n: (n, 0, 0)),
        compiler_params=pltpu.CompilerParams(dimension_semantics=("parallel",)),
    )(*hd_inputs)

    return out[:, :, :P2].reshape(N, Cout, Ho, Wo)


# ---------------------------- pure-JAX reference -------------------------------

def reference_forward(p, x_nchw, out_size, *, D, C):
    def conv(x, w, b, relu=False):
        y = jax.lax.conv_general_dilated(
            x, w, (1, 1), "SAME",
            dimension_numbers=("NCHW", "HWIO", "NCHW"))
        y = y + b.reshape(1, -1, 1, 1)
        return jnp.maximum(y, 0.0) if relu else y

    x = x_nchw * p["sub_scale"].reshape(1, -1, 1, 1) + p["sub_shift"].reshape(1, -1, 1, 1)
    f1 = conv(x, p["sfe1_w"], p["sfe1_b"])
    x = conv(f1, p["sfe2_w"], p["sfe2_b"])
    rdb_outs = []
    for i in range(D):
        x_in = x
        feat = x
        for c in range(C):
            out = conv(feat, p[f"rdb{i}_c{c}_w"], p[f"rdb{i}_c{c}_b"], relu=True)
            feat = jnp.concatenate([feat, out], axis=1)
        x = conv(feat, p[f"rdb{i}_lff_w"], p[f"rdb{i}_lff_b"]) + x_in
        rdb_outs.append(x)
    x = conv(jnp.concatenate(rdb_outs, axis=1), p["gff1_w"], p["gff1_b"])
    x = conv(x, p["gff2_w"], p["gff2_b"]) + f1
    x = conv(x, p["up1_w"], p["up1_b"], relu=True)
    n, c_, _, _ = x.shape
    x = jax.image.resize(x, (n, c_, out_size[0], out_size[1]), method="bilinear")
    x = conv(x, p["up2_w"], p["up2_b"])
    x = x * p["add_scale"].reshape(1, -1, 1, 1) + p["add_shift"].reshape(1, -1, 1, 1)
    return x


# ----------------------------------- main --------------------------------------

if __name__ == "__main__":
    # Small, module-consistent config (G = growRate = num_features).
    G0 = 16
    D = 2
    C = 2
    G = 16
    in_channels, out_channels = 3, 3        # MeanShift requires RGB
    rgb_range = 1.0
    rgb_mean = (0.4488, 0.4371, 0.404)
    rgb_std = (1.0, 1.0, 1.0)

    params = make_params(0, G0=G0, D=D, C=C, G=G, in_channels=in_channels,
                         out_channels=out_channels, rgb_range=rgb_range,
                         rgb_mean=rgb_mean, rgb_std=rgb_std)

    x = jax.random.uniform(jax.random.PRNGKey(0), (2, in_channels, 16, 16), jnp.float32)
    out_size = (24, 24)                     # multi-scale target

    fwd = jax.jit(lambda p, xx: rdn_ms_forward(p, xx, out_size, G0=G0, D=D, C=C))
    y = jax.block_until_ready(fwd(params, x))

    assert y.shape == (2, out_channels, out_size[0], out_size[1])
    assert bool(jnp.all(jnp.isfinite(y)))

    # Correctness vs. pure-JAX f32 reference (kernel uses bf16 MXU operands).
    y_ref = reference_forward(params, x, out_size, D=D, C=C)
    err = float(jnp.max(jnp.abs(y - y_ref)))
    assert err < 5e-2, f"kernel deviates from reference: max abs err = {err}"

    print("KERNEL_OK")
</pallas_src>

<mosaic_0001>
module attributes {stable_mosaic.version = 11 : i64} {
  func.func @kernel(%arg0: i32, %arg1: memref<1x3x256xf32, #tpu.memory_space<vmem>>, %arg2: memref<3x1xf32, #tpu.memory_space<vmem>>, %arg3: memref<3x1xf32, #tpu.memory_space<vmem>>, %arg4: memref<9x256xf32, #tpu.memory_space<vmem>>, %arg5: memref<16x27xbf16, #tpu.memory_space<vmem>>, %arg6: memref<16x1xf32, #tpu.memory_space<vmem>>, %arg7: memref<16x144xbf16, #tpu.memory_space<vmem>>, %arg8: memref<16x1xf32, #tpu.memory_space<vmem>>, %arg9: memref<16x144xbf16, #tpu.memory_space<vmem>>, %arg10: memref<16x1xf32, #tpu.memory_space<vmem>>, %arg11: memref<16x288xbf16, #tpu.memory_space<vmem>>, %arg12: memref<16x1xf32, #tpu.memory_space<vmem>>, %arg13: memref<16x48xbf16, #tpu.memory_space<vmem>>, %arg14: memref<16x1xf32, #tpu.memory_space<vmem>>, %arg15: memref<16x144xbf16, #tpu.memory_space<vmem>>, %arg16: memref<16x1xf32, #tpu.memory_space<vmem>>, %arg17: memref<16x288xbf16, #tpu.memory_space<vmem>>, %arg18: memref<16x1xf32, #tpu.memory_space<vmem>>, %arg19: memref<16x48xbf16, #tpu.memory_space<vmem>>, %arg20: memref<16x1xf32, #tpu.memory_space<vmem>>, %arg21: memref<16x32xbf16, #tpu.memory_space<vmem>>, %arg22: memref<16x1xf32, #tpu.memory_space<vmem>>, %arg23: memref<16x144xbf16, #tpu.memory_space<vmem>>, %arg24: memref<16x1xf32, #tpu.memory_space<vmem>>, %arg25: memref<16x144xbf16, #tpu.memory_space<vmem>>, %arg26: memref<16x1xf32, #tpu.memory_space<vmem>>, %arg27: memref<1x16x256xbf16, #tpu.memory_space<vmem>>) attributes {dimension_semantics = [#tpu.dimension_semantics<parallel>], iteration_bounds = array<i64: 2>, scalar_prefetch = 0 : i64, scratch_operands = 0 : i64, tpu.core_type = #tpu.core_type<tc>, window_params = [{transform_indices = @transform_0, window_bounds = array<i64: 1, 3, 256>}, {pipeline_mode = #tpu.pipeline_mode<synchronous>, transform_indices = @transform_1, window_bounds = array<i64: 3, 1>}, {pipeline_mode = #tpu.pipeline_mode<synchronous>, transform_indices = @transform_2, window_bounds = array<i64: 3, 1>}, {pipeline_mode = #tpu.pipeline_mode<synchronous>, transform_indices = @transform_3, window_bounds = array<i64: 9, 256>}, {pipeline_mode = #tpu.pipeline_mode<synchronous>, transform_indices = @transform_4, window_bounds = array<i64: 16, 27>}, {pipeline_mode = #tpu.pipeline_mode<synchronous>, transform_indices = @transform_5, window_bounds = array<i64: 16, 1>}, {pipeline_mode = #tpu.pipeline_mode<synchronous>, transform_indices = @transform_6, window_bounds = array<i64: 16, 144>}, {pipeline_mode = #tpu.pipeline_mode<synchronous>, transform_indices = @transform_7, window_bounds = array<i64: 16, 1>}, {pipeline_mode = #tpu.pipeline_mode<synchronous>, transform_indices = @transform_8, window_bounds = array<i64: 16, 144>}, {pipeline_mode = #tpu.pipeline_mode<synchronous>, transform_indices = @transform_9, window_bounds = array<i64: 16, 1>}, {pipeline_mode = #tpu.pipeline_mode<synchronous>, transform_indices = @transform_10, window_bounds = array<i64: 16, 288>}, {pipeline_mode = #tpu.pipeline_mode<synchronous>, transform_indices = @transform_11, window_bounds = array<i64: 16, 1>}, {pipeline_mode = #tpu.pipeline_mode<synchronous>, transform_indices = @transform_12, window_bounds = array<i64: 16, 48>}, {pipeline_mode = #tpu.pipeline_mode<synchronous>, transform_indices = @transform_13, window_bounds = array<i64: 16, 1>}, {pipeline_mode = #tpu.pipeline_mode<synchronous>, transform_indices = @transform_14, window_bounds = array<i64: 16, 144>}, {pipeline_mode = #tpu.pipeline_mode<synchronous>, transform_indices = @transform_15, window_bounds = array<i64: 16, 1>}, {pipeline_mode = #tpu.pipeline_mode<synchronous>, transform_indices = @transform_16, window_bounds = array<i64: 16, 288>}, {pipeline_mode = #tpu.pipeline_mode<synchronous>, transform_indices = @transform_17, window_bounds = array<i64: 16, 1>}, {pipeline_mode = #tpu.pipeline_mode<synchronous>, transform_indices = @transform_18, window_bounds = array<i64: 16, 48>}, {pipeline_mode = #tpu.pipeline_mode<synchronous>, transform_indices = @transform_19, window_bounds = array<i64: 16, 1>}, {pipeline_mode = #tpu.pipeline_mode<synchronous>, transform_indices = @transform_20, window_bounds = array<i64: 16, 32>}, {pipeline_mode = #tpu.pipeline_mode<synchronous>, transform_indices = @transform_21, window_bounds = array<i64: 16, 1>}, {pipeline_mode = #tpu.pipeline_mode<synchronous>, transform_indices = @transform_22, window_bounds = array<i64: 16, 144>}, {pipeline_mode = #tpu.pipeline_mode<synchronous>, transform_indices = @transform_23, window_bounds = array<i64: 16, 1>}, {pipeline_mode = #tpu.pipeline_mode<synchronous>, transform_indices = @transform_24, window_bounds = array<i64: 16, 144>}, {pipeline_mode = #tpu.pipeline_mode<synchronous>, transform_indices = @transform_25, window_bounds = array<i64: 16, 1>}, {transform_indices = @transform_26, window_bounds = array<i64: 1, 16, 256>}]} {
    %c0 = arith.constant 0 : index
    %c0_0 = arith.constant 0 : index
    %0 = vector.load %arg4[%c0, %c0_0] : memref<9x256xf32, #tpu.memory_space<vmem>>, vector<9x256xf32>
    %1 = vector.extract_strided_slice %0 {offsets = [0, 0], sizes = [1, 256], strides = [1, 1]} : vector<9x256xf32> to vector<1x256xf32>
    %2 = vector.extract_strided_slice %0 {offsets = [1, 0], sizes = [1, 256], strides = [1, 1]} : vector<9x256xf32> to vector<1x256xf32>
    %3 = vector.extract_strided_slice %0 {offsets = [2, 0], sizes = [1, 256], strides = [1, 1]} : vector<9x256xf32> to vector<1x256xf32>
    %4 = vector.extract_strided_slice %0 {offsets = [3, 0], sizes = [1, 256], strides = [1, 1]} : vector<9x256xf32> to vector<1x256xf32>
    %5 = vector.extract_strided_slice %0 {offsets = [5, 0], sizes = [1, 256], strides = [1, 1]} : vector<9x256xf32> to vector<1x256xf32>
    %6 = vector.extract_strided_slice %0 {offsets = [6, 0], sizes = [1, 256], strides = [1, 1]} : vector<9x256xf32> to vector<1x256xf32>
    %7 = vector.extract_strided_slice %0 {offsets = [7, 0], sizes = [1, 256], strides = [1, 1]} : vector<9x256xf32> to vector<1x256xf32>
    %8 = vector.extract_strided_slice %0 {offsets = [8, 0], sizes = [1, 256], strides = [1, 1]} : vector<9x256xf32> to vector<1x256xf32>
    %c0_1 = arith.constant 0 : index
    %c0_2 = arith.constant 0 : index
    %c0_3 = arith.constant 0 : index
    %9 = vector.load %arg1[%c0_1, %c0_2, %c0_3] : memref<1x3x256xf32, #tpu.memory_space<vmem>>, vector<1x3x256xf32>
    %10 = vector.shape_cast %9 : vector<1x3x256xf32> to vector<3x256xf32>
    %c0_4 = arith.constant 0 : index
    %c0_5 = arith.constant 0 : index
    %11 = vector.load %arg2[%c0_4, %c0_5] : memref<3x1xf32, #tpu.memory_space<vmem>>, vector<3x1xf32>
    %12 = vector.broadcast %11 : vector<3x1xf32> to vector<3x256xf32>
    %13 = arith.mulf %10, %12 : vector<3x256xf32>
    %c0_6 = arith.constant 0 : index
    %c0_7 = arith.constant 0 : index
    %14 = vector.load %arg3[%c0_6, %c0_7] : memref<3x1xf32, #tpu.memory_space<vmem>>, vector<3x1xf32>
    %15 = vector.broadcast %14 : vector<3x1xf32> to vector<3x256xf32>
    %16 = arith.addf %13, %15 : vector<3x256xf32>
    %c0_8 = arith.constant 0 : index
    %c0_9 = arith.constant 0 : index
    %17 = vector.load %arg5[%c0_8, %c0_9] : memref<16x27xbf16, #tpu.memory_space<vmem>>, vector<16x27xbf16>
    %c0_10 = arith.constant 0 : index
    %c0_11 = arith.constant 0 : index
    %18 = vector.load %arg6[%c0_10, %c0_11] : memref<16x1xf32, #tpu.memory_space<vmem>>, vector<16x1xf32>
    %c17_i32 = arith.constant 17 : i32
    %19 = tpu.dynamic_rotate %16 by %c17_i32 dim 1 : vector<3x256xf32>, i32 -> vector<3x256xf32>
    %20 = vector.broadcast %1 : vector<1x256xf32> to vector<3x256xf32>
    %21 = arith.mulf %19, %20 : vector<3x256xf32>
    %c16_i32 = arith.constant 16 : i32
    %22 = tpu.dynamic_rotate %16 by %c16_i32 dim 1 : vector<3x256xf32>, i32 -> vector<3x256xf32>
    %23 = vector.broadcast %2 : vector<1x256xf32> to vector<3x256xf32>
    %24 = arith.mulf %22, %23 : vector<3x256xf32>
    %c15_i32 = arith.constant 15 : i32
    %25 = tpu.dynamic_rotate %16 by %c15_i32 dim 1 : vector<3x256xf32>, i32 -> vector<3x256xf32>
    %26 = vector.broadcast %3 : vector<1x256xf32> to vector<3x256xf32>
    %27 = arith.mulf %25, %26 : vector<3x256xf32>
    %c1_i32 = arith.constant 1 : i32
    %28 = tpu.dynamic_rotate %16 by %c1_i32 dim 1 : vector<3x256xf32>, i32 -> vector<3x256xf32>
    %29 = vector.broadcast %4 : vector<1x256xf32> to vector<3x256xf32>
    %30 = arith.mulf %28, %29 : vector<3x256xf32>
    %c255_i32 = arith.constant 255 : i32
    %31 = tpu.dynamic_rotate %16 by %c255_i32 dim 1 : vector<3x256xf32>, i32 -> vector<3x256xf32>
    %32 = vector.broadcast %5 : vector<1x256xf32> to vector<3x256xf32>
    %33 = arith.mulf %31, %32 : vector<3x256xf32>
    %c241_i32 = arith.constant 241 : i32
    %34 = tpu.dynamic_rotate %16 by %c241_i32 dim 1 : vector<3x256xf32>, i32 -> vector<3x256xf32>
    %35 = vector.broadcast %6 : vector<1x256xf32> to vector<3x256xf32>
    %36 = arith.mulf %34, %35 : vector<3x256xf32>
    %c240_i32 = arith.constant 240 : i32
    %37 = tpu.dynamic_rotate %16 by %c240_i32 dim 1 : vector<3x256xf32>, i32 -> vector<3x256xf32>
    %38 = vector.broadcast %7 : vector<1x256xf32> to vector<3x256xf32>
    %39 = arith.mulf %37, %38 : vector<3x256xf32>
    %c239_i32 = arith.constant 239 : i32
    %40 = tpu.dynamic_rotate %16 by %c239_i32 dim 1 : vector<3x256xf32>, i32 -> vector<3x256xf32>
    %41 = vector.broadcast %8 : vector<1x256xf32> to vector<3x256xf32>
    %42 = arith.mulf %40, %41 : vector<3x256xf32>
    %43 = tpu.concatenate %21, %24, %27, %30, %16, %33, %36, %39, %42 in 0 : vector<3x256xf32>, vector<3x256xf32>, vector<3x256xf32>, vector<3x256xf32>, vector<3x256xf32>, vector<3x256xf32>, vector<3x256xf32>, vector<3x256xf32>, vector<3x256xf32> -> vector<27x256xf32>
    %44 = arith.truncf %43 : vector<27x256xf32> to vector<27x256xbf16>
    %cst = arith.constant dense<0.000000e+00> : vector<16x256xf32>
    %45 = tpu.matmul %17, %44, %cst {dimension_numbers = #tpu.dot_dimension_numbers<[1], [0], [0], [1], [0, 0, 1, 1], [], []>} : vector<16x27xbf16>, vector<27x256xbf16>, vector<16x256xf32> -> vector<16x256xf32>
    %46 = vector.broadcast %18 : vector<16x1xf32> to vector<16x256xf32>
    %47 = arith.addf %45, %46 : vector<16x256xf32>
    %c0_12 = arith.constant 0 : index
    %c0_13 = arith.constant 0 : index
    %48 = vector.load %arg7[%c0_12, %c0_13] : memref<16x144xbf16, #tpu.memory_space<vmem>>, vector<16x144xbf16>
    %c0_14 = arith.constant 0 : index
    %c0_15 = arith.constant 0 : index
    %49 = vector.load %arg8[%c0_14, %c0_15] : memref<16x1xf32, #tpu.memory_space<vmem>>, vector<16x1xf32>
    %c17_i32_16 = arith.constant 17 : i32
    %50 = tpu.dynamic_rotate %47 by %c17_i32_16 dim 1 : vector<16x256xf32>, i32 -> vector<16x256xf32>
    %51 = vector.broadcast %1 : vector<1x256xf32> to vector<16x256xf32>
    %52 = arith.mulf %50, %51 : vector<16x256xf32>
    %c16_i32_17 = arith.constant 16 : i32
    %53 = tpu.dynamic_rotate %47 by %c16_i32_17 dim 1 : vector<16x256xf32>, i32 -> vector<16x256xf32>
    %54 = vector.broadcast %2 : vector<1x256xf32> to vector<16x256xf32>
    %55 = arith.mulf %53, %54 : vector<16x256xf32>
    %c15_i32_18 = arith.constant 15 : i32
    %56 = tpu.dynamic_rotate %47 by %c15_i32_18 dim 1 : vector<16x256xf32>, i32 -> vector<16x256xf32>
    %57 = vector.broadcast %3 : vector<1x256xf32> to vector<16x256xf32>
    %58 = arith.mulf %56, %57 : vector<16x256xf32>
    %c1_i32_19 = arith.constant 1 : i32
    %59 = tpu.dynamic_rotate %47 by %c1_i32_19 dim 1 : vector<16x256xf32>, i32 -> vector<16x256xf32>
    %60 = vector.broadcast %4 : vector<1x256xf32> to vector<16x256xf32>
    %61 = arith.mulf %59, %60 : vector<16x256xf32>
    %c255_i32_20 = arith.constant 255 : i32
    %62 = tpu.dynamic_rotate %47 by %c255_i32_20 dim 1 : vector<16x256xf32>, i32 -> vector<16x256xf32>
    %63 = vector.broadcast %5 : vector<1x256xf32> to vector<16x256xf32>
    %64 = arith.mulf %62, %63 : vector<16x256xf32>
    %c241_i32_21 = arith.constant 241 : i32
    %65 = tpu.dynamic_rotate %47 by %c241_i32_21 dim 1 : vector<16x256xf32>, i32 -> vector<16x256xf32>
    %66 = vector.broadcast %6 : vector<1x256xf32> to vector<16x256xf32>
    %67 = arith.mulf %65, %66 : vector<16x256xf32>
    %c240_i32_22 = arith.constant 240 : i32
    %68 = tpu.dynamic_rotate %47 by %c240_i32_22 dim 1 : vector<16x256xf32>, i32 -> vector<16x256xf32>
    %69 = vector.broadcast %7 : vector<1x256xf32> to vector<16x256xf32>
    %70 = arith.mulf %68, %69 : vector<16x256xf32>
    %c239_i32_23 = arith.constant 239 : i32
    %71 = tpu.dynamic_rotate %47 by %c239_i32_23 dim 1 : vector<16x256xf32>, i32 -> vector<16x256xf32>
    %72 = vector.broadcast %8 : vector<1x256xf32> to vector<16x256xf32>
    %73 = arith.mulf %71, %72 : vector<16x256xf32>
    %74 = tpu.concatenate %52, %55, %58, %61, %47, %64, %67, %70, %73 in 0 : vector<16x256xf32>, vector<16x256xf32>, vector<16x256xf32>, vector<16x256xf32>, vector<16x256xf32>, vector<16x256xf32>, vector<16x256xf32>, vector<16x256xf32>, vector<16x256xf32> -> vector<144x256xf32>
    %75 = arith.truncf %74 : vector<144x256xf32> to vector<144x256xbf16>
    %cst_24 = arith.constant dense<0.000000e+00> : vector<16x256xf32>
    %76 = tpu.matmul %48, %75, %cst_24 {dimension_numbers = #tpu.dot_dimension_numbers<[1], [0], [0], [1], [0, 0, 1, 1], [], []>} : vector<16x144xbf16>, vector<144x256xbf16>, vector<16x256xf32> -> vector<16x256xf32>
    %77 = vector.broadcast %49 : vector<16x1xf32> to vector<16x256xf32>
    %78 = arith.addf %76, %77 : vector<16x256xf32>
    %c0_25 = arith.constant 0 : index
    %c0_26 = arith.constant 0 : index
    %79 = vector.load %arg9[%c0_25, %c0_26] : memref<16x144xbf16, #tpu.memory_space<vmem>>, vector<16x144xbf16>
    %c0_27 = arith.constant 0 : index
    %c0_28 = arith.constant 0 : index
    %80 = vector.load %arg10[%c0_27, %c0_28] : memref<16x1xf32, #tpu.memory_space<vmem>>, vector<16x1xf32>
    %c17_i32_29 = arith.constant 17 : i32
    %81 = tpu.dynamic_rotate %78 by %c17_i32_29 dim 1 : vector<16x256xf32>, i32 -> vector<16x256xf32>
    %82 = vector.broadcast %1 : vector<1x256xf32> to vector<16x256xf32>
    %83 = arith.mulf %81, %82 : vector<16x256xf32>
    %c16_i32_30 = arith.constant 16 : i32
    %84 = tpu.dynamic_rotate %78 by %c16_i32_30 dim 1 : vector<16x256xf32>, i32 -> vector<16x256xf32>
    %85 = vector.broadcast %2 : vector<1x256xf32> to vector<16x256xf32>
    %86 = arith.mulf %84, %85 : vector<16x256xf32>
    %c15_i32_31 = arith.constant 15 : i32
    %87 = tpu.dynamic_rotate %78 by %c15_i32_31 dim 1 : vector<16x256xf32>, i32 -> vector<16x256xf32>
    %88 = vector.broadcast %3 : vector<1x256xf32> to vector<16x256xf32>
    %89 = arith.mulf %87, %88 : vector<16x256xf32>
    %c1_i32_32 = arith.constant 1 : i32
    %90 = tpu.dynamic_rotate %78 by %c1_i32_32 dim 1 : vector<16x256xf32>, i32 -> vector<16x256xf32>
    %91 = vector.broadcast %4 : vector<1x256xf32> to vector<16x256xf32>
    %92 = arith.mulf %90, %91 : vector<16x256xf32>
    %c255_i32_33 = arith.constant 255 : i32
    %93 = tpu.dynamic_rotate %78 by %c255_i32_33 dim 1 : vector<16x256xf32>, i32 -> vector<16x256xf32>
    %94 = vector.broadcast %5 : vector<1x256xf32> to vector<16x256xf32>
    %95 = arith.mulf %93, %94 : vector<16x256xf32>
    %c241_i32_34 = arith.constant 241 : i32
    %96 = tpu.dynamic_rotate %78 by %c241_i32_34 dim 1 : vector<16x256xf32>, i32 -> vector<16x256xf32>
    %97 = vector.broadcast %6 : vector<1x256xf32> to vector<16x256xf32>
    %98 = arith.mulf %96, %97 : vector<16x256xf32>
    %c240_i32_35 = arith.constant 240 : i32
    %99 = tpu.dynamic_rotate %78 by %c240_i32_35 dim 1 : vector<16x256xf32>, i32 -> vector<16x256xf32>
    %100 = vector.broadcast %7 : vector<1x256xf32> to vector<16x256xf32>
    %101 = arith.mulf %99, %100 : vector<16x256xf32>
    %c239_i32_36 = arith.constant 239 : i32
    %102 = tpu.dynamic_rotate %78 by %c239_i32_36 dim 1 : vector<16x256xf32>, i32 -> vector<16x256xf32>
    %103 = vector.broadcast %8 : vector<1x256xf32> to vector<16x256xf32>
    %104 = arith.mulf %102, %103 : vector<16x256xf32>
    %105 = tpu.concatenate %83, %86, %89, %92, %78, %95, %98, %101, %104 in 0 : vector<16x256xf32>, vector<16x256xf32>, vector<16x256xf32>, vector<16x256xf32>, vector<16x256xf32>, vector<16x256xf32>, vector<16x256xf32>, vector<16x256xf32>, vector<16x256xf32> -> vector<144x256xf32>
    %106 = arith.truncf %105 : vector<144x256xf32> to vector<144x256xbf16>
    %cst_37 = arith.constant dense<0.000000e+00> : vector<16x256xf32>
    %107 = tpu.matmul %79, %106, %cst_37 {dimension_numbers = #tpu.dot_dimension_numbers<[1], [0], [0], [1], [0, 0, 1, 1], [], []>} : vector<16x144xbf16>, vector<144x256xbf16>, vector<16x256xf32> -> vector<16x256xf32>
    %108 = vector.broadcast %80 : vector<16x1xf32> to vector<16x256xf32>
    %109 = arith.addf %107, %108 : vector<16x256xf32>
    %cst_38 = arith.constant 0.000000e+00 : f32
    %110 = vector.broadcast %cst_38 : f32 to vector<16x256xf32>
    %111 = arith.maximumf %109, %110 : vector<16x256xf32>
    %112 = tpu.concatenate %78, %111 in 0 : vector<16x256xf32>, vector<16x256xf32> -> vector<32x256xf32>
    %c0_39 = arith.constant 0 : index
    %c0_40 = arith.constant 0 : index
    %113 = vector.load %arg11[%c0_39, %c0_40] : memref<16x288xbf16, #tpu.memory_space<vmem>>, vector<16x288xbf16>
    %c0_41 = arith.constant 0 : index
    %c0_42 = arith.constant 0 : index
    %114 = vector.load %arg12[%c0_41, %c0_42] : memref<16x1xf32, #tpu.memory_space<vmem>>, vector<16x1xf32>
    %c17_i32_43 = arith.constant 17 : i32
    %115 = tpu.dynamic_rotate %112 by %c17_i32_43 dim 1 : vector<32x256xf32>, i32 -> vector<32x256xf32>
    %116 = vector.broadcast %1 : vector<1x256xf32> to vector<32x256xf32>
    %117 = arith.mulf %115, %116 : vector<32x256xf32>
    %c16_i32_44 = arith.constant 16 : i32
    %118 = tpu.dynamic_rotate %112 by %c16_i32_44 dim 1 : vector<32x256xf32>, i32 -> vector<32x256xf32>
    %119 = vector.broadcast %2 : vector<1x256xf32> to vector<32x256xf32>
    %120 = arith.mulf %118, %119 : vector<32x256xf32>
    %c15_i32_45 = arith.constant 15 : i32
    %121 = tpu.dynamic_rotate %112 by %c15_i32_45 dim 1 : vector<32x256xf32>, i32 -> vector<32x256xf32>
    %122 = vector.broadcast %3 : vector<1x256xf32> to vector<32x256xf32>
    %123 = arith.mulf %121, %122 : vector<32x256xf32>
    %c1_i32_46 = arith.constant 1 : i32
    %124 = tpu.dynamic_rotate %112 by %c1_i32_46 dim 1 : vector<32x256xf32>, i32 -> vector<32x256xf32>
    %125 = vector.broadcast %4 : vector<1x256xf32> to vector<32x256xf32>
    %126 = arith.mulf %124, %125 : vector<32x256xf32>
    %c255_i32_47 = arith.constant 255 : i32
    %127 = tpu.dynamic_rotate %112 by %c255_i32_47 dim 1 : vector<32x256xf32>, i32 -> vector<32x256xf32>
    %128 = vector.broadcast %5 : vector<1x256xf32> to vector<32x256xf32>
    %129 = arith.mulf %127, %128 : vector<32x256xf32>
    %c241_i32_48 = arith.constant 241 : i32
    %130 = tpu.dynamic_rotate %112 by %c241_i32_48 dim 1 : vector<32x256xf32>, i32 -> vector<32x256xf32>
    %131 = vector.broadcast %6 : vector<1x256xf32> to vector<32x256xf32>
    %132 = arith.mulf %130, %131 : vector<32x256xf32>
    %c240_i32_49 = arith.constant 240 : i32
    %133 = tpu.dynamic_rotate %112 by %c240_i32_49 dim 1 : vector<32x256xf32>, i32 -> vector<32x256xf32>
    %134 = vector.broadcast %7 : vector<1x256xf32> to vector<32x256xf32>
    %135 = arith.mulf %133, %134 : vector<32x256xf32>
    %c239_i32_50 = arith.constant 239 : i32
    %136 = tpu.dynamic_rotate %112 by %c239_i32_50 dim 1 : vector<32x256xf32>, i32 -> vector<32x256xf32>
    %137 = vector.broadcast %8 : vector<1x256xf32> to vector<32x256xf32>
    %138 = arith.mulf %136, %137 : vector<32x256xf32>
    %139 = tpu.concatenate %117, %120, %123, %126, %112, %129, %132, %135, %138 in 0 : vector<32x256xf32>, vector<32x256xf32>, vector<32x256xf32>, vector<32x256xf32>, vector<32x256xf32>, vector<32x256xf32>, vector<32x256xf32>, vector<32x256xf32>, vector<32x256xf32> -> vector<288x256xf32>
    %140 = arith.truncf %139 : vector<288x256xf32> to vector<288x256xbf16>
    %cst_51 = arith.constant dense<0.000000e+00> : vector<16x256xf32>
    %141 = tpu.matmul %113, %140, %cst_51 {dimension_numbers = #tpu.dot_dimension_numbers<[1], [0], [0], [1], [0, 0, 1, 1], [], []>} : vector<16x288xbf16>, vector<288x256xbf16>, vector<16x256xf32> -> vector<16x256xf32>
    %142 = vector.broadcast %114 : vector<16x1xf32> to vector<16x256xf32>
    %143 = arith.addf %141, %142 : vector<16x256xf32>
    %cst_52 = arith.constant 0.000000e+00 : f32
    %144 = vector.broadcast %cst_52 : f32 to vector<16x256xf32>
    %145 = arith.maximumf %143, %144 : vector<16x256xf32>
    %146 = tpu.concatenate %112, %145 in 0 : vector<32x256xf32>, vector<16x256xf32> -> vector<48x256xf32>
    %c0_53 = arith.constant 0 : index
    %c0_54 = arith.constant 0 : index
    %147 = vector.load %arg13[%c0_53, %c0_54] : memref<16x48xbf16, #tpu.memory_space<vmem>>, vector<16x48xbf16>
    %c0_55 = arith.constant 0 : index
    %c0_56 = arith.constant 0 : index
    %148 = vector.load %arg14[%c0_55, %c0_56] : memref<16x1xf32, #tpu.memory_space<vmem>>, vector<16x1xf32>
    %149 = arith.truncf %146 : vector<48x256xf32> to vector<48x256xbf16>
    %cst_57 = arith.constant dense<0.000000e+00> : vector<16x256xf32>
    %150 = tpu.matmul %147, %149, %cst_57 {dimension_numbers = #tpu.dot_dimension_numbers<[1], [0], [0], [1], [0, 0, 1, 1], [], []>} : vector<16x48xbf16>, vector<48x256xbf16>, vector<16x256xf32> -> vector<16x256xf32>
    %151 = vector.broadcast %148 : vector<16x1xf32> to vector<16x256xf32>
    %152 = arith.addf %150, %151 : vector<16x256xf32>
    %153 = arith.addf %152, %78 : vector<16x256xf32>
    %c0_58 = arith.constant 0 : index
    %c0_59 = arith.constant 0 : index
    %154 = vector.load %arg15[%c0_58, %c0_59] : memref<16x144xbf16, #tpu.memory_space<vmem>>, vector<16x144xbf16>
    %c0_60 = arith.constant 0 : index
    %c0_61 = arith.constant 0 : index
    %155 = vector.load %arg16[%c0_60, %c0_61] : memref<16x1xf32, #tpu.memory_space<vmem>>, vector<16x1xf32>
    %c17_i32_62 = arith.constant 17 : i32
    %156 = tpu.dynamic_rotate %153 by %c17_i32_62 dim 1 : vector<16x256xf32>, i32 -> vector<16x256xf32>
    %157 = vector.broadcast %1 : vector<1x256xf32> to vector<16x256xf32>
    %158 = arith.mulf %156, %157 : vector<16x256xf32>
    %c16_i32_63 = arith.constant 16 : i32
    %159 = tpu.dynamic_rotate %153 by %c16_i32_63 dim 1 : vector<16x256xf32>, i32 -> vector<16x256xf32>
    %160 = vector.broadcast %2 : vector<1x256xf32> to vector<16x256xf32>
    %161 = arith.mulf %159, %160 : vector<16x256xf32>
    %c15_i32_64 = arith.constant 15 : i32
    %162 = tpu.dynamic_rotate %153 by %c15_i32_64 dim 1 : vector<16x256xf32>, i32 -> vector<16x256xf32>
    %163 = vector.broadcast %3 : vector<1x256xf32> to vector<16x256xf32>
    %164 = arith.mulf %162, %163 : vector<16x256xf32>
    %c1_i32_65 = arith.constant 1 : i32
    %165 = tpu.dynamic_rotate %153 by %c1_i32_65 dim 1 : vector<16x256xf32>, i32 -> vector<16x256xf32>
    %166 = vector.broadcast %4 : vector<1x256xf32> to vector<16x256xf32>
    %167 = arith.mulf %165, %166 : vector<16x256xf32>
    %c255_i32_66 = arith.constant 255 : i32
    %168 = tpu.dynamic_rotate %153 by %c255_i32_66 dim 1 : vector<16x256xf32>, i32 -> vector<16x256xf32>
    %169 = vector.broadcast %5 : vector<1x256xf32> to vector<16x256xf32>
    %170 = arith.mulf %168, %169 : vector<16x256xf32>
    %c241_i32_67 = arith.constant 241 : i32
    %171 = tpu.dynamic_rotate %153 by %c241_i32_67 dim 1 : vector<16x256xf32>, i32 -> vector<16x256xf32>
    %172 = vector.broadcast %6 : vector<1x256xf32> to vector<16x256xf32>
    %173 = arith.mulf %171, %172 : vector<16x256xf32>
    %c240_i32_68 = arith.constant 240 : i32
    %174 = tpu.dynamic_rotate %153 by %c240_i32_68 dim 1 : vector<16x256xf32>, i32 -> vector<16x256xf32>
    %175 = vector.broadcast %7 : vector<1x256xf32> to vector<16x256xf32>
    %176 = arith.mulf %174, %175 : vector<16x256xf32>
    %c239_i32_69 = arith.constant 239 : i32
    %177 = tpu.dynamic_rotate %153 by %c239_i32_69 dim 1 : vector<16x256xf32>, i32 -> vector<16x256xf32>
    %178 = vector.broadcast %8 : vector<1x256xf32> to vector<16x256xf32>
    %179 = arith.mulf %177, %178 : vector<16x256xf32>
    %180 = tpu.concatenate %158, %161, %164, %167, %153, %170, %173, %176, %179 in 0 : vector<16x256xf32>, vector<16x256xf32>, vector<16x256xf32>, vector<16x256xf32>, vector<16x256xf32>, vector<16x256xf32>, vector<16x256xf32>, vector<16x256xf32>, vector<16x256xf32> -> vector<144x256xf32>
    %181 = arith.truncf %180 : vector<144x256xf32> to vector<144x256xbf16>
    %cst_70 = arith.constant dense<0.000000e+00> : vector<16x256xf32>
    %182 = tpu.matmul %154, %181, %cst_70 {dimension_numbers = #tpu.dot_dimension_numbers<[1], [0], [0], [1], [0, 0, 1, 1], [], []>} : vector<16x144xbf16>, vector<144x256xbf16>, vector<16x256xf32> -> vector<16x256xf32>
    %183 = vector.broadcast %155 : vector<16x1xf32> to vector<16x256xf32>
    %184 = arith.addf %182, %183 : vector<16x256xf32>
    %cst_71 = arith.constant 0.000000e+00 : f32
    %185 = vector.broadcast %cst_71 : f32 to vector<16x256xf32>
    %186 = arith.maximumf %184, %185 : vector<16x256xf32>
    %187 = tpu.concatenate %153, %186 in 0 : vector<16x256xf32>, vector<16x256xf32> -> vector<32x256xf32>
    %c0_72 = arith.constant 0 : index
    %c0_73 = arith.constant 0 : index
    %188 = vector.load %arg17[%c0_72, %c0_73] : memref<16x288xbf16, #tpu.memory_space<vmem>>, vector<16x288xbf16>
    %c0_74 = arith.constant 0 : index
    %c0_75 = arith.constant 0 : index
    %189 = vector.load %arg18[%c0_74, %c0_75] : memref<16x1xf32, #tpu.memory_space<vmem>>, vector<16x1xf32>
    %c17_i32_76 = arith.constant 17 : i32
    %190 = tpu.dynamic_rotate %187 by %c17_i32_76 dim 1 : vector<32x256xf32>, i32 -> vector<32x256xf32>
    %191 = vector.broadcast %1 : vector<1x256xf32> to vector<32x256xf32>
    %192 = arith.mulf %190, %191 : vector<32x256xf32>
    %c16_i32_77 = arith.constant 16 : i32
    %193 = tpu.dynamic_rotate %187 by %c16_i32_77 dim 1 : vector<32x256xf32>, i32 -> vector<32x256xf32>
    %194 = vector.broadcast %2 : vector<1x256xf32> to vector<32x256xf32>
    %195 = arith.mulf %193, %194 : vector<32x256xf32>
    %c15_i32_78 = arith.constant 15 : i32
    %196 = tpu.dynamic_rotate %187 by %c15_i32_78 dim 1 : vector<32x256xf32>, i32 -> vector<32x256xf32>
    %197 = vector.broadcast %3 : vector<1x256xf32> to vector<32x256xf32>
    %198 = arith.mulf %196, %197 : vector<32x256xf32>
    %c1_i32_79 = arith.constant 1 : i32
    %199 = tpu.dynamic_rotate %187 by %c1_i32_79 dim 1 : vector<32x256xf32>, i32 -> vector<32x256xf32>
    %200 = vector.broadcast %4 : vector<1x256xf32> to vector<32x256xf32>
    %201 = arith.mulf %199, %200 : vector<32x256xf32>
    %c255_i32_80 = arith.constant 255 : i32
    %202 = tpu.dynamic_rotate %187 by %c255_i32_80 dim 1 : vector<32x256xf32>, i32 -> vector<32x256xf32>
    %203 = vector.broadcast %5 : vector<1x256xf32> to vector<32x256xf32>
    %204 = arith.mulf %202, %203 : vector<32x256xf32>
    %c241_i32_81 = arith.constant 241 : i32
    %205 = tpu.dynamic_rotate %187 by %c241_i32_81 dim 1 : vector<32x256xf32>, i32 -> vector<32x256xf32>
    %206 = vector.broadcast %6 : vector<1x256xf32> to vector<32x256xf32>
    %207 = arith.mulf %205, %206 : vector<32x256xf32>
    %c240_i32_82 = arith.constant 240 : i32
    %208 = tpu.dynamic_rotate %187 by %c240_i32_82 dim 1 : vector<32x256xf32>, i32 -> vector<32x256xf32>
    %209 = vector.broadcast %7 : vector<1x256xf32> to vector<32x256xf32>
    %210 = arith.mulf %208, %209 : vector<32x256xf32>
    %c239_i32_83 = arith.constant 239 : i32
    %211 = tpu.dynamic_rotate %187 by %c239_i32_83 dim 1 : vector<32x256xf32>, i32 -> vector<32x256xf32>
    %212 = vector.broadcast %8 : vector<1x256xf32> to vector<32x256xf32>
    %213 = arith.mulf %211, %212 : vector<32x256xf32>
    %214 = tpu.concatenate %192, %195, %198, %201, %187, %204, %207, %210, %213 in 0 : vector<32x256xf32>, vector<32x256xf32>, vector<32x256xf32>, vector<32x256xf32>, vector<32x256xf32>, vector<32x256xf32>, vector<32x256xf32>, vector<32x256xf32>, vector<32x256xf32> -> vector<288x256xf32>
    %215 = arith.truncf %214 : vector<288x256xf32> to vector<288x256xbf16>
    %cst_84 = arith.constant dense<0.000000e+00> : vector<16x256xf32>
    %216 = tpu.matmul %188, %215, %cst_84 {dimension_numbers = #tpu.dot_dimension_numbers<[1], [0], [0], [1], [0, 0, 1, 1], [], []>} : vector<16x288xbf16>, vector<288x256xbf16>, vector<16x256xf32> -> vector<16x256xf32>
    %217 = vector.broadcast %189 : vector<16x1xf32> to vector<16x256xf32>
    %218 = arith.addf %216, %217 : vector<16x256xf32>
    %cst_85 = arith.constant 0.000000e+00 : f32
    %219 = vector.broadcast %cst_85 : f32 to vector<16x256xf32>
    %220 = arith.maximumf %218, %219 : vector<16x256xf32>
    %221 = tpu.concatenate %187, %220 in 0 : vector<32x256xf32>, vector<16x256xf32> -> vector<48x256xf32>
    %c0_86 = arith.constant 0 : index
    %c0_87 = arith.constant 0 : index
    %222 = vector.load %arg19[%c0_86, %c0_87] : memref<16x48xbf16, #tpu.memory_space<vmem>>, vector<16x48xbf16>
    %c0_88 = arith.constant 0 : index
    %c0_89 = arith.constant 0 : index
    %223 = vector.load %arg20[%c0_88, %c0_89] : memref<16x1xf32, #tpu.memory_space<vmem>>, vector<16x1xf32>
    %224 = arith.truncf %221 : vector<48x256xf32> to vector<48x256xbf16>
    %cst_90 = arith.constant dense<0.000000e+00> : vector<16x256xf32>
    %225 = tpu.matmul %222, %224, %cst_90 {dimension_numbers = #tpu.dot_dimension_numbers<[1], [0], [0], [1], [0, 0, 1, 1], [], []>} : vector<16x48xbf16>, vector<48x256xbf16>, vector<16x256xf32> -> vector<16x256xf32>
    %226 = vector.broadcast %223 : vector<16x1xf32> to vector<16x256xf32>
    %227 = arith.addf %225, %226 : vector<16x256xf32>
    %228 = arith.addf %227, %153 : vector<16x256xf32>
    %229 = tpu.concatenate %153, %228 in 0 : vector<16x256xf32>, vector<16x256xf32> -> vector<32x256xf32>
    %c0_91 = arith.constant 0 : index
    %c0_92 = arith.constant 0 : index
    %230 = vector.load %arg21[%c0_91, %c0_92] : memref<16x32xbf16, #tpu.memory_space<vmem>>, vector<16x32xbf16>
    %c0_93 = arith.constant 0 : index
    %c0_94 = arith.constant 0 : index
    %231 = vector.load %arg22[%c0_93, %c0_94] : memref<16x1xf32, #tpu.memory_space<vmem>>, vector<16x1xf32>
    %232 = arith.truncf %229 : vector<32x256xf32> to vector<32x256xbf16>
    %cst_95 = arith.constant dense<0.000000e+00> : vector<16x256xf32>
    %233 = tpu.matmul %230, %232, %cst_95 {dimension_numbers = #tpu.dot_dimension_numbers<[1], [0], [0], [1], [0, 0, 1, 1], [], []>} : vector<16x32xbf16>, vector<32x256xbf16>, vector<16x256xf32> -> vector<16x256xf32>
    %234 = vector.broadcast %231 : vector<16x1xf32> to vector<16x256xf32>
    %235 = arith.addf %233, %234 : vector<16x256xf32>
    %c0_96 = arith.constant 0 : index
    %c0_97 = arith.constant 0 : index
    %236 = vector.load %arg23[%c0_96, %c0_97] : memref<16x144xbf16, #tpu.memory_space<vmem>>, vector<16x144xbf16>
    %c0_98 = arith.constant 0 : index
    %c0_99 = arith.constant 0 : index
    %237 = vector.load %arg24[%c0_98, %c0_99] : memref<16x1xf32, #tpu.memory_space<vmem>>, vector<16x1xf32>
    %c17_i32_100 = arith.constant 17 : i32
    %238 = tpu.dynamic_rotate %235 by %c17_i32_100 dim 1 : vector<16x256xf32>, i32 -> vector<16x256xf32>
    %239 = vector.broadcast %1 : vector<1x256xf32> to vector<16x256xf32>
    %240 = arith.mulf %238, %239 : vector<16x256xf32>
    %c16_i32_101 = arith.constant 16 : i32
    %241 = tpu.dynamic_rotate %235 by %c16_i32_101 dim 1 : vector<16x256xf32>, i32 -> vector<16x256xf32>
    %242 = vector.broadcast %2 : vector<1x256xf32> to vector<16x256xf32>
    %243 = arith.mulf %241, %242 : vector<16x256xf32>
    %c15_i32_102 = arith.constant 15 : i32
    %244 = tpu.dynamic_rotate %235 by %c15_i32_102 dim 1 : vector<16x256xf32>, i32 -> vector<16x256xf32>
    %245 = vector.broadcast %3 : vector<1x256xf32> to vector<16x256xf32>
    %246 = arith.mulf %244, %245 : vector<16x256xf32>
    %c1_i32_103 = arith.constant 1 : i32
    %247 = tpu.dynamic_rotate %235 by %c1_i32_103 dim 1 : vector<16x256xf32>, i32 -> vector<16x256xf32>
    %248 = vector.broadcast %4 : vector<1x256xf32> to vector<16x256xf32>
    %249 = arith.mulf %247, %248 : vector<16x256xf32>
    %c255_i32_104 = arith.constant 255 : i32
    %250 = tpu.dynamic_rotate %235 by %c255_i32_104 dim 1 : vector<16x256xf32>, i32 -> vector<16x256xf32>
    %251 = vector.broadcast %5 : vector<1x256xf32> to vector<16x256xf32>
    %252 = arith.mulf %250, %251 : vector<16x256xf32>
    %c241_i32_105 = arith.constant 241 : i32
    %253 = tpu.dynamic_rotate %235 by %c241_i32_105 dim 1 : vector<16x256xf32>, i32 -> vector<16x256xf32>
    %254 = vector.broadcast %6 : vector<1x256xf32> to vector<16x256xf32>
    %255 = arith.mulf %253, %254 : vector<16x256xf32>
    %c240_i32_106 = arith.constant 240 : i32
    %256 = tpu.dynamic_rotate %235 by %c240_i32_106 dim 1 : vector<16x256xf32>, i32 -> vector<16x256xf32>
    %257 = vector.broadcast %7 : vector<1x256xf32> to vector<16x256xf32>
    %258 = arith.mulf %256, %257 : vector<16x256xf32>
    %c239_i32_107 = arith.constant 239 : i32
    %259 = tpu.dynamic_rotate %235 by %c239_i32_107 dim 1 : vector<16x256xf32>, i32 -> vector<16x256xf32>
    %260 = vector.broadcast %8 : vector<1x256xf32> to vector<16x256xf32>
    %261 = arith.mulf %259, %260 : vector<16x256xf32>
    %262 = tpu.concatenate %240, %243, %246, %249, %235, %252, %255, %258, %261 in 0 : vector<16x256xf32>, vector<16x256xf32>, vector<16x256xf32>, vector<16x256xf32>, vector<16x256xf32>, vector<16x256xf32>, vector<16x256xf32>, vector<16x256xf32>, vector<16x256xf32> -> vector<144x256xf32>
    %263 = arith.truncf %262 : vector<144x256xf32> to vector<144x256xbf16>
    %cst_108 = arith.constant dense<0.000000e+00> : vector<16x256xf32>
    %264 = tpu.matmul %236, %263, %cst_108 {dimension_numbers = #tpu.dot_dimension_numbers<[1], [0], [0], [1], [0, 0, 1, 1], [], []>} : vector<16x144xbf16>, vector<144x256xbf16>, vector<16x256xf32> -> vector<16x256xf32>
    %265 = vector.broadcast %237 : vector<16x1xf32> to vector<16x256xf32>
    %266 = arith.addf %264, %265 : vector<16x256xf32>
    %267 = arith.addf %266, %47 : vector<16x256xf32>
    %c0_109 = arith.constant 0 : index
    %c0_110 = arith.constant 0 : index
    %268 = vector.load %arg25[%c0_109, %c0_110] : memref<16x144xbf16, #tpu.memory_space<vmem>>, vector<16x144xbf16>
    %c0_111 = arith.constant 0 : index
    %c0_112 = arith.constant 0 : index
    %269 = vector.load %arg26[%c0_111, %c0_112] : memref<16x1xf32, #tpu.memory_space<vmem>>, vector<16x1xf32>
    %c17_i32_113 = arith.constant 17 : i32
    %270 = tpu.dynamic_rotate %267 by %c17_i32_113 dim 1 : vector<16x256xf32>, i32 -> vector<16x256xf32>
    %271 = vector.broadcast %1 : vector<1x256xf32> to vector<16x256xf32>
    %272 = arith.mulf %270, %271 : vector<16x256xf32>
    %c16_i32_114 = arith.constant 16 : i32
    %273 = tpu.dynamic_rotate %267 by %c16_i32_114 dim 1 : vector<16x256xf32>, i32 -> vector<16x256xf32>
    %274 = vector.broadcast %2 : vector<1x256xf32> to vector<16x256xf32>
    %275 = arith.mulf %273, %274 : vector<16x256xf32>
    %c15_i32_115 = arith.constant 15 : i32
    %276 = tpu.dynamic_rotate %267 by %c15_i32_115 dim 1 : vector<16x256xf32>, i32 -> vector<16x256xf32>
    %277 = vector.broadcast %3 : vector<1x256xf32> to vector<16x256xf32>
    %278 = arith.mulf %276, %277 : vector<16x256xf32>
    %c1_i32_116 = arith.constant 1 : i32
    %279 = tpu.dynamic_rotate %267 by %c1_i32_116 dim 1 : vector<16x256xf32>, i32 -> vector<16x256xf32>
    %280 = vector.broadcast %4 : vector<1x256xf32> to vector<16x256xf32>
    %281 = arith.mulf %279, %280 : vector<16x256xf32>
    %c255_i32_117 = arith.constant 255 : i32
    %282 = tpu.dynamic_rotate %267 by %c255_i32_117 dim 1 : vector<16x256xf32>, i32 -> vector<16x256xf32>
    %283 = vector.broadcast %5 : vector<1x256xf32> to vector<16x256xf32>
    %284 = arith.mulf %282, %283 : vector<16x256xf32>
    %c241_i32_118 = arith.constant 241 : i32
    %285 = tpu.dynamic_rotate %267 by %c241_i32_118 dim 1 : vector<16x256xf32>, i32 -> vector<16x256xf32>
    %286 = vector.broadcast %6 : vector<1x256xf32> to vector<16x256xf32>
    %287 = arith.mulf %285, %286 : vector<16x256xf32>
    %c240_i32_119 = arith.constant 240 : i32
    %288 = tpu.dynamic_rotate %267 by %c240_i32_119 dim 1 : vector<16x256xf32>, i32 -> vector<16x256xf32>
    %289 = vector.broadcast %7 : vector<1x256xf32> to vector<16x256xf32>
    %290 = arith.mulf %288, %289 : vector<16x256xf32>
    %c239_i32_120 = arith.constant 239 : i32
    %291 = tpu.dynamic_rotate %267 by %c239_i32_120 dim 1 : vector<16x256xf32>, i32 -> vector<16x256xf32>
    %292 = vector.broadcast %8 : vector<1x256xf32> to vector<16x256xf32>
    %293 = arith.mulf %291, %292 : vector<16x256xf32>
    %294 = tpu.concatenate %272, %275, %278, %281, %267, %284, %287, %290, %293 in 0 : vector<16x256xf32>, vector<16x256xf32>, vector<16x256xf32>, vector<16x256xf32>, vector<16x256xf32>, vector<16x256xf32>, vector<16x256xf32>, vector<16x256xf32>, vector<16x256xf32> -> vector<144x256xf32>
    %295 = arith.truncf %294 : vector<144x256xf32> to vector<144x256xbf16>
    %cst_121 = arith.constant dense<0.000000e+00> : vector<16x256xf32>
    %296 = tpu.matmul %268, %295, %cst_121 {dimension_numbers = #tpu.dot_dimension_numbers<[1], [0], [0], [1], [0, 0, 1, 1], [], []>} : vector<16x144xbf16>, vector<144x256xbf16>, vector<16x256xf32> -> vector<16x256xf32>
    %297 = vector.broadcast %269 : vector<16x1xf32> to vector<16x256xf32>
    %298 = arith.addf %296, %297 : vector<16x256xf32>
    %cst_122 = arith.constant 0.000000e+00 : f32
    %299 = vector.broadcast %cst_122 : f32 to vector<16x256xf32>
    %300 = arith.maximumf %298, %299 : vector<16x256xf32>
    %301 = arith.truncf %300 : vector<16x256xf32> to vector<16x256xbf16>
    %c0_123 = arith.constant 0 : index
    %c0_124 = arith.constant 0 : index
    %c0_125 = arith.constant 0 : index
    %302 = vector.load %arg27[%c0_123, %c0_124, %c0_125] : memref<1x16x256xbf16, #tpu.memory_space<vmem>>, vector<1x16x256xbf16>
    %303 = vector.shape_cast %302 : vector<1x16x256xbf16> to vector<16x256xbf16>
    %304 = vector.shape_cast %301 : vector<16x256xbf16> to vector<1x16x256xbf16>
    tpu.vector_store %arg27[%c0_123, %c0_124, %c0_125], %304 {strides = array<i32>} : memref<1x16x256xbf16, #tpu.memory_space<vmem>>, vector<1x16x256xbf16>,
    return
  }
  func.func @transform_0(%arg0: i32) -> (i32, i32, i32) {
    %c0_i32 = arith.constant 0 : i32
    %c0_i32_0 = arith.constant 0 : i32
    %c0_i32_1 = arith.constant 0 : i32
    return %arg0, %c0_i32, %c0_i32_0 : i32, i32, i32
  }
  func.func @transform_1(%arg0: i32) -> (i32, i32) {
    %c0_i32 = arith.constant 0 : i32
    %c0_i32_0 = arith.constant 0 : i32
    %c0_i32_1 = arith.constant 0 : i32
    return %c0_i32, %c0_i32_0 : i32, i32
  }
  func.func @transform_2(%arg0: i32) -> (i32, i32) {
    %c0_i32 = arith.constant 0 : i32
    %c0_i32_0 = arith.constant 0 : i32
    %c0_i32_1 = arith.constant 0 : i32
    return %c0_i32, %c0_i32_0 : i32, i32
  }
  func.func @transform_3(%arg0: i32) -> (i32, i32) {
    %c0_i32 = arith.constant 0 : i32
    %c0_i32_0 = arith.constant 0 : i32
    %c0_i32_1 = arith.constant 0 : i32
    return %c0_i32, %c0_i32_0 : i32, i32
  }
  func.func @transform_4(%arg0: i32) -> (i32, i32) {
    %c0_i32 = arith.constant 0 : i32
    %c0_i32_0 = arith.constant 0 : i32
    %c0_i32_1 = arith.constant 0 : i32
    return %c0_i32, %c0_i32_0 : i32, i32
  }
  func.func @transform_5(%arg0: i32) -> (i32, i32) {
    %c0_i32 = arith.constant 0 : i32
    %c0_i32_0 = arith.constant 0 : i32
    %c0_i32_1 = arith.constant 0 : i32
    return %c0_i32, %c0_i32_0 : i32, i32
  }
  func.func @transform_6(%arg0: i32) -> (i32, i32) {
    %c0_i32 = arith.constant 0 : i32
    %c0_i32_0 = arith.constant 0 : i32
    %c0_i32_1 = arith.constant 0 : i32
    return %c0_i32, %c0_i32_0 : i32, i32
  }
  func.func @transform_7(%arg0: i32) -> (i32, i32) {
    %c0_i32 = arith.constant 0 : i32
    %c0_i32_0 = arith.constant 0 : i32
    %c0_i32_1 = arith.constant 0 : i32
    return %c0_i32, %c0_i32_0 : i32, i32
  }
  func.func @transform_8(%arg0: i32) -> (i32, i32) {
    %c0_i32 = arith.constant 0 : i32
    %c0_i32_0 = arith.constant 0 : i32
    %c0_i32_1 = arith.constant 0 : i32
    return %c0_i32, %c0_i32_0 : i32, i32
  }
  func.func @transform_9(%arg0: i32) -> (i32, i32) {
    %c0_i32 = arith.constant 0 : i32
    %c0_i32_0 = arith.constant 0 : i32
    %c0_i32_1 = arith.constant 0 : i32
    return %c0_i32, %c0_i32_0 : i32, i32
  }
  func.func @transform_10(%arg0: i32) -> (i32, i32) {
    %c0_i32 = arith.constant 0 : i32
    %c0_i32_0 = arith.constant 0 : i32
    %c0_i32_1 = arith.constant 0 : i32
    return %c0_i32, %c0_i32_0 : i32, i32
  }
  func.func @transform_11(%arg0: i32) -> (i32, i32) {
    %c0_i32 = arith.constant 0 : i32
    %c0_i32_0 = arith.constant 0 : i32
    %c0_i32_1 = arith.constant 0 : i32
    return %c0_i32, %c0_i32_0 : i32, i32
  }
  func.func @transform_12(%arg0: i32) -> (i32, i32) {
    %c0_i32 = arith.constant 0 : i32
    %c0_i32_0 = arith.constant 0 : i32
    %c0_i32_1 = arith.constant 0 : i32
    return %c0_i32, %c0_i32_0 : i32, i32
  }
  func.func @transform_13(%arg0: i32) -> (i32, i32) {
    %c0_i32 = arith.constant 0 : i32
    %c0_i32_0 = arith.constant 0 : i32
    %c0_i32_1 = arith.constant 0 : i32
    return %c0_i32, %c0_i32_0 : i32, i32
  }
  func.func @transform_14(%arg0: i32) -> (i32, i32) {
    %c0_i32 = arith.constant 0 : i32
    %c0_i32_0 = arith.constant 0 : i32
    %c0_i32_1 = arith.constant 0 : i32
    return %c0_i32, %c0_i32_0 : i32, i32
  }
  func.func @transform_15(%arg0: i32) -> (i32, i32) {
    %c0_i32 = arith.constant 0 : i32
    %c0_i32_0 = arith.constant 0 : i32
    %c0_i32_1 = arith.constant 0 : i32
    return %c0_i32, %c0_i32_0 : i32, i32
  }
  func.func @transform_16(%arg0: i32) -> (i32, i32) {
    %c0_i32 = arith.constant 0 : i32
    %c0_i32_0 = arith.constant 0 : i32
    %c0_i32_1 = arith.constant 0 : i32
    return %c0_i32, %c0_i32_0 : i32, i32
  }
  func.func @transform_17(%arg0: i32) -> (i32, i32) {
    %c0_i32 = arith.constant 0 : i32
    %c0_i32_0 = arith.constant 0 : i32
    %c0_i32_1 = arith.constant 0 : i32
    return %c0_i32, %c0_i32_0 : i32, i32
  }
  func.func @transform_18(%arg0: i32) -> (i32, i32) {
    %c0_i32 = arith.constant 0 : i32
    %c0_i32_0 = arith.constant 0 : i32
    %c0_i32_1 = arith.constant 0 : i32
    return %c0_i32, %c0_i32_0 : i32, i32
  }
  func.func @transform_19(%arg0: i32) -> (i32, i32) {
    %c0_i32 = arith.constant 0 : i32
    %c0_i32_0 = arith.constant 0 : i32
    %c0_i32_1 = arith.constant 0 : i32
    return %c0_i32, %c0_i32_0 : i32, i32
  }
  func.func @transform_20(%arg0: i32) -> (i32, i32) {
    %c0_i32 = arith.constant 0 : i32
    %c0_i32_0 = arith.constant 0 : i32
    %c0_i32_1 = arith.constant 0 : i32
    return %c0_i32, %c0_i32_0 : i32, i32
  }
  func.func @transform_21(%arg0: i32) -> (i32, i32) {
    %c0_i32 = arith.constant 0 : i32
    %c0_i32_0 = arith.constant 0 : i32
    %c0_i32_1 = arith.constant 0 : i32
    return %c0_i32, %c0_i32_0 : i32, i32
  }
  func.func @transform_22(%arg0: i32) -> (i32, i32) {
    %c0_i32 = arith.constant 0 : i32
    %c0_i32_0 = arith.constant 0 : i32
    %c0_i32_1 = arith.constant 0 : i32
    return %c0_i32, %c0_i32_0 : i32, i32
  }
  func.func @transform_23(%arg0: i32) -> (i32, i32) {
    %c0_i32 = arith.constant 0 : i32
    %c0_i32_0 = arith.constant 0 : i32
    %c0_i32_1 = arith.constant 0 : i32
    return %c0_i32, %c0_i32_0 : i32, i32
  }
  func.func @transform_24(%arg0: i32) -> (i32, i32) {
    %c0_i32 = arith.constant 0 : i32
    %c0_i32_0 = arith.constant 0 : i32
    %c0_i32_1 = arith.constant 0 : i32
    return %c0_i32, %c0_i32_0 : i32, i32
  }
  func.func @transform_25(%arg0: i32) -> (i32, i32) {
    %c0_i32 = arith.constant 0 : i32
    %c0_i32_0 = arith.constant 0 : i32
    %c0_i32_1 = arith.constant 0 : i32
    return %c0_i32, %c0_i32_0 : i32, i32
  }
  func.func @transform_26(%arg0: i32) -> (i32, i32, i32) {
    %c0_i32 = arith.constant 0 : i32
    %c0_i32_0 = arith.constant 0 : i32
    %c0_i32_1 = arith.constant 0 : i32
    return %arg0, %c0_i32, %c0_i32_0 : i32, i32, i32
  }
}

module attributes {stable_mosaic.version = 11 : i64} {
  func.func @kernel(%arg0: i32, %arg1: memref<1x16x640xbf16, #tpu.memory_space<vmem>>, %arg2: memref<9x640xf32, #tpu.memory_space<vmem>>, %arg3: memref<3x144xbf16, #tpu.memory_space<vmem>>, %arg4: memref<3x1xf32, #tpu.memory_space<vmem>>, %arg5: memref<3x1xf32, #tpu.memory_space<vmem>>, %arg6: memref<3x1xf32, #tpu.memory_space<vmem>>, %arg7: memref<1x3x640xf32, #tpu.memory_space<vmem>>) attributes {dimension_semantics = [#tpu.dimension_semantics<parallel>], iteration_bounds = array<i64: 2>, scalar_prefetch = 0 : i64, scratch_operands = 0 : i64, tpu.core_type = #tpu.core_type<tc>, window_params = [{transform_indices = @transform_0, window_bounds = array<i64: 1, 16, 640>}, {pipeline_mode = #tpu.pipeline_mode<synchronous>, transform_indices = @transform_1, window_bounds = array<i64: 9, 640>}, {pipeline_mode = #tpu.pipeline_mode<synchronous>, transform_indices = @transform_2, window_bounds = array<i64: 3, 144>}, {pipeline_mode = #tpu.pipeline_mode<synchronous>, transform_indices = @transform_3, window_bounds = array<i64: 3, 1>}, {pipeline_mode = #tpu.pipeline_mode<synchronous>, transform_indices = @transform_4, window_bounds = array<i64: 3, 1>}, {pipeline_mode = #tpu.pipeline_mode<synchronous>, transform_indices = @transform_5, window_bounds = array<i64: 3, 1>}, {transform_indices = @transform_6, window_bounds = array<i64: 1, 3, 640>}]} {
    %c0 = arith.constant 0 : index
    %c0_0 = arith.constant 0 : index
    %0 = vector.load %arg2[%c0, %c0_0] : memref<9x640xf32, #tpu.memory_space<vmem>>, vector<9x640xf32>
    %1 = vector.extract_strided_slice %0 {offsets = [0, 0], sizes = [1, 640], strides = [1, 1]} : vector<9x640xf32> to vector<1x640xf32>
    %2 = vector.extract_strided_slice %0 {offsets = [1, 0], sizes = [1, 640], strides = [1, 1]} : vector<9x640xf32> to vector<1x640xf32>
    %3 = vector.extract_strided_slice %0 {offsets = [2, 0], sizes = [1, 640], strides = [1, 1]} : vector<9x640xf32> to vector<1x640xf32>
    %4 = vector.extract_strided_slice %0 {offsets = [3, 0], sizes = [1, 640], strides = [1, 1]} : vector<9x640xf32> to vector<1x640xf32>
    %5 = vector.extract_strided_slice %0 {offsets = [5, 0], sizes = [1, 640], strides = [1, 1]} : vector<9x640xf32> to vector<1x640xf32>
    %6 = vector.extract_strided_slice %0 {offsets = [6, 0], sizes = [1, 640], strides = [1, 1]} : vector<9x640xf32> to vector<1x640xf32>
    %7 = vector.extract_strided_slice %0 {offsets = [7, 0], sizes = [1, 640], strides = [1, 1]} : vector<9x640xf32> to vector<1x640xf32>
    %8 = vector.extract_strided_slice %0 {offsets = [8, 0], sizes = [1, 640], strides = [1, 1]} : vector<9x640xf32> to vector<1x640xf32>
    %c0_1 = arith.constant 0 : index
    %c0_2 = arith.constant 0 : index
    %c0_3 = arith.constant 0 : index
    %9 = vector.load %arg1[%c0_1, %c0_2, %c0_3] : memref<1x16x640xbf16, #tpu.memory_space<vmem>>, vector<1x16x640xbf16>
    %10 = vector.shape_cast %9 : vector<1x16x640xbf16> to vector<16x640xbf16>
    %11 = arith.extf %10 : vector<16x640xbf16> to vector<16x640xf32>
    %c0_4 = arith.constant 0 : index
    %c0_5 = arith.constant 0 : index
    %12 = vector.load %arg3[%c0_4, %c0_5] : memref<3x144xbf16, #tpu.memory_space<vmem>>, vector<3x144xbf16>
    %c0_6 = arith.constant 0 : index
    %c0_7 = arith.constant 0 : index
    %13 = vector.load %arg4[%c0_6, %c0_7] : memref<3x1xf32, #tpu.memory_space<vmem>>, vector<3x1xf32>
    %c25_i32 = arith.constant 25 : i32
    %14 = tpu.dynamic_rotate %11 by %c25_i32 dim 1 : vector<16x640xf32>, i32 -> vector<16x640xf32>
    %15 = vector.broadcast %1 : vector<1x640xf32> to vector<16x640xf32>
    %16 = arith.mulf %14, %15 : vector<16x640xf32>
    %c24_i32 = arith.constant 24 : i32
    %17 = tpu.dynamic_rotate %11 by %c24_i32 dim 1 : vector<16x640xf32>, i32 -> vector<16x640xf32>
    %18 = vector.broadcast %2 : vector<1x640xf32> to vector<16x640xf32>
    %19 = arith.mulf %17, %18 : vector<16x640xf32>
    %c23_i32 = arith.constant 23 : i32
    %20 = tpu.dynamic_rotate %11 by %c23_i32 dim 1 : vector<16x640xf32>, i32 -> vector<16x640xf32>
    %21 = vector.broadcast %3 : vector<1x640xf32> to vector<16x640xf32>
    %22 = arith.mulf %20, %21 : vector<16x640xf32>
    %c1_i32 = arith.constant 1 : i32
    %23 = tpu.dynamic_rotate %11 by %c1_i32 dim 1 : vector<16x640xf32>, i32 -> vector<16x640xf32>
    %24 = vector.broadcast %4 : vector<1x640xf32> to vector<16x640xf32>
    %25 = arith.mulf %23, %24 : vector<16x640xf32>
    %c639_i32 = arith.constant 639 : i32
    %26 = tpu.dynamic_rotate %11 by %c639_i32 dim 1 : vector<16x640xf32>, i32 -> vector<16x640xf32>
    %27 = vector.broadcast %5 : vector<1x640xf32> to vector<16x640xf32>
    %28 = arith.mulf %26, %27 : vector<16x640xf32>
    %c617_i32 = arith.constant 617 : i32
    %29 = tpu.dynamic_rotate %11 by %c617_i32 dim 1 : vector<16x640xf32>, i32 -> vector<16x640xf32>
    %30 = vector.broadcast %6 : vector<1x640xf32> to vector<16x640xf32>
    %31 = arith.mulf %29, %30 : vector<16x640xf32>
    %c616_i32 = arith.constant 616 : i32
    %32 = tpu.dynamic_rotate %11 by %c616_i32 dim 1 : vector<16x640xf32>, i32 -> vector<16x640xf32>
    %33 = vector.broadcast %7 : vector<1x640xf32> to vector<16x640xf32>
    %34 = arith.mulf %32, %33 : vector<16x640xf32>
    %c615_i32 = arith.constant 615 : i32
    %35 = tpu.dynamic_rotate %11 by %c615_i32 dim 1 : vector<16x640xf32>, i32 -> vector<16x640xf32>
    %36 = vector.broadcast %8 : vector<1x640xf32> to vector<16x640xf32>
    %37 = arith.mulf %35, %36 : vector<16x640xf32>
    %38 = tpu.concatenate %16, %19, %22, %25, %11, %28, %31, %34, %37 in 0 : vector<16x640xf32>, vector<16x640xf32>, vector<16x640xf32>, vector<16x640xf32>, vector<16x640xf32>, vector<16x640xf32>, vector<16x640xf32>, vector<16x640xf32>, vector<16x640xf32> -> vector<144x640xf32>
    %39 = arith.truncf %38 : vector<144x640xf32> to vector<144x640xbf16>
    %cst = arith.constant dense<0.000000e+00> : vector<3x640xf32>
    %40 = tpu.matmul %12, %39, %cst {dimension_numbers = #tpu.dot_dimension_numbers<[1], [0], [0], [1], [0, 0, 1, 1], [], []>} : vector<3x144xbf16>, vector<144x640xbf16>, vector<3x640xf32> -> vector<3x640xf32>
    %41 = vector.broadcast %13 : vector<3x1xf32> to vector<3x640xf32>
    %42 = arith.addf %40, %41 : vector<3x640xf32>
    %c0_8 = arith.constant 0 : index
    %c0_9 = arith.constant 0 : index
    %43 = vector.load %arg5[%c0_8, %c0_9] : memref<3x1xf32, #tpu.memory_space<vmem>>, vector<3x1xf32>
    %44 = vector.broadcast %43 : vector<3x1xf32> to vector<3x640xf32>
    %45 = arith.mulf %42, %44 : vector<3x640xf32>
    %c0_10 = arith.constant 0 : index
    %c0_11 = arith.constant 0 : index
    %46 = vector.load %arg6[%c0_10, %c0_11] : memref<3x1xf32, #tpu.memory_space<vmem>>, vector<3x1xf32>
    %47 = vector.broadcast %46 : vector<3x1xf32> to vector<3x640xf32>
    %48 = arith.addf %45, %47 : vector<3x640xf32>
    %c0_12 = arith.constant 0 : index
    %c0_13 = arith.constant 0 : index
    %c0_14 = arith.constant 0 : index
    %49 = vector.load %arg7[%c0_12, %c0_13, %c0_14] : memref<1x3x640xf32, #tpu.memory_space<vmem>>, vector<1x3x640xf32>
    %50 = vector.shape_cast %49 : vector<1x3x640xf32> to vector<3x640xf32>
    %51 = vector.shape_cast %48 : vector<3x640xf32> to vector<1x3x640xf32>
    tpu.vector_store %arg7[%c0_12, %c0_13, %c0_14], %51 {strides = array<i32>} : memref<1x3x640xf32, #tpu.memory_space<vmem>>, vector<1x3x640xf32>,
    return
  }
  func.func @transform_0(%arg0: i32) -> (i32, i32, i32) {
    %c0_i32 = arith.constant 0 : i32
    %c0_i32_0 = arith.constant 0 : i32
    %c0_i32_1 = arith.constant 0 : i32
    return %arg0, %c0_i32, %c0_i32_0 : i32, i32, i32
  }
  func.func @transform_1(%arg0: i32) -> (i32, i32) {
    %c0_i32 = arith.constant 0 : i32
    %c0_i32_0 = arith.constant 0 : i32
    %c0_i32_1 = arith.constant 0 : i32
    return %c0_i32, %c0_i32_0 : i32, i32
  }
  func.func @transform_2(%arg0: i32) -> (i32, i32) {
    %c0_i32 = arith.constant 0 : i32
    %c0_i32_0 = arith.constant 0 : i32
    %c0_i32_1 = arith.constant 0 : i32
    return %c0_i32, %c0_i32_0 : i32, i32
  }
  func.func @transform_3(%arg0: i32) -> (i32, i32) {
    %c0_i32 = arith.constant 0 : i32
    %c0_i32_0 = arith.constant 0 : i32
    %c0_i32_1 = arith.constant 0 : i32
    return %c0_i32, %c0_i32_0 : i32, i32
  }
  func.func @transform_4(%arg0: i32) -> (i32, i32) {
    %c0_i32 = arith.constant 0 : i32
    %c0_i32_0 = arith.constant 0 : i32
    %c0_i32_1 = arith.constant 0 : i32
    return %c0_i32, %c0_i32_0 : i32, i32
  }
  func.func @transform_5(%arg0: i32) -> (i32, i32) {
    %c0_i32 = arith.constant 0 : i32
    %c0_i32_0 = arith.constant 0 : i32
    %c0_i32_1 = arith.constant 0 : i32
    return %c0_i32, %c0_i32_0 : i32, i32
  }
  func.func @transform_6(%arg0: i32) -> (i32, i32, i32) {
    %c0_i32 = arith.constant 0 : i32
    %c0_i32_0 = arith.constant 0 : i32
    %c0_i32_1 = arith.constant 0 : i32
    return %arg0, %c0_i32, %c0_i32_0 : i32, i32, i32
  }
}

</mosaic_0001>

<bundles_post_ra>
// kernel: _lambda_.3
= control target key start
LH: loop header
LB: loop body
LE: loop exit
PB: predicated region body
PF: predicated region fallthrough
CT: control target
= control target key end

     0   :  { %s1346_s21 = smov 0   ;;  %s2080_s0 = inlined_call_operand.vmem [shape: bf16[2,16,640], index: 0, kind: input, shape index: {}]   ;;  %s2081_s1 = inlined_call_operand.vmem [shape: f32[9,640], index: 1, kind: input, shape index: {}]   ;;  %s2082_s2 = inlined_call_operand.vmem [shape: bf16[3,144], index: 2, kind: input, shape index: {}]   ;;  %s2083_s3 = inlined_call_operand.vmem [shape: f32[3,1], index: 3, kind: input, shape index: {}]   ;;  %s2084_s4 = inlined_call_operand.vmem [shape: f32[3,1], index: 4, kind: input, shape index: {}]   ;;  %s2085_s5 = inlined_call_operand.vmem [shape: f32[3,1], index: 5, kind: input, shape index: {}]   ;;  %s2086_s6 = inlined_call_operand.vmem [shape: f32[2,3,640], index: 6, kind: output, shape index: {}]  }
   0x1 LB: > { %s1045_s22 = sadd.s32 4294967295, %s1300_s21   ;;  %p1049_p0 = scmp.ge.s32.totalorder %s1300_s21, 1  ;;  %s1300_s21 = sphi %s1346_s21, %s16_s21  }
   0x2   : > { %p212_p1 = scmp.lt.s32.totalorder %s1300_s21, 3 }
   0x4   : > { %p213_p2 = pnand %p1049_p0, %p212_p1 }
   0x6   : > { %216 = sbr.rel (%p213_p2) target bundleno = 469 (0x1d5), region = 44 }
   0xd   : > { %p242_p3 = scmp.lt.s32.totalorder %s1045_s22, 1  ;;  %s1302_s27 = smov 25   ;;  %v1420_v23 = vld.sshfl [vmem:[%s2082_s2] sm:$0x33 pattern:$0x76325410]  ;;  %v301_v29 = vlaneseq }
   0xe   : > { %s1303_s28 = smov 24   ;;  %s1304_s29 = smov 23   ;;  %v1425_v24 = vcombine.high %v1420_v23, %v1420_v23  ;;  %vm831_vm0 = vcmask 130048   ;;  %v2109_v25 = vmov 0   ;;  %v957_v26 = vld [vmem:[%s2084_s4] sm:$0x7] }
   0xf   : > { %s2161_s22 = smov (!%p242_p3, %s1045_s22), 1  ;;  %s1305_s30 = smov 1   ;;  %1287 = vset.pattern.permute.xlu0 %v2109_v25  ;;  %1288 = vset.pattern.permute.xlu1 %v2109_v25  ;;  %v280_v27 = vld [vmem:[%s2083_s3] sm:$0x7]  ;;  %v1460_v30 = vshrl.u32 %v301_v29, 7  ;;  %v1462_v31 = vand.u32 127, %v301_v29 }
  0x10   : > { %s1068_s23 = smul.u32 40, %s2161_s22  ;;  %s1306_s7 = smov 127   ;;  %1063 = vmatprep.mubr.msk.bf16.mxu0 %vm831_vm0, %v1425_v24  ;;  %1064 = vmatprep.mubr.msk.bf16.mxu1 %vm831_vm0, %v1425_v24  ;;  %v968_v28 = vld [vmem:[%s2085_s5] sm:$0x7]  ;;  %v1480_v40 = vld [vmem:[%s2081_s1 + $0x8] sm:$0xff] }
  0x11   : > { %s1307_s8 = smov 105   ;;  %s1308_s9 = smov 104   ;;  %v1465_v32 = vsub.s32 0, %v1460_v30  ;;  %v1472_v34 = vld [vmem:[%s2081_s1] sm:$0xff]  ;;  %vm303_vm1 = vcmp.lt.s32.totalorder %v1462_v31, 25  ;;  %v1485_v42 = vsub.s32 1, %v1460_v30 }
  0x12   : > { %s246_s26 = scalar_lea.vmem %s2080_s0, %s1068_s23  ;;  %s1309_s10 = smov 103   ;;  %vm364_vm2 = vcmp.lt.s32.totalorder %v1462_v31, 24  ;;  %v1503_v50 = vsub.s32 2, %v1460_v30  ;;  %vm425_vm3 = vcmp.lt.s32.totalorder %v1462_v31, 23  ;;  %vm486_vm4 = vcmp.lt.s32.totalorder %v1462_v31, 1 }
  0x13   : > { %v1360_v0 = vld [vmem:[%s246_s26 + $0x10] sm:$0xf]  ;;  %v1362_v1 = vld [vmem:[%s246_s26 + $0x24] sm:$0xf]  ;;  %v1368_v5 = vld [vmem:[%s246_s26 + $0x14] sm:$0xff]  ;;  %v317_v41 = vrot.slane %v1472_v34, %v1465_v32  ;;  %v321_v47 = vrot.slane %v1480_v40, %v1465_v32  ;;  %v382_v53 = vrot.slane %v1480_v40, %v1485_v42  ;;  %v378_v54 = vrot.slane %v1472_v34, %v1485_v42  ;;  %s1069_s17 = smul.u32 20, %s2161_s22 }
  0x14   : > { %v1364_v2 = vld [vmem:[%s246_s26] sm:$0xff]  ;;  %v273_v3 = vunpack.c.l.bf16 %v1360_v0  ;;  %v278_v4 = vunpack.c.l.bf16 %v1362_v1  ;;  %v274_v7 = vunpack.c.l.bf16 %v1368_v5  ;;  %v275_v9 = vunpack.c.h.bf16 %v1368_v5  ;;  %v1386_v13 = vld [vmem:[%s246_s26 + $0x8] sm:$0xff] }
  0x15   : > { %v269_v6 = vunpack.c.l.bf16 %v1364_v2  ;;  %v270_v8 = vunpack.c.h.bf16 %v1364_v2  ;;  %v1388_v14 = vld [vmem:[%s246_s26 + $0x1c] sm:$0xff]  ;;  %v271_v15 = vunpack.c.l.bf16 %v1386_v13  ;;  %v1058_v17 = vcombine.high %v1364_v2, %v1368_v5  ;;  %s251_s20 = scalar_lea.vmem %s2086_s6, %s1069_s17 }
  0x16   : > { %v1374_v10 = vpack.i.bf16 %v278_v4, %v273_v3  ;;  %v276_v16 = vunpack.c.l.bf16 %v1388_v14  ;;  %v1057_v18 = vcombine.low %v1364_v2, %v1368_v5  ;;  %v272_v20 = vunpack.c.h.bf16 %v1386_v13 }
  0x17   : > { %v1087_v11 = vpack.i.bf16 %v274_v7, %v269_v6  ;;  %v1092_v12 = vpack.i.bf16 %v275_v9, %v270_v8  ;;  %v277_v21 = vunpack.c.h.bf16 %v1388_v14  ;;  %v443_v7 = vrot.slane %v1480_v40, %v1503_v50 }
  0x18   : > { %1098 = vrot.lane.b32.xlu1 %v1374_v10, %s1302_s27  ;;  %v1152_v19 = vpack.i.bf16 %v276_v16, %v271_v15  ;;  %vm547_vm5 = vcmp.lt.s32.totalorder %v1462_v31, 127  ;;  %vm608_vm6 = vcmp.lt.s32.totalorder %v1462_v31, 105  ;;  %vm669_vm7 = vcmp.lt.s32.totalorder %v1462_v31, 104 }
  0x19   : > { %1088 = vrot.lane.b32.xlu0 %v1087_v11, %s1302_s27  ;;  %v1207_v22 = vpack.i.bf16 %v277_v21, %v272_v20  ;;  %vm730_vm8 = vcmp.lt.s32.totalorder %v1462_v31, 103 }
  0x1c   : > { %1103 = vrot.lane.b32.xlu1 %v1087_v11, %s1303_s28 }
  0x1d   : > { %1093 = vrot.lane.b32.xlu0 %v1092_v12, %s1302_s27 }
  0x20   : > { %1113 = vrot.lane.b32.xlu1 %v1374_v10, %s1303_s28 }
  0x21   : > { %1108 = vrot.lane.b32.xlu0 %v1092_v12, %s1303_s28 }
  0x24   : > { %1123 = vrot.lane.b32.xlu1 %v1092_v12, %s1304_s29 }
  0x25   : > { %1118 = vrot.lane.b32.xlu0 %v1087_v11, %s1304_s29 }
  0x28   : > { %1133 = vrot.lane.b32.xlu1 %v1087_v11, %s1305_s30 }
  0x29   : > { %1128 = vrot.lane.b32.xlu0 %v1374_v10, %s1304_s29 }
  0x2c   : > { %1143 = vrot.lane.b32.xlu1 %v1374_v10, %s1305_s30 }
  0x2d   : > { %1138 = vrot.lane.b32.xlu0 %v1092_v12, %s1305_s30 }
  0x30   : > { %1153 = vrot.lane.b32.xlu1 %v1152_v19, %s1306_s7 }
  0x31   : > { %1148 = vrot.lane.b32.xlu0 %v1092_v12, %s1306_s7 }
  0x34   : > { %1163 = vrot.lane.b32.xlu1 %v1092_v12, %s1307_s8 }
  0x35   : > { %1158 = vrot.lane.b32.xlu0 %v1087_v11, %s1306_s7 }
  0x38   : > { %1173 = vrot.lane.b32.xlu1 %v1087_v11, %s1307_s8 }
  0x39   : > { %1168 = vrot.lane.b32.xlu0 %v1152_v19, %s1307_s8 }
  0x3c   : > { %1183 = vrot.lane.b32.xlu1 %v1152_v19, %s1308_s9 }
  0x3d   : > { %1178 = vrot.lane.b32.xlu0 %v1092_v12, %s1308_s9 }
  0x40   : > { %1193 = vrot.lane.b32.xlu1 %v1092_v12, %s1309_s10 }
  0x41   : > { %1188 = vrot.lane.b32.xlu0 %v1087_v11, %s1308_s9 }
  0x44   : > { %1203 = vrot.lane.b32.xlu1 %v1152_v19, %s1302_s27 }
  0x45   : > { %1198 = vrot.lane.b32.xlu0 %v1152_v19, %s1309_s10 }
  0x48   : > { %1213 = vrot.lane.b32.xlu1 %v1087_v11, %s1309_s10 }
  0x49   : > { %1208 = vrot.lane.b32.xlu0 %v1207_v22, %s1302_s27 }
  0x4c   : > { %1223 = vrot.lane.b32.xlu1 %v1207_v22, %s1303_s28 }
  0x4d   : > { %1218 = vrot.lane.b32.xlu0 %v1152_v19, %s1303_s28 }
  0x50   : > { %1233 = vrot.lane.b32.xlu1 %v1207_v22, %s1304_s29 }
  0x51   : > { %1228 = vrot.lane.b32.xlu0 %v1152_v19, %s1304_s29 }
  0x54   : > { %1243 = vrot.lane.b32.xlu1 %v1207_v22, %s1305_s30 }
  0x55   : > { %1238 = vrot.lane.b32.xlu0 %v1152_v19, %s1305_s30 }
  0x58   : > { %1253 = vrot.lane.b32.xlu1 %v1374_v10, %s1306_s7 }
  0x59   : > { %1248 = vrot.lane.b32.xlu0 %v1207_v22, %s1306_s7 }
  0x5c   : > { %1263 = vrot.lane.b32.xlu1 %v1374_v10, %s1307_s8 }
  0x5d   : > { %1258 = vrot.lane.b32.xlu0 %v1207_v22, %s1307_s8 }
  0x60   : > { %1273 = vrot.lane.b32.xlu1 %v1374_v10, %s1308_s9 }
  0x61   : > { %1268 = vrot.lane.b32.xlu0 %v1207_v22, %s1308_s9 }
  0x64   : > { %1283 = vrot.lane.b32.xlu1 %v1374_v10, %s1309_s10 }
  0x65   : > { %1278 = vrot.lane.b32.xlu0 %v1207_v22, %s1309_s10 }
  0x68   : > { %960 = vperm.xlu1 %1288, %v957_v26  }
  0x69   : > { %818 = vperm.xlu0 %1287, %v280_v27  }
  0x6c   : > { %971 = vperm.xlu1 %1288, %v968_v28  }
  0x8a   : > { %v1467_v33 = vpop.permute.xlu1 %1098 }
  0x8b   : > { %v1101_v35 = vunpack.i.h.bf16 %v1467_v33  ;;  %v1100_v36 = vunpack.i.l.bf16 %v1467_v33  ;;  %v1089_v37 = vpop.permute.xlu0 %1088 }
  0x8c   : > { %v1091_v38 = vunpack.i.h.bf16 %v1089_v37  ;;  %v1090_v39 = vunpack.i.l.bf16 %v1089_v37 }
  0x8e   : > { %v1104_v43 = vpop.permute.xlu1 %1103  ;;  %v312_v44 = vsel %vm303_vm1, %v1100_v36, %v1090_v39  ;;  %v313_v45 = vsel %vm303_vm1, %v1101_v35, %v1091_v38 }
  0x8f   : > { %v1495_v46 = vpop.permute.xlu0 %1093  ;;  %v334_v51 = vmul.f32 %v317_v41, %v312_v44  ;;  %v339_v52 = vmul.f32 %v317_v41, %v313_v45  ;;  %v1106_v55 = vunpack.i.h.bf16 %v1104_v43  ;;  %v1105_v56 = vunpack.i.l.bf16 %v1104_v43 }
  0x90   : > { %v2114_v48 = vunpack.i.h.bf16 %v1495_v46  ;;  %v2117_v49 = vunpack.i.l.bf16 %v1495_v46  ;;  %v1549_v41 = vsub.s32 3, %v1460_v30 }
  0x91   : > { %v771_v11 = vpack.c.bf16 %v339_v52, %v334_v51 }
  0x92   : > { %v1509_v57 = vpop.permute.xlu1 %1113  ;;  %v310_v58 = vsel %vm303_vm1, %v1090_v39, %v2117_v49  ;;  %v311_v59 = vsel %vm303_vm1, %v1091_v38, %v2114_v48 }
  0x93   : > { %v2111_v60 = vunpack.i.h.bf16 %v1509_v57  ;;  %v2113_v61 = vunpack.i.l.bf16 %v1509_v57  ;;  %v1521_v62 = vpop.permute.xlu0 %1108  ;;  %v335_v63 = vmul.f32 %v321_v47, %v310_v58  ;;  %v340_v3 = vmul.f32 %v321_v47, %v311_v59 }
  0x94   : > { %v2107_v4 = vunpack.i.h.bf16 %v1521_v62  ;;  %v2108_v6 = vunpack.i.l.bf16 %v1521_v62  ;;  %v504_v58 = vrot.slane %v1480_v40, %v1549_v41  ;;  %v500_v59 = vrot.slane %v1472_v34, %v1549_v41 }
  0x95   : > { %v373_v8 = vsel %vm364_vm2, %v2113_v61, %v1105_v56  ;;  %v374_v9 = vsel %vm364_vm2, %v2111_v60, %v1106_v55  ;;  %v772_v10 = vpack.c.bf16 %v340_v3, %v335_v63  ;;  %v1571_v63 = vsub.s32 5, %v1460_v30  ;;  %v1052_v60 = vld [vmem:[%s2081_s1 + $0x28] ss:$0 sm:$0xff] }
  0x96   : > { %v372_v12 = vsel %vm364_vm2, %v1106_v55, %v2107_v4  ;;  %v371_v15 = vsel %vm364_vm2, %v1105_v56, %v2108_v6  ;;  %v1544_v16 = vpop.permute.xlu1 %1123  ;;  %v395_v19 = vmul.f32 %v378_v54, %v373_v8  ;;  %v400_v20 = vmul.f32 %v378_v54, %v374_v9 }
  0x97   : > { %v2105_v21 = vunpack.i.h.bf16 %v1544_v16  ;;  %v2104_v22 = vunpack.i.l.bf16 %v1544_v16  ;;  %v1119_v26 = vpop.permute.xlu0 %1118  ;;  %835 = vmatprep.subr.bf16.mxu0 %v772_v10  ;;  %v396_v27 = vmul.f32 %v382_v53, %v371_v15  ;;  %v401_v28 = vmul.f32 %v382_v53, %v372_v12 }
  0x98   : > { %v1121_v29 = vunpack.i.h.bf16 %v1119_v26  ;;  %v1120_v37 = vunpack.i.l.bf16 %v1119_v26  ;;  %836 = vmatpush1.bf16.msra.mxu0 %v771_v11  ;;  %v776_v38 = vpack.c.bf16 %v400_v20, %v395_v19  ;;  %v439_v53 = vrot.slane %v1472_v34, %v1503_v50 }
  0x99   : > { %v777_v39 = vpack.c.bf16 %v401_v28, %v396_v27 }
  0x9a   : > { %v433_v43 = vsel %vm425_vm3, %v1121_v29, %v2105_v21  ;;  %v432_v44 = vsel %vm425_vm3, %v1120_v37, %v2104_v22  ;;  %v1134_v45 = vpop.permute.xlu1 %1133  ;;  %v1053_v21 = vld [vmem:[%s2081_s1 + $0x30] ss:$0 sm:$0xff] }
  0x9b   : > { %v1559_v47 = vpop.permute.xlu0 %1128  ;;  %837 = vmatprep.subr.bf16.mxu0 %v777_v39  ;;  %v457_v51 = vmul.f32 %v443_v7, %v432_v44  ;;  %v462_v52 = vmul.f32 %v443_v7, %v433_v43  ;;  %v1136_v3 = vunpack.i.h.bf16 %v1134_v45  ;;  %v1135_v7 = vunpack.i.l.bf16 %v1134_v45 }
  0x9c   : > { %v2103_v54 = vunpack.i.h.bf16 %v1559_v47  ;;  %v2106_v55 = vunpack.i.l.bf16 %v1559_v47  ;;  %838 = vmatpush1.bf16.msra.mxu0 %v776_v38  ;;  %v565_v38 = vrot.slane %v1480_v40, %v1571_v63 }
  0x9d   : > { %v782_v56 = vpack.c.bf16 %v462_v52, %v457_v51 }
  0x9e   : > { %v434_v8 = vsel %vm425_vm3, %v2106_v55, %v1120_v37  ;;  %v435_v9 = vsel %vm425_vm3, %v2103_v54, %v1121_v29  ;;  %v1581_v10 = vpop.permute.xlu1 %1143 }
  0x9f   : > { %v2100_v11 = vunpack.i.h.bf16 %v1581_v10  ;;  %v2088_v12 = vunpack.i.l.bf16 %v1581_v10  ;;  %v1585_v15 = vpop.permute.xlu0 %1138  ;;  %839 = vmatprep.subr.bf16.mxu0 %v782_v56  ;;  %v456_v19 = vmul.f32 %v439_v53, %v434_v8  ;;  %v461_v20 = vmul.f32 %v439_v53, %v435_v9 }
  0xa0   : > { %v2087_v26 = vunpack.i.h.bf16 %v1585_v15  ;;  %v2091_v27 = vunpack.i.l.bf16 %v1585_v15 }
  0xa1   : > { %v495_v28 = vsel %vm486_vm4, %v2088_v12, %v1135_v7  ;;  %v496_v29 = vsel %vm486_vm4, %v2100_v11, %v1136_v3  ;;  %v781_v37 = vpack.c.bf16 %v461_v20, %v456_v19  ;;  %v1613_v12 = vsub.s32 6, %v1460_v30 }
  0xa2   : > { %v494_v39 = vsel %vm486_vm4, %v1136_v3, %v2087_v26  ;;  %v493_v43 = vsel %vm486_vm4, %v1135_v7, %v2091_v27  ;;  %v1608_v44 = vpop.permute.xlu1 %1153  ;;  %v517_v45 = vmul.f32 %v500_v59, %v495_v28  ;;  %v522_v51 = vmul.f32 %v500_v59, %v496_v29 }
  0xa3   : > { %v2090_v52 = vunpack.i.h.bf16 %v1608_v44  ;;  %v2089_v53 = vunpack.i.l.bf16 %v1608_v44  ;;  %v1149_v56 = vpop.permute.xlu0 %1148  ;;  %840 = vmatpush1.bf16.msra.mxu0 %v781_v37  ;;  %v518_v8 = vmul.f32 %v504_v58, %v493_v43  ;;  %v523_v9 = vmul.f32 %v504_v58, %v494_v39 }
  0xa4   : > { %v1151_v19 = vunpack.i.h.bf16 %v1149_v56  ;;  %v1150_v20 = vunpack.i.l.bf16 %v1149_v56  ;;  %v786_v3 = vpack.c.bf16 %v522_v51, %v517_v45  ;;  %v561_v39 = vrot.slane %v1472_v34, %v1571_v63 }
  0xa5   : > { %v787_v26 = vpack.c.bf16 %v523_v9, %v518_v8  ;;  %v1638_v56 = vsub.s32 7, %v1460_v30 }
  0xa6   : > { %v553_v59 = vsel %vm547_vm5, %v1151_v19, %v2090_v52  ;;  %v552_v7 = vsel %vm547_vm5, %v1150_v20, %v2089_v53  ;;  %v1164_v28 = vpop.permute.xlu1 %1163 }
  0xa7   : > { %v1623_v29 = vpop.permute.xlu0 %1158  ;;  %841 = vmatprep.subr.bf16.mxu0 %v787_v26  ;;  %v579_v58 = vmul.f32 %v565_v38, %v552_v7  ;;  %v584_v37 = vmul.f32 %v565_v38, %v553_v59  ;;  %v1166_v51 = vunpack.i.h.bf16 %v1164_v28  ;;  %v626_v26 = vrot.slane %v1480_v40, %v1613_v12 }
  0xa8   : > { %v2094_v43 = vunpack.i.h.bf16 %v1623_v29  ;;  %v2099_v45 = vunpack.i.l.bf16 %v1623_v29  ;;  %842 = vmatpush1.bf16.msra.mxu0 %v786_v3  ;;  %v622_v38 = vrot.slane %v1472_v34, %v1613_v12  ;;  %v1165_v8 = vunpack.i.l.bf16 %v1164_v28 }
  0xa9   : > { %843 = vmatprep.subr.bf16.mxu0 %v1058_v17  ;;  %v797_v59 = vpack.c.bf16 %v584_v37, %v579_v58 }
  0xaa   : > { %v554_v9 = vsel %vm547_vm5, %v2099_v45, %v1150_v20  ;;  %v555_v17 = vsel %vm547_vm5, %v2094_v43, %v1151_v19  ;;  %v1648_v3 = vpop.permute.xlu1 %1173 }
  0xab   : > { %v2092_v7 = vunpack.i.h.bf16 %v1648_v3  ;;  %v2093_v53 = vunpack.i.l.bf16 %v1648_v3  ;;  %v1652_v30 = vpop.permute.xlu0 %1168  ;;  %v578_v28 = vmul.f32 %v561_v39, %v554_v9  ;;  %v583_v52 = vmul.f32 %v561_v39, %v555_v17 }
  0xac   : > { %v2095_v27 = vunpack.i.h.bf16 %v1652_v30  ;;  %v2098_v20 = vunpack.i.l.bf16 %v1652_v30  ;;  %844 = vmatpush1.bf16.msra.mxu0 %v1057_v18  ;;  %v687_v39 = vrot.slane %v1480_v40, %v1638_v56 }
  0xad   : > { %v615_v19 = vsel %vm608_vm6, %v2093_v53, %v1165_v8  ;;  %v616_v58 = vsel %vm608_vm6, %v2092_v7, %v1166_v51  ;;  %845 = vmatprep.subr.bf16.mxu0 %v797_v59  ;;  %v796_v37 = vpack.c.bf16 %v583_v52, %v578_v28 }
  0xae   : > { %v614_v2 = vsel %vm608_vm6, %v1166_v51, %v2095_v27  ;;  %v613_v5 = vsel %vm608_vm6, %v1165_v8, %v2098_v20  ;;  %v1678_v18 = vpop.permute.xlu1 %1183  ;;  %v639_v9 = vmul.f32 %v622_v38, %v615_v19  ;;  %v644_v17 = vmul.f32 %v622_v38, %v616_v58  ;;  %v257_v27 = vld [vmem:[%s2081_s1 + $0x20] sm:$0xff]  ;;  %v1688_v38 = vld [vmem:[%s2081_s1 + $0x18] sm:$0xff]  ;;  %v1693_v19 = vld [vmem:[%s2081_s1 + $0x10] sm:$0xff] }
  0xaf   : > { %v2097_v59 = vunpack.i.h.bf16 %v1678_v18  ;;  %v2096_v52 = vunpack.i.l.bf16 %v1678_v18  ;;  %v1179_v28 = vpop.permute.xlu0 %1178  ;;  %v640_v40 = vmul.f32 %v626_v26, %v613_v5  ;;  %v645_v7 = vmul.f32 %v626_v26, %v614_v2 }
  0xb0   : > { %v1181_v53 = vunpack.i.h.bf16 %v1179_v28  ;;  %v1180_v43 = vunpack.i.l.bf16 %v1179_v28  ;;  %846 = vmatpush1.bf16.msra.mxu0 %v796_v37  ;;  %v801_v51 = vpack.c.bf16 %v644_v17, %v639_v9  ;;  %v683_v37 = vrot.slane %v1472_v34, %v1638_v56 }
  0xb1   : > { %v802_v8 = vpack.c.bf16 %v645_v7, %v640_v40  ;;  %v1709_v17 = vrot.slane %v257_v27, %v1465_v32  ;;  %v1712_v28 = vrot.slane %v257_v27, %v1485_v42  ;;  %v1722_v34 = vrot.slane %v1693_v19, %v1465_v32 }
  0xb2   : > { %v675_v26 = vsel %vm669_vm7, %v1181_v53, %v2097_v59  ;;  %v674_v7 = vsel %vm669_vm7, %v1180_v43, %v2096_v52  ;;  %v1194_v58 = vpop.permute.xlu1 %1193  ;;  %v1718_v59 = vrot.slane %v1688_v38, %v1465_v32  ;;  %v1748_v20 = vrot.slane %v1688_v38, %v1503_v50 }
  0xb3   : > { %v1706_v2 = vpop.permute.xlu0 %1188  ;;  %847 = vmatprep.subr.bf16.mxu0 %v802_v8  ;;  %v701_v5 = vmul.f32 %v687_v39, %v674_v7  ;;  %v706_v9 = vmul.f32 %v687_v39, %v675_v26  ;;  %v1725_v8 = vrot.slane %v257_v27, %v1503_v50  ;;  %v1729_v26 = vrot.slane %v1688_v38, %v1485_v42 }
  0xb4   : > { %v2102_v40 = vunpack.i.h.bf16 %v1706_v2  ;;  %v2101_v52 = vunpack.i.l.bf16 %v1706_v2  ;;  %848 = vmatpush1.bf16.msra.mxu0 %v801_v51  ;;  %v1733_v7 = vrot.slane %v1693_v19, %v1485_v42  ;;  %v1791_v48 = vrot.slane %v257_v27, %v1638_v56 }
  0xb5   : > { %v807_v39 = vpack.c.bf16 %v706_v9, %v701_v5  ;;  %v1744_v9 = vrot.slane %v257_v27, %v1549_v41 }
  0xb6   : > { %v676_v51 = vsel %vm669_vm7, %v2101_v52, %v1180_v43  ;;  %v677_v32 = vsel %vm669_vm7, %v2102_v40, %v1181_v53  ;;  %v1204_v5 = vpop.permute.xlu1 %1203  ;;  %v1753_v43 = vrot.slane %v257_v27, %v1571_v63  ;;  %v1757_v52 = vrot.slane %v1693_v19, %v1503_v50 }
  0xb7   : > { %v1750_v42 = vpop.permute.xlu0 %1198  ;;  %849 = vmatprep.subr.bf16.mxu0 %v807_v39  ;;  %v700_v45 = vmul.f32 %v683_v37, %v676_v51  ;;  %v705_v11 = vmul.f32 %v683_v37, %v677_v32  ;;  %v1196_v53 = vunpack.i.h.bf16 %v1194_v58  ;;  %v1195_v40 = vunpack.i.l.bf16 %v1194_v58 }
  0xb8   : > { %2123 = vst [vmem:[#allocation2_spill] sm:$0xff] %v1750_v42  ;;  %v2112_v54 = vunpack.i.h.bf16 %v1750_v42  ;;  %v2115_v22 = vunpack.i.l.bf16 %v1750_v42  ;;  %v1765_v37 = vrot.slane %v257_v27, %v1613_v12  ;;  %v1769_v51 = vrot.slane %v1688_v38, %v1549_v41 }
  0xb9   : > { %v806_v39 = vpack.c.bf16 %v705_v11, %v700_v45  ;;  %v1773_v50 = vrot.slane %v1693_v19, %v1549_v41  ;;  %v1206_v58 = vunpack.i.h.bf16 %v1204_v5  ;;  %v1205_v32 = vunpack.i.l.bf16 %v1204_v5 }
  0xba   : > { %v736_v55 = vsel %vm730_vm8, %v1196_v53, %v2112_v54  ;;  %v735_v11 = vsel %vm730_vm8, %v1195_v40, %v2115_v22  ;;  %v1783_v45 = vpop.permute.xlu1 %1213  ;;  %v1795_v22 = vrot.slane %v1693_v19, %v1571_v63 }
  0xbb   : > { %2124 = vst [vmem:[#allocation3_spill] sm:$0xff] %v1783_v45  ;;  %v2122_v4 = vunpack.i.h.bf16 %v1783_v45  ;;  %v2116_v6 = vunpack.i.l.bf16 %v1783_v45  ;;  %v1209_v41 = vpop.permute.xlu0 %1208  ;;  %850 = vmatpush1.bf16.msra.mxu0 %v806_v39  ;;  %v762_v25 = vmul.f32 %v1053_v21, %v735_v11  ;;  %v767_v5 = vmul.f32 %v1053_v21, %v736_v55 }
  0xbc   : > { %v1211_v54 = vunpack.i.h.bf16 %v1209_v41  ;;  %v1210_v61 = vunpack.i.l.bf16 %v1209_v41 }
  0xbd   : > { %v737_v39 = vsel %vm730_vm8, %v2116_v6, %v1195_v40  ;;  %v738_v21 = vsel %vm730_vm8, %v2122_v4, %v1196_v53  ;;  %v812_v55 = vpack.c.bf16 %v767_v5, %v762_v25  ;;  %v2125_v25 = vunpack.i.l.bf16 %v1495_v46 }
  0xbe   : > { %v305_v27 = vsel %vm303_vm1, %v1211_v54, %v1101_v35  ;;  %v304_v41 = vsel %vm303_vm1, %v1210_v61, %v1100_v36  ;;  %v1224_v40 = vpop.permute.xlu1 %1223  ;;  %v761_v6 = vmul.f32 %v1052_v60, %v737_v39  ;;  %v766_v49 = vmul.f32 %v1052_v60, %v738_v21 }
  0xbf   : > { %v1226_v45 = vunpack.i.h.bf16 %v1224_v40  ;;  %v1225_v42 = vunpack.i.l.bf16 %v1224_v40  ;;  %v1219_v53 = vpop.permute.xlu0 %1218  ;;  %851 = vmatprep.subr.bf16.mxu0 %v812_v55  ;;  %v308_v5 = vsel %vm303_vm1, %v2125_v25, %v1205_v32  ;;  %v2126_v4 = vunpack.i.h.bf16 %v1495_v46 }
  0xc0   : > { %v1221_v35 = vunpack.i.h.bf16 %v1219_v53  ;;  %v1220_v11 = vunpack.i.l.bf16 %v1219_v53  ;;  %v811_v36 = vpack.c.bf16 %v766_v49, %v761_v6  ;;  %v306_v60 = vsel %vm303_vm1, %v1205_v32, %v1210_v61 }
  0xc1   : > { %v309_v33 = vsel %vm303_vm1, %v2126_v4, %v1206_v58  ;;  %v343_v39 = vmul.f32 %v1709_v17, %v305_v27  ;;  %v338_v21 = vmul.f32 %v1709_v17, %v304_v41  ;;  %v307_v55 = vsel %vm303_vm1, %v1206_v58, %v1211_v54 }
  0xc2   : > { %v368_v46 = vsel %vm364_vm2, %v1221_v35, %v1226_v45  ;;  %v367_v4 = vsel %vm364_vm2, %v1220_v11, %v1225_v42  ;;  %v1234_v49 = vpop.permute.xlu1 %1233  ;;  %852 = vmatpush1.bf16.msra.mxu0 %v811_v36  ;;  %v336_v61 = vmul.f32 %v1722_v34, %v308_v5  ;;  %v341_v6 = vmul.f32 %v1722_v34, %v309_v33 }
  0xc3   : > { %v2127_v17 = vunpack.i.l.bf16 %v1509_v57  ;;  %v2128_v58 = vunpack.i.h.bf16 %v1509_v57  ;;  %v1236_v27 = vunpack.i.h.bf16 %v1234_v49  ;;  %v1229_v41 = vpop.permute.xlu0 %1228  ;;  %v337_v53 = vmul.f32 %v1718_v59, %v306_v60 }
  0xc4   : > { %v2129_v25 = vmov 0   ;;  %v1235_v36 = vunpack.i.l.bf16 %v1234_v49  ;;  %v1231_v5 = vunpack.i.h.bf16 %v1229_v41  ;;  %v342_v34 = vmul.f32 %v1718_v59, %v307_v55 }
  0xc5   : > { %v365_v54 = vsel %vm364_vm2, %v1225_v42, %v2127_v17  ;;  %v366_v32 = vsel %vm364_vm2, %v1226_v45, %v2128_v58  ;;  %917 = vmatprep.subr.bf16.mxu0 %v2129_v25  ;;  %v398_v33 = vmul.f32 %v1729_v26, %v367_v4  ;;  %v1230_v40 = vunpack.i.l.bf16 %v1229_v41  ;;  %868 = vmatmul.mubr.bf16.vlgmr.msra.gmra.mrb[0].mxu0 %v1420_v23 }
  0xc6   : > { %v403_v57 = vmul.f32 %v1729_v26, %v368_v46  ;;  %v775_v42 = vpack.c.bf16 %v343_v39, %v338_v21  ;;  %v1853_v45 = vrot.slane %v1688_v38, %v1571_v63  ;;  %v2130_v60 = vunpack.i.l.bf16 %v1521_v62  ;;  %v1244_v55 = vpop.permute.xlu1 %1243  ;;  %1065 = vmatprep.mubr.msk.bf16.mxu0 %vm831_vm0, %v1425_v24 }
  0xc7   : > { %v2131_v17 = vunpack.i.h.bf16 %v1521_v62  ;;  %v1061_v4 = vcombine.low %v1360_v0, %v1362_v1  ;;  %v1867_v26 = vrot.slane %v1693_v19, %v1613_v12  ;;  %v399_v63 = vmul.f32 %v1712_v28, %v365_v54  ;;  %v1239_v21 = vpop.permute.xlu0 %1238 }
  0xc8   : > { %v369_v49 = vsel %vm364_vm2, %v2130_v60, %v1220_v11  ;;  %v404_v11 = vmul.f32 %v1712_v28, %v366_v32  ;;  %v774_v39 = vpack.c.bf16 %v342_v34, %v337_v53  ;;  %v773_v62 = vpack.c.bf16 %v341_v6, %v336_v61  ;;  %918 = vmatpush1.bf16.msra.mxu0 %v775_v42 }
  0xc9   : > { %v370_v59 = vsel %vm364_vm2, %v2131_v17, %v1221_v35  ;;  %v2132_v35 = vunpack.i.l.bf16 %v1559_v47  ;;  %v429_v58 = vsel %vm425_vm3, %v1231_v5, %v1236_v27  ;;  %v1246_v41 = vunpack.i.h.bf16 %v1244_v55  ;;  %919 = vmatprep.subr.bf16.mxu0 %v2129_v25 }
  0xca   : > { %v779_v60 = vpack.c.bf16 %v403_v57, %v398_v33  ;;  %v2133_v24 = vunpack.i.h.bf16 %v1544_v16  ;;  %v428_v61 = vsel %vm425_vm3, %v1230_v40, %v1235_v36  ;;  %876 = vmatprep.subr.bf16.mxu1 %v774_v39  ;;  %v397_v6 = vmul.f32 %v1733_v7, %v369_v49  ;;  %v1254_v42 = vpop.permute.xlu1 %1253 }
  0xcb   : > { %v426_v46 = vsel %vm425_vm3, %v1235_v36, %v2132_v35  ;;  %v402_v54 = vmul.f32 %v1733_v7, %v370_v59  ;;  %v2134_v32 = vunpack.i.l.bf16 %v1544_v16  ;;  %877 = vmatpush1.bf16.msra.mxu1 %v773_v62  ;;  %v1245_v34 = vunpack.i.l.bf16 %v1244_v55  ;;  %v1249_v49 = vpop.permute.xlu0 %1248 }
  0xcc   : > { %v431_v28 = vsel %vm425_vm3, %v2133_v24, %v1231_v5  ;;  %v1241_v33 = vunpack.i.h.bf16 %v1239_v21  ;;  %v1240_v57 = vunpack.i.l.bf16 %v1239_v21  ;;  %v2135_v5 = vunpack.i.h.bf16 %v1559_v47  ;;  %878 = vmatprep.subr.bf16.mxu1 %v779_v60 }
  0xcd   : > { %v430_v53 = vsel %vm425_vm3, %v2134_v32, %v1230_v40  ;;  %v778_v17 = vpack.c.bf16 %v402_v54, %v397_v6  ;;  %v1898_v7 = vrot.slane %v1688_v38, %v1613_v12  ;;  %v1902_v16 = vrot.slane %v1693_v19, %v1638_v56 }
  0xce   : > { %v427_v36 = vsel %vm425_vm3, %v1236_v27, %v2135_v5  ;;  %v460_v40 = vmul.f32 %v1725_v8, %v426_v46  ;;  %v2136_v59 = vunpack.i.h.bf16 %v1581_v10  ;;  %v1255_v55 = vunpack.i.l.bf16 %v1254_v42  ;;  %v1264_v24 = vpop.permute.xlu1 %1263 }
  0xcf   : > { %v459_v27 = vmul.f32 %v1748_v20, %v428_v61  ;;  %v464_v39 = vmul.f32 %v1748_v20, %v429_v58  ;;  %v780_v62 = vpack.c.bf16 %v404_v11, %v399_v63  ;;  %v458_v12 = vmul.f32 %v1757_v52, %v430_v53  ;;  %879 = vmatpush1.bf16.msra.mxu1 %v778_v17  ;;  %v1259_v11 = vpop.permute.xlu0 %1258 }
  0xd0   : > { %v488_v47 = vsel %vm486_vm4, %v1246_v41, %v2136_v59  ;;  %v463_v21 = vmul.f32 %v1757_v52, %v431_v28  ;;  %v465_v19 = vmul.f32 %v1725_v8, %v427_v36  ;;  %v490_v35 = vsel %vm486_vm4, %v1241_v33, %v1246_v41 }
  0xd1   : > { %v489_v46 = vsel %vm486_vm4, %v1240_v57, %v1245_v34  ;;  %v1256_v60 = vunpack.i.h.bf16 %v1254_v42  ;;  %v2137_v61 = vunpack.i.l.bf16 %v1581_v10  ;;  %v526_v63 = vmul.f32 %v1744_v9, %v488_v47  ;;  %920 = vmatpush1.bf16.msra.mxu0 %v780_v62 }
  0xd2   : > { %v2138_v52 = vunpack.i.l.bf16 %v1585_v15  ;;  %v1929_v58 = vrot.slane %v1688_v38, %v1638_v56  ;;  %v2139_v41 = vunpack.i.h.bf16 %v1585_v15  ;;  %v1251_v28 = vunpack.i.h.bf16 %v1249_v49  ;;  %921 = vmatprep.subr.bf16.mxu0 %v2129_v25  ;;  %v1947_v36 = vpop.permute.xlu1 %1273 }
  0xd3   : > { %v487_v20 = vsel %vm486_vm4, %v1245_v34, %v2137_v61  ;;  %v784_v6 = vpack.c.bf16 %v464_v39, %v459_v27  ;;  %v783_v54 = vpack.c.bf16 %v463_v21, %v458_v12  ;;  %v2140_v32 = vunpack.i.l.bf16 %v1623_v29  ;;  %v1269_v59 = vpop.permute.xlu0 %1268 }
  0xd4   : > { %v491_v8 = vsel %vm486_vm4, %v2138_v52, %v1240_v57  ;;  %v492_v10 = vsel %vm486_vm4, %v2139_v41, %v1241_v33  ;;  %v1250_v34 = vunpack.i.l.bf16 %v1249_v49  ;;  %v520_v57 = vmul.f32 %v1769_v51, %v489_v46 }
  0xd5   : > { %v556_v53 = vsel %vm547_vm5, %v1255_v55, %v2140_v32  ;;  %v525_v56 = vmul.f32 %v1769_v51, %v490_v35  ;;  %v2141_v15 = vunpack.i.h.bf16 %v1623_v29  ;;  %880 = vmatprep.subr.bf16.mxu1 %v784_v6  ;;  %v1265_v33 = vunpack.i.l.bf16 %v1264_v24 }
  0xd6   : > { %v785_v42 = vpack.c.bf16 %v465_v19, %v460_v40  ;;  %v519_v5 = vmul.f32 %v1773_v50, %v491_v8  ;;  %v521_v17 = vmul.f32 %v1744_v9, %v487_v20  ;;  %v549_v49 = vsel %vm547_vm5, %v1251_v28, %v1256_v60  ;;  %881 = vmatpush1.bf16.msra.mxu1 %v783_v54 }
  0xd7   : > { %v557_v38 = vsel %vm547_vm5, %v1256_v60, %v2141_v15  ;;  %v548_v51 = vsel %vm547_vm5, %v1250_v34, %v1255_v55  ;;  %v1266_v29 = vunpack.i.h.bf16 %v1264_v24  ;;  %v2142_v47 = vunpack.i.h.bf16 %v1608_v44 }
  0xd8   : > { %v1260_v27 = vunpack.i.l.bf16 %v1259_v11  ;;  %v789_v39 = vpack.c.bf16 %v525_v56, %v520_v57  ;;  %922 = vmatpush1.bf16.msra.mxu0 %v785_v42  ;;  %v524_v62 = vmul.f32 %v1773_v50, %v492_v10  ;;  %v582_v9 = vmul.f32 %v1753_v43, %v556_v53  ;;  %v1970_v50 = vpop.permute.xlu1 %1283 }
  0xd9   : > { %v551_v40 = vsel %vm547_vm5, %v2142_v47, %v1251_v28  ;;  %v587_v12 = vmul.f32 %v1753_v43, %v557_v38  ;;  %v2143_v21 = vunpack.i.l.bf16 %v1608_v44  ;;  %v1261_v19 = vunpack.i.h.bf16 %v1259_v11  ;;  %923 = vmatprep.subr.bf16.mxu0 %v2129_v25  ;;  %v1279_v11 = vpop.permute.xlu0 %1278 }
  0xda   : > { %v2144_v35 = vunpack.i.l.bf16 %v1648_v3  ;;  %882 = vmatprep.subr.bf16.mxu1 %v789_v39  ;;  %v788_v60 = vpack.c.bf16 %v524_v62, %v519_v5  ;;  %v581_v24 = vmul.f32 %v1853_v45, %v548_v51  ;;  %v586_v43 = vmul.f32 %v1853_v45, %v549_v49  ;;  %v1055_v39 = vld [vmem:[%s2081_s1 + $0x40] ss:$0 sm:$0xff] }
  0xdb   : > { %v550_v55 = vsel %vm547_vm5, %v2143_v21, %v1250_v34  ;;  %v2145_v44 = vunpack.i.h.bf16 %v1648_v3  ;;  %v1276_v20 = vunpack.i.h.bf16 %v1947_v36  ;;  %v1271_v52 = vunpack.i.h.bf16 %v1269_v59 }
  0xdc   : > { %v617_v46 = vsel %vm608_vm6, %v1265_v33, %v2144_v35  ;;  %v790_v8 = vpack.c.bf16 %v526_v63, %v521_v17  ;;  %v610_v41 = vsel %vm608_vm6, %v1261_v19, %v1266_v29  ;;  %v609_v10 = vsel %vm608_vm6, %v1260_v27, %v1265_v33  ;;  %883 = vmatpush1.bf16.msra.mxu1 %v788_v60 }
  0xdd   : > { %v618_v61 = vsel %vm608_vm6, %v1266_v29, %v2145_v44  ;;  %v2146_v28 = vunpack.i.l.bf16 %v1652_v30  ;;  %v1275_v3 = vunpack.i.l.bf16 %v1947_v36  ;;  %v2147_v6 = vunpack.i.h.bf16 %v1652_v30 }
  0xde   : > { %v671_v54 = vsel %vm669_vm7, %v1271_v52, %v1276_v20  ;;  %v1270_v32 = vunpack.i.l.bf16 %v1269_v59  ;;  %v2148_v53 = vcombine.high %v1386_v13, %v1388_v14  ;;  %924 = vmatpush1.bf16.msra.mxu0 %v790_v8  ;;  %v1286_v34 = vunpack.i.h.bf16 %v1970_v50 }
  0xdf   : > { %v611_v45 = vsel %vm608_vm6, %v2146_v28, %v1260_v27  ;;  %v612_v63 = vsel %vm608_vm6, %v2147_v6, %v1261_v19  ;;  %925 = vmatprep.subr.bf16.mxu0 %v2129_v25  ;;  %v1281_v57 = vunpack.i.h.bf16 %v1279_v11  ;;  %v799_v56 = vpack.c.bf16 %v586_v43, %v581_v24 }
  0xe0   : > { %884 = vmatprep.subr.bf16.mxu1 %v2148_v53  ;;  %v580_v30 = vmul.f32 %v1795_v22, %v550_v55  ;;  %v585_v15 = vmul.f32 %v1795_v22, %v551_v40  ;;  %v670_v38 = vsel %vm669_vm7, %v1270_v32, %v1275_v3  ;;  %v1285_v33 = vunpack.i.l.bf16 %v1970_v50 }
  0xe1   : > { %v1280_v42 = vunpack.i.l.bf16 %v1279_v11  ;;  %v642_v5 = vmul.f32 %v1898_v7, %v609_v10  ;;  %v643_v36 = vmul.f32 %v1765_v37, %v617_v46  ;;  %v648_v17 = vmul.f32 %v1765_v37, %v618_v61 }
  0xe2   : > { %v2149_v49 = vunpack.i.l.bf16 %v1706_v2  ;;  %v2150_v22 = vcombine.low %v1386_v13, %v1388_v14  ;;  %v732_v29 = vsel %vm730_vm8, %v1281_v57, %v1286_v34  ;;  %926 = vmatpush1.bf16.msra.mxu0 %v1061_v4  ;;  %v798_v37 = vpack.c.bf16 %v585_v15, %v580_v30 }
  0xe3   : > { %v731_v59 = vsel %vm730_vm8, %v1280_v42, %v1285_v33  ;;  %v647_v47 = vmul.f32 %v1898_v7, %v610_v41  ;;  %927 = vmatprep.subr.bf16.mxu0 %v2129_v25  ;;  %v641_v40 = vmul.f32 %v1867_v26, %v611_v45  ;;  %v646_v13 = vmul.f32 %v1867_v26, %v612_v63 }
  0xe4   : > { %v678_v51 = vsel %vm669_vm7, %v1275_v3, %v2149_v49  ;;  %885 = vmatpush1.bf16.msra.mxu1 %v2150_v22  ;;  %v703_v14 = vmul.f32 %v1929_v58, %v670_v38  ;;  %v708_v27 = vmul.f32 %v1929_v58, %v671_v54  ;;  %v2151_v0 = vunpack.i.h.bf16 %v1678_v18 }
  0xe5   : > { %886 = vmatprep.subr.bf16.mxu1 %v799_v56  ;;  %v2152_v4 = vunpack.i.l.bf16 %v1678_v18  ;;  %v804_v62 = vpack.c.bf16 %v647_v47, %v642_v5  ;;  %v800_v26 = vpack.c.bf16 %v587_v12, %v582_v9  ;;  %v2153_v21 = vunpack.i.h.bf16 %v1706_v2  ;;  %v2154_v12 = vld [vmem:[#allocation2_spill] sm:$0xff] }
  0xe6   : > { %v673_v1 = vsel %vm669_vm7, %v2151_v0, %v1271_v52  ;;  %v809_v55 = vpack.c.bf16 %v708_v27, %v703_v14  ;;  %v764_v19 = vmul.f32 %v1055_v39, %v731_v59  ;;  %v769_v35 = vmul.f32 %v1055_v39, %v732_v29 }
  0xe7   : > { %v672_v7 = vsel %vm669_vm7, %v2152_v4, %v1270_v32  ;;  %v679_v58 = vsel %vm669_vm7, %v1276_v20, %v2153_v21  ;;  %928 = vmatpush1.bf16.msra.mxu0 %v800_v26  ;;  %v704_v46 = vmul.f32 %v1791_v48, %v678_v51  ;;  %v803_v60 = vpack.c.bf16 %v646_v13, %v641_v40  ;;  %v1054_v20 = vld [vmem:[%s2081_s1 + $0x38] ss:$0 sm:$0xff]  ;;  %v961_v53 = vpop.permute.xlu1 %960 }
  0xe8   : > { %887 = vmatpush1.bf16.msra.mxu1 %v798_v37  ;;  %929 = vmatprep.subr.bf16.mxu0 %v2129_v25  ;;  %v702_v18 = vmul.f32 %v1902_v16, %v672_v7  ;;  %v707_v9 = vmul.f32 %v1902_v16, %v673_v1  ;;  %v709_v2 = vmul.f32 %v1791_v48, %v679_v58  ;;  %v2155_v50 = vunpack.i.l.bf16 %v2154_v12  ;;  %v1056_v16 = vld [vmem:[%s2081_s1 + $0x48] ss:$0 sm:$0xff] }
  0xe9   : > { %888 = vmatprep.subr.bf16.mxu1 %v804_v62  ;;  %v2156_v43 = vunpack.i.h.bf16 %v2154_v12  ;;  %v805_v61 = vpack.c.bf16 %v648_v17, %v643_v36  ;;  %v2157_v48 = vld [vmem:[#allocation3_spill] sm:$0xff]  ;;  %v814_v10 = vpack.c.bf16 %v769_v35, %v764_v19 }
  0xea   : > { %v733_v24 = vsel %vm730_vm8, %v2155_v50, %v1280_v42  ;;  %v2158_v52 = vunpack.i.l.bf16 %v2157_v48  ;;  %v2159_v11 = vunpack.i.h.bf16 %v2157_v48  ;;  %v808_v28 = vpack.c.bf16 %v707_v9, %v702_v18 }
  0xeb   : > { %v734_v44 = vsel %vm730_vm8, %v2156_v43, %v1281_v57  ;;  %930 = vmatpush1.bf16.msra.mxu0 %v805_v61  ;;  %v763_v45 = vmul.f32 %v1054_v20, %v733_v24  ;;  %v810_v54 = vpack.c.bf16 %v709_v2, %v704_v46 }
  0xec   : > { %v739_v8 = vsel %vm730_vm8, %v1285_v33, %v2158_v52  ;;  %v740_v41 = vsel %vm730_vm8, %v1286_v34, %v2159_v11  ;;  %889 = vmatpush1.bf16.msra.mxu1 %v803_v60  ;;  %931 = vmatprep.subr.bf16.mxu0 %v2129_v25  ;;  %v768_v3 = vmul.f32 %v1054_v20, %v734_v44  ;;  %v819_v34 = vpop.permute.xlu0 %818  ;;  %v972_v33 = vpop.permute.xlu1 %971 }
  0xed   : > { %890 = vmatprep.subr.bf16.mxu1 %v809_v55  ;;  %v765_v6 = vmul.f32 %v1056_v16, %v739_v8  ;;  %v770_v63 = vmul.f32 %v1056_v16, %v740_v41 }
  0xee   : > { %v813_v32 = vpack.c.bf16 %v768_v3, %v763_v45 }
  0xef   : > { %932 = vmatpush1.bf16.msra.mxu0 %v810_v54  ;;  %v815_v31 = vpack.c.bf16 %v770_v63, %v765_v6 }
  0xf0   : > { %891 = vmatpush1.bf16.msra.mxu1 %v808_v28  ;;  %933 = vmatprep.subr.bf16.mxu0 %v2129_v25 }
  0xf1   : > { %892 = vmatprep.subr.bf16.mxu1 %v814_v10 }
  0xf3   : > { %934 = vmatpush1.bf16.msra.mxu0 %v815_v31 }
  0xf4   : > { %893 = vmatpush1.bf16.msra.mxu1 %v813_v32 }
  0xf6   : > { %950 = vmatmul.mubr.bf16.vlgmr.msra.gmra.mrb[4].mxu0 %v1420_v23 }
  0xf7   : > { %909 = vmatmul.mubr.bf16.vlgmr.msra.gmra.mrb[0].mxu1 %v1420_v23 }
 0x198   : > { %v869_v57 = vpop.f32.mrb[0].mxu0 }
 0x199   : > { %v870_v56 = vadd.f32 %v869_v57, %v819_v34  ;;  %v871_v30 = vpop.f32.mrb[1].mxu0 }
 0x19a   : > { %v872_v15 = vadd.f32 %v871_v30, %v819_v34  ;;  %v873_v38 = vpop.f32.mrb[2].mxu0 }
 0x19b   : > { %v874_v42 = vpop.f32.mrb[3].mxu0  ;;  %v963_v5 = vmul.f32 %v961_v53, %v870_v56 }
 0x19c   : > { %v964_v25 = vmul.f32 %v961_v53, %v872_v15 }
 0x19d   : > { %v974_v36 = vadd.f32 %v972_v33, %v963_v5 }
 0x19e   : > { %v975_v17 = vadd.f32 %v972_v33, %v964_v25 }
 0x1a0   : > { %v983_v49 = vcombine.low %v974_v36, %v975_v17 }
 0x1a2   : > { %987 = vst [vmem:[%s251_s20] sm:$0x77] %v983_v49 }
 0x1c9   : > { %v951_v29 = vpop.f32.mrb[4].mxu0 }
 0x1ca   : > { %v910_v23 = vpop.f32.mrb[0].mxu1  ;;  %v952_v47 = vadd.f32 %v951_v29, %v819_v34  ;;  %v953_v40 = vpop.f32.mrb[5].mxu0 }
 0x1cb   : > { %v911_v51 = vadd.f32 %v910_v23, %v819_v34  ;;  %v912_v22 = vpop.f32.mrb[1].mxu1  ;;  %v954_v27 = vpop.f32.mrb[6].mxu0 }
 0x1cc   : > { %v913_v59 = vadd.f32 %v912_v22, %v819_v34  ;;  %v914_v37 = vpop.f32.mrb[2].mxu1  ;;  %v967_v0 = vmul.f32 %v961_v53, %v952_v47  ;;  %v955_v1 = vpop.f32.mrb[7].mxu0 }
 0x1cd   : > { %v965_v13 = vmul.f32 %v961_v53, %v911_v51  ;;  %v915_v14 = vpop.f32.mrb[3].mxu1 }
 0x1ce   : > { %v966_v39 = vmul.f32 %v961_v53, %v913_v59  ;;  %v978_v62 = vadd.f32 %v972_v33, %v967_v0 }
 0x1cf   : > { %v976_v4 = vadd.f32 %v972_v33, %v965_v13 }
 0x1d0   : > { %v977_v7 = vadd.f32 %v972_v33, %v966_v39  ;;  %989 = vst [vmem:[%s251_s20 + $0x10] sm:$0x7] %v978_v62 }
 0x1d2   : > { %v984_v26 = vcombine.low %v976_v4, %v977_v7 }
 0x1d4   : > { %988 = vst [vmem:[%s251_s20 + $0x8] sm:$0x77] %v984_v26 }
 0x1d5 PF: > { %s16_s21 = sadd.s32 1, %s1300_s21  }
 0x1d6   : > { %p13_p4 = scmp.ge.s32.totalorder %s16_s21, 4  }
 0x1d8   :  { %15 = sbr.rel (!%p13_p4) target bundleno = 1 (0x1), region = 74 }

// kernel: _lambda_.2
= control target key start
LH: loop header
LB: loop body
LE: loop exit
PB: predicated region body
PF: predicated region fallthrough
CT: control target
= control target key end

     0   :  { %s3274_s27 = smov 0   ;;  %s5056_s0 = inlined_call_operand.vmem [shape: f32[2,3,256], index: 0, kind: input, shape index: {}]   ;;  %s5057_s1 = inlined_call_operand.vmem [shape: f32[3,1], index: 1, kind: input, shape index: {}]   ;;  %s5058_s2 = inlined_call_operand.vmem [shape: f32[3,1], index: 2, kind: input, shape index: {}]   ;;  %s5059_s3 = inlined_call_operand.vmem [shape: f32[9,256], index: 3, kind: input, shape index: {}]   ;;  %s5060_s4 = inlined_call_operand.vmem [shape: bf16[16,27], index: 4, kind: input, shape index: {}]   ;;  %s5061_s5 = inlined_call_operand.vmem [shape: f32[16,1], index: 5, kind: input, shape index: {}]   ;;  %s5062_s6 = inlined_call_operand.vmem [shape: bf16[16,144], index: 6, kind: input, shape index: {}]   ;;  %s5063_s7 = inlined_call_operand.vmem [shape: f32[16,1], index: 7, kind: input, shape index: {}]   ;;  %s5064_s8 = inlined_call_operand.vmem [shape: bf16[16,144], index: 8, kind: input, shape index: {}]   ;;  %s5065_s9 = inlined_call_operand.vmem [shape: f32[16,1], index: 9, kind: input, shape index: {}]   ;;  %s5066_s10 = inlined_call_operand.vmem [shape: bf16[16,288], index: 10, kind: input, shape index: {}]   ;;  %s5067_s11 = inlined_call_operand.vmem [shape: f32[16,1], index: 11, kind: input, shape index: {}]   ;;  %s5068_s12 = inlined_call_operand.vmem [shape: bf16[16,48], index: 12, kind: input, shape index: {}]   ;;  %s5069_s13 = inlined_call_operand.vmem [shape: f32[16,1], index: 13, kind: input, shape index: {}]   ;;  %s5070_s14 = inlined_call_operand.vmem [shape: bf16[16,144], index: 14, kind: input, shape index: {}]   ;;  %s5071_s15 = inlined_call_operand.vmem [shape: f32[16,1], index: 15, kind: input, shape index: {}]   ;;  %s5072_s16 = inlined_call_operand.vmem [shape: bf16[16,288], index: 16, kind: input, shape index: {}]   ;;  %s5073_s17 = inlined_call_operand.vmem [shape: f32[16,1], index: 17, kind: input, shape index: {}]   ;;  %s5074_s18 = inlined_call_operand.vmem [shape: bf16[16,48], index: 18, kind: input, shape index: {}]   ;;  %s5075_s19 = inlined_call_operand.vmem [shape: f32[16,1], index: 19, kind: input, shape index: {}]   ;;  %s5076_s20 = inlined_call_operand.vmem [shape: bf16[16,32], index: 20, kind: input, shape index: {}]   ;;  %s5077_s21 = inlined_call_operand.vmem [shape: f32[16,1], index: 21, kind: input, shape index: {}]   ;;  %s5078_s22 = inlined_call_operand.vmem [shape: bf16[16,144], index: 22, kind: input, shape index: {}]   ;;  %s5079_s23 = inlined_call_operand.vmem [shape: f32[16,1], index: 23, kind: input, shape index: {}]   ;;  %s5080_s24 = inlined_call_operand.vmem [shape: bf16[16,144], index: 24, kind: input, shape index: {}]   ;;  %s5081_s25 = inlined_call_operand.vmem [shape: f32[16,1], index: 25, kind: input, shape index: {}]   ;;  %s5082_s26 = inlined_call_operand.vmem [shape: bf16[2,16,256], index: 26, kind: output, shape index: {}]  }
   0x1   :  { %5114 = sst [smem:[#allocation4_spill]] %s5056_s0 }
   0x2   :  { %5115 = sst [smem:[#allocation5_spill]] %s5057_s1 }
   0x3   :  { %5116 = sst [smem:[#allocation6_spill]] %s5058_s2 }
   0x4   :  { %5117 = sst [smem:[#allocation7_spill]] %s5059_s3 }
   0x5   :  { %5118 = sst [smem:[#allocation8_spill]] %s5060_s4 }
   0x6   :  { %5119 = sst [smem:[#allocation9_spill]] %s5061_s5 }
   0x7   :  { %5120 = sst [smem:[#allocation10_spill]] %s5062_s6 }
   0x8   :  { %5121 = sst [smem:[#allocation11_spill]] %s5063_s7 }
   0x9   :  { %5122 = sst [smem:[#allocation12_spill]] %s5064_s8 }
   0xa   :  { %5123 = sst [smem:[#allocation13_spill]] %s5065_s9 }
   0xb   :  { %5124 = sst [smem:[#allocation14_spill]] %s5066_s10 }
   0xc   :  { %5125 = sst [smem:[#allocation15_spill]] %s5067_s11 }
   0xd   :  { %5126 = sst [smem:[#allocation16_spill]] %s5068_s12 }
   0xe   :  { %5127 = sst [smem:[#allocation17_spill]] %s5069_s13 }
   0xf   :  { %5128 = sst [smem:[#allocation18_spill]] %s5082_s26 }
  0x10 LB: > { %5129 = sst [smem:[#allocation2_spill]] %s3126_s27  ;;  %s3006_s3 = sadd.s32 4294967295, %s3126_s27   ;;  %s3126_s27 = sphi %s3274_s27, %s36_s27  }
  0x11   : > { %p3010_p0 = scmp.ge.s32.totalorder %s3126_s27, 1  ;;  %p712_p1 = scmp.lt.s32.totalorder %s3126_s27, 3 }
  0x13   : > { %p713_p2 = pnand %p3010_p0, %p712_p1 }
  0x15   : > { %716 = sbr.rel (%p713_p2) target bundleno = 4058 (0xfda), region = 124 }
  0x1c   : > { %s5130_s8 = sld [smem:[#allocation5_spill]]  ;;  %v3128_v1 = vmov 0   ;;  %s5131_s0 = sld [smem:[#allocation6_spill]]  ;;  %v3129_v3 = vmov 839922192   ;;  %v806_v5 = vlaneseq  ;;  %vm1015_vm6 = vcmask 1040384  }
  0x1d   : > { %3087 = vset.pattern.permute.xlu0 %v3128_v1  ;;  %1093 = vmatprep.mubr.bf16.mxu1 %v3128_v1  ;;  %p782_p3 = scmp.lt.s32.totalorder %s3006_s3, 1  ;;  %v804_v4 = vunpack.c.l.s4 %v3129_v3  ;;  %s5133_s5 = sld [smem:[#allocation4_spill]]  ;;  %vm1018_vm8 = vcmask 1043456   ;;  %vm1021_vm9 = vcmask 1046528   ;;  %vm1009_vm10 = vcmask 1042432  }
  0x1e   : > { %3088 = vset.pattern.permute.xlu1 %v3128_v1  ;;  %v3293_v7 = vshrl.u32 %v806_v5, 7  ;;  %s5094_s6 = smov 1   ;;  %s5096_s1 = smov 15   ;;  %v3334_v21 = vand.u32 127, %v806_v5  ;;  %vm1012_vm11 = vcmask 1045504   ;;  %vm1024_vm13 = vcmask 1041408  }
  0x1f   : > { %s5157_s3 = smov (!%p782_p3, %s3006_s3), 1  ;;  %v805_v6 = vunpack.c.0.s8 %v804_v4  ;;  %s5098_s7 = smov 16   ;;  %vm1027_vm14 = vcmask 1044480   ;;  %vm1049_vm15 = vcmask 220160  }
  0x20   : > { %5132 = sst [smem:[#allocation3_spill]] %s5157_s3  ;;  %s3050_s9 = sshll.u32 %s5157_s3, 3  ;;  %v895_v22 = vsub.s32 3, %v3293_v7  ;;  %v878_v25 = vsub.s32 2, %v3293_v7  ;;  %vm890_vm0 = vcmp.lt.s32.totalorder %v3334_v21, 1  ;;  %vm873_vm1 = vcmp.lt.s32.totalorder %v3334_v21, 15 }
  0x21   : > { %v808_v8 = vsub.s32 %v805_v6, %v3293_v7  ;;  %s5092_s28 = smov 127   ;;  %s5106_s4 = smov 113   ;;  %v861_v36 = vsub.s32 1, %v3293_v7  ;;  %v912_v37 = vsub.s32 5, %v3293_v7  ;;  %vm839_vm2 = vcmp.lt.s32.totalorder %v3334_v21, 17 }
  0x22   : > { %v798_v0 = vld [vmem:[%s5130_s8] sm:$0x7]  ;;  %s5100_s8 = smov 17   ;;  %s5110_s29 = smov 112   ;;  %v844_v40 = vsub.s32 0, %v3293_v7  ;;  %vm856_vm3 = vcmp.lt.s32.totalorder %v3334_v21, 16 }
  0x23   : > { %801 = vperm.xlu0 %3087, %v798_v0   ;;  %v812_v2 = vld [vmem:[%s5131_s0] sm:$0x7]  ;;  %s786_s10 = scalar_lea.vmem %s5133_s5, %s3050_s9  ;;  %s5090_s0 = smov 111   ;;  %v929_v41 = vsub.s32 6, %v3293_v7  ;;  %vm907_vm4 = vcmp.lt.s32.totalorder %v3334_v21, 127  ;;  %v946_v45 = vsub.s32 7, %v3293_v7 }
  0x24   : > { %v797_v11 = vld [vmem:[%s786_s10] sm:$0x77]  ;;  %s5134_s2 = sld [smem:[#allocation9_spill]]  ;;  %vm924_vm5 = vcmp.lt.s32.totalorder %v3334_v21, 113  ;;  %vm941_vm7 = vcmp.lt.s32.totalorder %v3334_v21, 112  ;;  %vm958_vm12 = vcmp.lt.s32.totalorder %v3334_v21, 111 }
  0x25   : > { %s5136_s5 = sld [smem:[#allocation8_spill]]  ;;  %s5137_s10 = smov 111  }
  0x26   : > { %s5140_s9 = smov 15   ;;  %s5141_s30 = smov 1  }
  0x27   : > { %815 = vperm.xlu0 %3087, %v812_v2   ;;  %s5148_s11 = sld [smem:[#allocation15_spill]]  ;;  %s5149_s13 = sld [smem:[#allocation17_spill]] }
  0x28   : > { %s5150_s12 = sld [smem:[#allocation16_spill]]  ;;  %s5151_s3 = smov 113  }
  0x2a   : > { %v828_v17 = vld [vmem:[%s5134_s2] sm:$0xff]  ;;  %v829_v18 = vld [vmem:[%s5134_s2 + $0x8] sm:$0xff] }
  0xa2   : > { %v802_v9 = vpop.permute.xlu0 %801 }
  0xa3   : > { %v809_v10 = vrot.slane %v802_v9, %v808_v8 }
  0xa5   : > { %v811_v13 = vmul.f32 %v809_v10, %v797_v11 }
  0xa6   : > { %v816_v12 = vpop.permute.xlu0 %815 }
  0xa7   : > { %v823_v14 = vrot.slane %v816_v12, %v808_v8 }
  0xa9   : > { %v3300_v15 = vadd.f32 %v823_v14, %v811_v13 }
  0xab   : > { %886 = vrot.lane.b32.xlu0 %v3300_v15, %s5094_s6  ;;  %869 = vrot.lane.b32.xlu1 %v3300_v15, %s5096_s1  ;;  %v831_v16 = vcombine.high %v3300_v15, %v3300_v15  ;;  %v989_v7 = vcombine.low %v3300_v15, %v3300_v15 }
  0xaf   : > { %852 = vrot.lane.b32.xlu0 %v3300_v15, %s5098_s7  ;;  %871 = vrot.lane.b32.xlu1 %v831_v16, %s5096_s1 }
  0xb3   : > { %903 = vrot.lane.b32.xlu0 %v3300_v15, %s5092_s28  ;;  %888 = vrot.lane.b32.xlu1 %v831_v16, %s5094_s6 }
  0xb7   : > { %833 = vrot.lane.b32.xlu0 %v3300_v15, %s5100_s8  ;;  %854 = vrot.lane.b32.xlu1 %v831_v16, %s5098_s7 }
  0xbb   : > { %920 = vrot.lane.b32.xlu0 %v3300_v15, %s5106_s4  ;;  %905 = vrot.lane.b32.xlu1 %v831_v16, %s5092_s28 }
  0xbf   : > { %937 = vrot.lane.b32.xlu0 %v3300_v15, %s5110_s29  ;;  %835 = vrot.lane.b32.xlu1 %v831_v16, %s5100_s8 }
  0xc3   : > { %954 = vrot.lane.b32.xlu0 %v3300_v15, %s5090_s0  ;;  %922 = vrot.lane.b32.xlu1 %v831_v16, %s5106_s4 }
  0xc7   : > { %1036 = vperm.xlu0 %3087, %v828_v17   ;;  %939 = vrot.lane.b32.xlu1 %v831_v16, %s5110_s29 }
  0xcb   : > { %956 = vrot.lane.b32.xlu1 %v831_v16, %s5090_s0  ;;  %s5135_s0 = sld [smem:[#allocation7_spill]] }
  0xcf   : > { %1041 = vperm.xlu1 %3088, %v829_v18  }
  0xd1   : > { %v3342_v26 = vld [vmem:[%s5135_s0] sm:$0xff]  ;;  %v3347_v27 = vld [vmem:[%s5135_s0 + $0x8] sm:$0xff] }
  0xd2   : > { %v3351_v28 = vrot.slane %v3342_v26, %v895_v22  ;;  %v3354_v29 = vrot.slane %v3347_v27, %v895_v22  ;;  %v3357_v32 = vrot.slane %v3342_v26, %v878_v25  ;;  %v3360_v33 = vrot.slane %v3347_v27, %v878_v25 }
  0xd3   : > { %v3384_v48 = vrot.slane %v3342_v26, %v861_v36  ;;  %v3387_v49 = vrot.slane %v3347_v27, %v861_v36  ;;  %v3390_v50 = vrot.slane %v3342_v26, %v912_v37  ;;  %v3393_v51 = vrot.slane %v3347_v27, %v912_v37 }
  0xd4   : > { %v3396_v53 = vrot.slane %v3342_v26, %v844_v40  ;;  %v3399_v54 = vrot.slane %v3347_v27, %v844_v40  ;;  %v3406_v57 = vrot.slane %v3342_v26, %v929_v41  ;;  %v3420_v6 = vrot.slane %v3347_v27, %v929_v41 }
  0xd5   : > { %v3434_v22 = vrot.slane %v3342_v26, %v946_v45 }
 0x11d   : > { %v887_v19 = vpop.permute.xlu0 %886  ;;  %v870_v20 = vpop.permute.xlu1 %869 }
 0x121   : > { %v853_v23 = vpop.permute.xlu0 %852  ;;  %v872_v24 = vpop.permute.xlu1 %871 }
 0x122   : > { %v874_v38 = vsel %vm873_vm1, %v870_v20, %v872_v24  ;;  %v875_v39 = vsel %vm873_vm1, %v872_v24, %v870_v20 }
 0x123   : > { %v884_v46 = vmul.f32 %v3357_v32, %v875_v39  ;;  %v885_v47 = vmul.f32 %v3360_v33, %v874_v38 }
 0x125   : > { %v904_v30 = vpop.permute.xlu0 %903  ;;  %v889_v31 = vpop.permute.xlu1 %888  ;;  %v979_v61 = vrot.slane %v884_v46, 2  ;;  %v980_v62 = vrot.slane %v885_v47, 2 }
 0x126   : > { %v891_v34 = vsel %vm890_vm0, %v887_v19, %v889_v31  ;;  %v892_v35 = vsel %vm890_vm0, %v889_v31, %v887_v19 }
 0x127   : > { %v901_v42 = vmul.f32 %v3351_v28, %v892_v35  ;;  %v902_v43 = vmul.f32 %v3354_v29, %v891_v34 }
 0x129   : > { %v855_v44 = vpop.permute.xlu1 %854  ;;  %v834_v52 = vpop.permute.xlu0 %833  ;;  %v985_v58 = vrot.slane %v901_v42, 7  ;;  %v986_v59 = vrot.slane %v902_v43, 7 }
 0x12a   : > { %v857_v55 = vsel %vm856_vm3, %v853_v23, %v855_v44  ;;  %v858_v56 = vsel %vm856_vm3, %v855_v44, %v853_v23  ;;  %v3437_v23 = vrot.slane %v3347_v27, %v946_v45 }
 0x12b   : > { %v867_v2 = vmul.f32 %v3384_v48, %v858_v56  ;;  %v868_v3 = vmul.f32 %v3387_v49, %v857_v55  ;;  %v1017_v12 = vsel %vm1015_vm6, %v980_v62, %v986_v59  ;;  %v1016_v13 = vsel %vm1015_vm6, %v979_v61, %v985_v58  ;;  %v3462_v56 = vld [vmem:[%s5135_s0 + $0x10] ss:$0 sm:$0xff]  ;;  %v3467_v58 = vld [vmem:[%s5135_s0 + $0x18] ss:$0 sm:$0xff] }
 0x12c   : > { %v1020_v24 = vsel %vm1018_vm8, %v1017_v12, %v3300_v15  ;;  %v1019_v25 = vsel %vm1018_vm8, %v1016_v13, %v989_v7  ;;  %vm1273_vm6 = vcmask 130048   ;;  %vm1716_vm8 = vcmask 261120  }
 0x12d   : > { %v906_v60 = vpop.permute.xlu1 %905  ;;  %v921_v8 = vpop.permute.xlu0 %920  ;;  %v973_v17 = vrot.slane %v867_v2, 5  ;;  %v974_v18 = vrot.slane %v868_v3, 5 }
 0x12e   : > { %v908_v63 = vsel %vm907_vm4, %v904_v30, %v906_v60  ;;  %v909_v0 = vsel %vm907_vm4, %v906_v60, %v904_v30 }
 0x12f   : > { %v3416_v4 = vmul.f32 %v3390_v50, %v908_v63  ;;  %v919_v5 = vmul.f32 %v3393_v51, %v909_v0  ;;  %v3138_v63 = vmov 65535  }
 0x130   : > { %v1053_v0 = vsel %vm1027_vm14, 4294967295, %v3138_v63 }
 0x131   : > { %v993_v9 = vrot.slane %v3416_v4, 1  ;;  %v994_v10 = vrot.slane %v919_v5, 1  ;;  %v836_v11 = vpop.permute.xlu1 %835  ;;  %v938_v15 = vpop.permute.xlu0 %937  ;;  %v1054_v13 = vsel %vm1012_vm11, %v1053_v0, 0 }
 0x132   : > { %v840_v14 = vsel %vm839_vm2, %v834_v52, %v836_v11  ;;  %v841_v16 = vsel %vm839_vm2, %v836_v11, %v834_v52 }
 0x133   : > { %v850_v19 = vmul.f32 %v3396_v53, %v841_v16  ;;  %v851_v20 = vmul.f32 %v3399_v54, %v840_v14  ;;  %v1023_v34 = vsel %vm1021_vm9, %v1020_v24, %v994_v10  ;;  %v1022_v36 = vsel %vm1021_vm9, %v1019_v25, %v993_v9 }
 0x134   : > { %vm1831_vm9 = vcmask 392192  }
 0x135   : > { %v923_v30 = vpop.permute.xlu1 %922  ;;  %v1011_v31 = vsel %vm1009_vm10, %v851_v20, %v974_v18  ;;  %v1010_v35 = vsel %vm1009_vm10, %v850_v19, %v973_v17  ;;  %v955_v59 = vpop.permute.xlu0 %954  ;;  %v3089_v19 = vld [vmem:[%s5136_s5] sm:$0xff]   ;;  %s5138_s5 = sld [smem:[#allocation10_spill]] }
 0x136   : > { %v925_v37 = vsel %vm924_vm5, %v921_v8, %v923_v30  ;;  %v926_v26 = vsel %vm924_vm5, %v923_v30, %v921_v8  ;;  %v1014_v27 = vsel %vm1012_vm11, %v1011_v31, %v980_v62  ;;  %v1013_v38 = vsel %vm1012_vm11, %v1010_v35, %v979_v61 }
 0x137   : > { %v935_v39 = vmul.f32 %v3406_v57, %v925_v37  ;;  %v936_v40 = vmul.f32 %v3420_v6, %v926_v26  ;;  %v1031_v41 = vpack.c.bf16 %v1023_v34, %v1014_v27  ;;  %v1030_v42 = vpack.c.bf16 %v1022_v36, %v1013_v38 }
 0x139   : > { %1061 = vmatprep.subr.bf16.mxu1 %v1031_v41  ;;  %v940_v43 = vpop.permute.xlu1 %939  ;;  %v999_v44 = vrot.slane %v935_v39, 6  ;;  %v1000_v45 = vrot.slane %v936_v40, 6 }
 0x13a   : > { %v942_v46 = vsel %vm941_vm7, %v938_v15, %v940_v43  ;;  %v943_v47 = vsel %vm941_vm7, %v940_v43, %v938_v15  ;;  %1062 = vmatpush1.bf16.msra.mxu1 %v1030_v42 }
 0x13b   : > { %v952_v52 = vmul.f32 %v3434_v22, %v942_v46  ;;  %v953_v55 = vmul.f32 %v3437_v23, %v943_v47  ;;  %v1026_v4 = vsel %vm1024_vm13, %v994_v10, %v1000_v45  ;;  %v1025_v5 = vsel %vm1024_vm13, %v993_v9, %v999_v44  ;;  %v3090_v37 = vld [vmem:[%s5138_s5 + $0x4] ss:$8 sps:$4 sm:$0xff]  }
 0x13d   : > { %v1005_v60 = vrot.slane %v952_v52, 3  ;;  %v1006_v61 = vrot.slane %v953_v55, 3  ;;  %v957_v62 = vpop.permute.xlu1 %956 }
 0x13e   : > { %v959_v2 = vsel %vm958_vm12, %v955_v59, %v957_v62  ;;  %v960_v3 = vsel %vm958_vm12, %v957_v62, %v955_v59 }
 0x13f   : > { %v969_v7 = vmul.f32 %v3462_v56, %v959_v2  ;;  %v970_v8 = vmul.f32 %v3467_v58, %v960_v3  ;;  %v1029_v11 = vsel %vm1027_vm14, %v1026_v4, %v1006_v61  ;;  %v1028_v12 = vsel %vm1027_vm14, %v1025_v5, %v1005_v60 }
 0x141   : > { %v1033_v14 = vpack.c.bf16 %v970_v8, %v1029_v11  ;;  %v1032_v16 = vpack.c.bf16 %v969_v7, %v1028_v12 }
 0x143   : > { %v1059_v17 = vand.u32 %v1054_v13, %v1033_v14  ;;  %v1056_v18 = vand.u32 %v1054_v13, %v1032_v16 }
 0x145   : > { %1063 = vmatprep.subr.bf16.mxu1 %v1059_v17 }
 0x146   : > { %1064 = vmatpush1.bf16.msra.mxu1 %v1056_v18  ;;  %v1037_v9 = vpop.permute.xlu0 %1036 }
 0x149   : > { %3018 = vmatmul.mubr.msk.bf16.vlgmr.msra.gmra.mrb[0].mxu1 %vm1049_vm15, %v3089_v19 }
 0x14a   : > { %3021 = vmatprep.mubr.msk.bf16.mxu1 %vm1273_vm6, %v3090_v37 }
 0x14e   : > { %v1042_v20 = vpop.permute.xlu1 %1041 }
 0x21c   : > { %v1095_v10 = vpop.f32.mrb[0].mxu1 }
 0x21d   : > { %v3479_v24 = vadd.f32 %v1095_v10, %v1037_v9  ;;  %v1097_v25 = vpop.f32.mrb[1].mxu1 }
 0x21e   : > { %v1099_v30 = vpop.f32.mrb[2].mxu1  ;;  %v3509_v35 = vadd.f32 %v1097_v25, %v1037_v9 }
 0x21f   : > { %v3481_v31 = vadd.f32 %v1099_v30, %v1042_v20  ;;  %v1101_v34 = vpop.f32.mrb[3].mxu1  ;;  %1108 = vrot.lane.b32.xlu0 %v3479_v24, %s5100_s8 }
 0x220   : > { %v3513_v36 = vadd.f32 %v1101_v34, %v1042_v20 }
 0x221   : > { %1110 = vrot.lane.b32.xlu1 %v3481_v31, %s5100_s8 }
 0x223   : > { %1124 = vrot.lane.b32.xlu0 %v3479_v24, %s5098_s7 }
 0x225   : > { %1126 = vrot.lane.b32.xlu1 %v3481_v31, %s5098_s7 }
 0x227   : > { %1140 = vrot.lane.b32.xlu0 %v3479_v24, %s5096_s1 }
 0x229   : > { %1142 = vrot.lane.b32.xlu1 %v3481_v31, %s5096_s1 }
 0x22b   : > { %1156 = vrot.lane.b32.xlu0 %v3479_v24, %s5094_s6 }
 0x22d   : > { %1158 = vrot.lane.b32.xlu1 %v3481_v31, %s5094_s6 }
 0x22f   : > { %1172 = vrot.lane.b32.xlu0 %v3479_v24, %s5092_s28 }
 0x231   : > { %1174 = vrot.lane.b32.xlu1 %v3481_v31, %s5092_s28 }
 0x233   : > { %1188 = vrot.lane.b32.xlu0 %v3479_v24, %s5106_s4 }
 0x235   : > { %1190 = vrot.lane.b32.xlu1 %v3481_v31, %s5106_s4 }
 0x237   : > { %1204 = vrot.lane.b32.xlu0 %v3479_v24, %s5110_s29 }
 0x239   : > { %1206 = vrot.lane.b32.xlu1 %v3481_v31, %s5110_s29 }
 0x23b   : > { %1112 = vrot.lane.b32.xlu0 %v3509_v35, %s5100_s8 }
 0x23d   : > { %1114 = vrot.lane.b32.xlu1 %v3513_v36, %s5100_s8 }
 0x23f   : > { %1128 = vrot.lane.b32.xlu0 %v3509_v35, %s5098_s7 }
 0x241   : > { %1130 = vrot.lane.b32.xlu1 %v3513_v36, %s5098_s7 }
 0x243   : > { %1144 = vrot.lane.b32.xlu0 %v3509_v35, %s5096_s1 }
 0x245   : > { %1146 = vrot.lane.b32.xlu1 %v3513_v36, %s5096_s1  ;;  %s5139_s1 = sld [smem:[#allocation11_spill]] }
 0x247   : > { %1160 = vrot.lane.b32.xlu0 %v3509_v35, %s5094_s6 }
 0x249   : > { %1162 = vrot.lane.b32.xlu1 %v3513_v36, %s5094_s6  ;;  %s5142_s6 = smov 127  }
 0x24b   : > { %1220 = vrot.lane.b32.xlu0 %v3479_v24, %s5137_s10  ;;  %v1106_v26 = vld [vmem:[%s5139_s1] sm:$0xff]  ;;  %v1107_v27 = vld [vmem:[%s5139_s1 + $0x8] sm:$0xff] }
 0x24d   : > { %1222 = vrot.lane.b32.xlu1 %v3481_v31, %s5137_s10 }
 0x24f   : > { %1176 = vrot.lane.b32.xlu0 %v3509_v35, %s5092_s28 }
 0x251   : > { %1178 = vrot.lane.b32.xlu1 %v3513_v36, %s5092_s28  ;;  %s5146_s28 = smov 16  }
 0x253   : > { %1192 = vrot.lane.b32.xlu0 %v3509_v35, %s5106_s4 }
 0x255   : > { %1194 = vrot.lane.b32.xlu1 %v3513_v36, %s5106_s4 }
 0x257   : > { %1208 = vrot.lane.b32.xlu0 %v3509_v35, %s5110_s29 }
 0x259   : > { %1210 = vrot.lane.b32.xlu1 %v3513_v36, %s5110_s29 }
 0x25b   : > { %1224 = vrot.lane.b32.xlu0 %v3509_v35, %s5137_s10 }
 0x25d   : > { %1226 = vrot.lane.b32.xlu1 %v3513_v36, %s5137_s10 }
 0x25f   : > { %1256 = vperm.xlu0 %3087, %v1106_v26  }
 0x261   : > { %1261 = vperm.xlu1 %3088, %v1107_v27  }
 0x291   : > { %v1109_v38 = vpop.permute.xlu0 %1108 }
 0x293   : > { %v1111_v15 = vpop.permute.xlu1 %1110 }
 0x295   : > { %v1125_v39 = vpop.permute.xlu0 %1124 }
 0x297   : > { %v1127_v40 = vpop.permute.xlu1 %1126 }
 0x299   : > { %v1141_v41 = vpop.permute.xlu0 %1140 }
 0x29b   : > { %v1143_v42 = vpop.permute.xlu1 %1142 }
 0x29d   : > { %v1157_v43 = vpop.permute.xlu0 %1156 }
 0x29f   : > { %v1159_v44 = vpop.permute.xlu1 %1158 }
 0x2a1   : > { %v3561_v45 = vpop.permute.xlu0 %1172 }
 0x2a3   : > { %v3563_v46 = vpop.permute.xlu1 %1174 }
 0x2a5   : > { %v3565_v47 = vpop.permute.xlu0 %1188 }
 0x2a7   : > { %v3567_v52 = vpop.permute.xlu1 %1190 }
 0x2a9   : > { %v3569_v55 = vpop.permute.xlu0 %1204 }
 0x2ab   : > { %v3571_v59 = vpop.permute.xlu1 %1206 }
 0x2ad   : > { %v1113_v60 = vpop.permute.xlu0 %1112 }
 0x2ae   : > { %v1116_v61 = vsel %vm839_vm2, %v1109_v38, %v1113_v60  ;;  %v1118_v62 = vsel %vm839_vm2, %v1113_v60, %v1109_v38 }
 0x2af   : > { %v1115_v63 = vpop.permute.xlu1 %1114  ;;  %v1120_v3 = vmul.f32 %v1118_v62, %v3396_v53  ;;  %v1121_v4 = vmul.f32 %v1116_v61, %v3399_v54 }
 0x2b0   : > { %v1117_v0 = vsel %vm839_vm2, %v1111_v15, %v1115_v63  ;;  %v1119_v2 = vsel %vm839_vm2, %v1115_v63, %v1111_v15 }
 0x2b1   : > { %v1122_v5 = vmul.f32 %v1119_v2, %v3396_v53  ;;  %v1123_v7 = vmul.f32 %v1117_v0, %v3399_v54  ;;  %v1129_v8 = vpop.permute.xlu0 %1128 }
 0x2b2   : > { %v1132_v11 = vsel %vm856_vm3, %v1125_v39, %v1129_v8  ;;  %v1134_v12 = vsel %vm856_vm3, %v1129_v8, %v1125_v39 }
 0x2b3   : > { %v1236_v13 = vpack.c.bf16 %v1122_v5, %v1120_v3  ;;  %v1131_v14 = vpop.permute.xlu1 %1130  ;;  %v1237_v16 = vpack.c.bf16 %v1123_v7, %v1121_v4  ;;  %v1136_v19 = vmul.f32 %v1134_v12, %v3384_v48  ;;  %v1137_v9 = vmul.f32 %v1132_v11, %v3387_v49 }
 0x2b4   : > { %v1133_v17 = vsel %vm856_vm3, %v1127_v40, %v1131_v14  ;;  %v1135_v18 = vsel %vm856_vm3, %v1131_v14, %v1127_v40 }
 0x2b5   : > { %v1138_v10 = vmul.f32 %v1135_v18, %v3384_v48  ;;  %v1139_v20 = vmul.f32 %v1133_v17, %v3387_v49  ;;  %v1145_v25 = vpop.permute.xlu0 %1144  ;;  %1277 = vmatprep.subr.bf16.mxu1 %v1237_v16  ;;  %v1245_v17 = vpack.c.bf16 %v3513_v36, %v3509_v35 }
 0x2b6   : > { %v1148_v30 = vsel %vm873_vm1, %v1141_v41, %v1145_v25  ;;  %v1150_v34 = vsel %vm873_vm1, %v1145_v25, %v1141_v41  ;;  %1278 = vmatpush1.bf16.msra.mxu1 %v1236_v13 }
 0x2b7   : > { %v1238_v37 = vpack.c.bf16 %v1138_v10, %v1136_v19  ;;  %v1147_v26 = vpop.permute.xlu1 %1146  ;;  %v1239_v27 = vpack.c.bf16 %v1139_v20, %v1137_v9  ;;  %v1152_v39 = vmul.f32 %v1150_v34, %v3357_v32  ;;  %v1153_v40 = vmul.f32 %v1148_v30, %v3360_v33 }
 0x2b8   : > { %v1149_v38 = vsel %vm873_vm1, %v1143_v42, %v1147_v26  ;;  %v1151_v15 = vsel %vm873_vm1, %v1147_v26, %v1143_v42  ;;  %v1244_v20 = vpack.c.bf16 %v3481_v31, %v3479_v24 }
 0x2b9   : > { %v1154_v60 = vmul.f32 %v1151_v15, %v3357_v32  ;;  %v1155_v61 = vmul.f32 %v1149_v38, %v3360_v33  ;;  %v1161_v62 = vpop.permute.xlu0 %1160  ;;  %1279 = vmatprep.subr.bf16.mxu1 %v1239_v27 }
 0x2ba   : > { %v1164_v41 = vsel %vm890_vm0, %v1157_v43, %v1161_v62  ;;  %v1166_v63 = vsel %vm890_vm0, %v1161_v62, %v1157_v43  ;;  %1280 = vmatpush1.bf16.msra.mxu1 %v1238_v37 }
 0x2bb   : > { %v1240_v0 = vpack.c.bf16 %v1154_v60, %v1152_v39  ;;  %v1163_v2 = vpop.permute.xlu1 %1162  ;;  %v1241_v42 = vpack.c.bf16 %v1155_v61, %v1153_v40  ;;  %v1168_v5 = vmul.f32 %v1166_v63, %v3351_v28  ;;  %v1169_v7 = vmul.f32 %v1164_v41, %v3354_v29 }
 0x2bc   : > { %v1165_v3 = vsel %vm890_vm0, %v1159_v44, %v1163_v2  ;;  %v1167_v4 = vsel %vm890_vm0, %v1163_v2, %v1159_v44 }
 0x2bd   : > { %v1170_v8 = vmul.f32 %v1167_v4, %v3351_v28  ;;  %v1171_v11 = vmul.f32 %v1165_v3, %v3354_v29  ;;  %v1221_v12 = vpop.permute.xlu0 %1220  ;;  %1281 = vmatprep.subr.bf16.mxu1 %v1241_v42 }
 0x2be   : > { %1282 = vmatpush1.bf16.msra.mxu1 %v1240_v0 }
 0x2bf   : > { %v1242_v43 = vpack.c.bf16 %v1170_v8, %v1168_v5  ;;  %v1223_v13 = vpop.permute.xlu1 %1222  ;;  %v1243_v14 = vpack.c.bf16 %v1171_v11, %v1169_v7 }
 0x2c1   : > { %v1177_v16 = vpop.permute.xlu0 %1176  ;;  %1283 = vmatprep.subr.bf16.mxu1 %v1243_v14 }
 0x2c2   : > { %v1180_v44 = vsel %vm907_vm4, %v3561_v45, %v1177_v16  ;;  %v1182_v18 = vsel %vm907_vm4, %v1177_v16, %v3561_v45  ;;  %1284 = vmatpush1.bf16.msra.mxu1 %v1242_v43 }
 0x2c3   : > { %1285 = vmatprep.subr.bf16.mxu1 %v1245_v17  ;;  %v1179_v19 = vpop.permute.xlu1 %1178  ;;  %v1184_v25 = vmul.f32 %v1180_v44, %v3390_v50  ;;  %v1185_v30 = vmul.f32 %v1182_v18, %v3393_v51 }
 0x2c4   : > { %v1181_v9 = vsel %vm907_vm4, %v3563_v46, %v1179_v19  ;;  %v1183_v10 = vsel %vm907_vm4, %v1179_v19, %v3563_v46 }
 0x2c5   : > { %v1186_v45 = vmul.f32 %v1181_v9, %v3390_v50  ;;  %v1187_v34 = vmul.f32 %v1183_v10, %v3393_v51  ;;  %v1193_v37 = vpop.permute.xlu0 %1192 }
 0x2c6   : > { %v1196_v26 = vsel %vm924_vm5, %v3565_v47, %v1193_v37  ;;  %v1198_v46 = vsel %vm924_vm5, %v1193_v37, %v3565_v47  ;;  %1286 = vmatpush1.bf16.msra.mxu1 %v1244_v20 }
 0x2c7   : > { %v1246_v27 = vpack.c.bf16 %v1186_v45, %v1184_v25  ;;  %v1195_v38 = vpop.permute.xlu1 %1194  ;;  %v1247_v15 = vpack.c.bf16 %v1187_v34, %v1185_v30  ;;  %v1200_v60 = vmul.f32 %v1196_v26, %v3406_v57  ;;  %v1201_v61 = vmul.f32 %v1198_v46, %v3420_v6  ;;  %v3092_v30 = vld [vmem:[%s5138_s5] ss:$8 sps:$4 sm:$0xff]   ;;  %s5144_s5 = sld [smem:[#allocation13_spill]] }
 0x2c8   : > { %v1197_v39 = vsel %vm924_vm5, %v3567_v52, %v1195_v38  ;;  %v1199_v40 = vsel %vm924_vm5, %v1195_v38, %v3567_v52 }
 0x2c9   : > { %v1202_v62 = vmul.f32 %v1197_v39, %v3406_v57  ;;  %v1203_v47 = vmul.f32 %v1199_v40, %v3420_v6  ;;  %v1209_v41 = vpop.permute.xlu0 %1208  ;;  %1287 = vmatprep.subr.bf16.mxu1 %v1247_v15 }
 0x2ca   : > { %v1212_v63 = vsel %vm941_vm7, %v3569_v55, %v1209_v41  ;;  %v1214_v0 = vsel %vm941_vm7, %v1209_v41, %v3569_v55  ;;  %1288 = vmatpush1.bf16.msra.mxu1 %v1246_v27 }
 0x2cb   : > { %v1248_v52 = vpack.c.bf16 %v1202_v62, %v1200_v60  ;;  %v1211_v2 = vpop.permute.xlu1 %1210  ;;  %v1249_v42 = vpack.c.bf16 %v1203_v47, %v1201_v61  ;;  %v1216_v5 = vmul.f32 %v1212_v63, %v3434_v22  ;;  %v1217_v7 = vmul.f32 %v1214_v0, %v3437_v23 }
 0x2cc   : > { %v1213_v3 = vsel %vm941_vm7, %v3571_v59, %v1211_v2  ;;  %v1215_v4 = vsel %vm941_vm7, %v1211_v2, %v3571_v59 }
 0x2cd   : > { %v1218_v8 = vmul.f32 %v1213_v3, %v3434_v22  ;;  %v1219_v55 = vmul.f32 %v1215_v4, %v3437_v23  ;;  %v1225_v11 = vpop.permute.xlu0 %1224  ;;  %1289 = vmatprep.subr.bf16.mxu1 %v1249_v42  ;;  %v1322_v60 = vld [vmem:[%s5144_s5] sm:$0xff]  ;;  %v1323_v61 = vld [vmem:[%s5144_s5 + $0x8] sm:$0xff]  ;;  %s5147_s5 = sld [smem:[#allocation14_spill]] }
 0x2ce   : > { %v1228_v43 = vsel %vm958_vm12, %v1221_v12, %v1225_v11  ;;  %v1230_v14 = vsel %vm958_vm12, %v1225_v11, %v1221_v12  ;;  %1290 = vmatpush1.bf16.msra.mxu1 %v1248_v52 }
 0x2cf   : > { %v1250_v16 = vpack.c.bf16 %v1218_v8, %v1216_v5  ;;  %v1227_v17 = vpop.permute.xlu1 %1226  ;;  %v1251_v59 = vpack.c.bf16 %v1219_v55, %v1217_v7  ;;  %v1232_v19 = vmul.f32 %v3462_v56, %v1228_v43  ;;  %v1233_v9 = vmul.f32 %v3467_v58, %v1230_v14 }
 0x2d0   : > { %v1229_v44 = vsel %vm958_vm12, %v1223_v13, %v1227_v17  ;;  %v1231_v18 = vsel %vm958_vm12, %v1227_v17, %v1223_v13 }
 0x2d1   : > { %v1234_v10 = vmul.f32 %v3462_v56, %v1229_v44  ;;  %v1235_v20 = vmul.f32 %v3467_v58, %v1231_v18  ;;  %1291 = vmatprep.subr.bf16.mxu1 %v1251_v59 }
 0x2d2   : > { %1292 = vmatpush1.bf16.msra.mxu1 %v1250_v16 }
 0x2d3   : > { %v1252_v12 = vpack.c.bf16 %v1234_v10, %v1232_v19  ;;  %v1253_v25 = vpack.c.bf16 %v1235_v20, %v1233_v9 }
 0x2d5   : > { %1293 = vmatprep.subr.bf16.mxu1 %v1253_v25 }
 0x2d6   : > { %1294 = vmatpush1.bf16.msra.mxu1 %v1252_v12 }
 0x2d9   : > { %1310 = vmatmul.mubr.bf16.vlgmr.msra.gmra.mrb[4].mxu1 %v3092_v30 }
 0x2de   : > { %v1257_v13 = vpop.permute.xlu0 %1256 }
 0x2e0   : > { %v1262_v26 = vpop.permute.xlu1 %1261 }
 0x3ac   : > { %v1311_v45 = vpop.f32.mrb[4].mxu1 }
 0x3ad   : > { %v3688_v34 = vadd.f32 %v1311_v45, %v1257_v13  ;;  %v1313_v37 = vpop.f32.mrb[5].mxu1 }
 0x3ae   : > { %v1315_v46 = vpop.f32.mrb[6].mxu1  ;;  %v3718_v15 = vadd.f32 %v1313_v37, %v1257_v13 }
 0x3af   : > { %v3690_v27 = vadd.f32 %v1315_v46, %v1262_v26  ;;  %v1317_v38 = vpop.f32.mrb[7].mxu1  ;;  %1324 = vrot.lane.b32.xlu0 %v3688_v34, %s5100_s8 }
 0x3b0   : > { %v3722_v39 = vadd.f32 %v1317_v38, %v1262_v26 }
 0x3b1   : > { %1326 = vrot.lane.b32.xlu1 %v3690_v27, %s5100_s8 }
 0x3b3   : > { %1340 = vrot.lane.b32.xlu0 %v3688_v34, %s5098_s7 }
 0x3b5   : > { %1342 = vrot.lane.b32.xlu1 %v3690_v27, %s5098_s7 }
 0x3b7   : > { %1356 = vrot.lane.b32.xlu0 %v3688_v34, %s5140_s9 }
 0x3b9   : > { %1358 = vrot.lane.b32.xlu1 %v3690_v27, %s5140_s9 }
 0x3bb   : > { %1372 = vrot.lane.b32.xlu0 %v3688_v34, %s5141_s30 }
 0x3bd   : > { %1374 = vrot.lane.b32.xlu1 %v3690_v27, %s5141_s30 }
 0x3bf   : > { %1388 = vrot.lane.b32.xlu0 %v3688_v34, %s5142_s6 }
 0x3c1   : > { %1390 = vrot.lane.b32.xlu1 %v3690_v27, %s5142_s6 }
 0x3c3   : > { %1404 = vrot.lane.b32.xlu0 %v3688_v34, %s5106_s4 }
 0x3c5   : > { %1406 = vrot.lane.b32.xlu1 %v3690_v27, %s5106_s4 }
 0x3c7   : > { %1420 = vrot.lane.b32.xlu0 %v3688_v34, %s5110_s29 }
 0x3c9   : > { %1422 = vrot.lane.b32.xlu1 %v3690_v27, %s5110_s29 }
 0x3cb   : > { %1328 = vrot.lane.b32.xlu0 %v3718_v15, %s5100_s8 }
 0x3cd   : > { %1330 = vrot.lane.b32.xlu1 %v3722_v39, %s5100_s8  ;;  %s5143_s8 = sld [smem:[#allocation12_spill]] }
 0x3cf   : > { %1344 = vrot.lane.b32.xlu0 %v3718_v15, %s5098_s7 }
 0x3d1   : > { %1346 = vrot.lane.b32.xlu1 %v3722_v39, %s5098_s7  ;;  %s5145_s7 = smov 17  }
 0x3d3   : > { %1360 = vrot.lane.b32.xlu0 %v3718_v15, %s5140_s9  ;;  %v3095_v40 = vld [vmem:[%s5143_s8 + $0x4] ss:$8 sps:$4 sm:$0xff]  }
 0x3d4   : > { %3024 = vmatprep.mubr.msk.bf16.mxu0 %vm1273_vm6, %v3095_v40 }
 0x3d5   : > { %1362 = vrot.lane.b32.xlu1 %v3722_v39, %s5140_s9 }
 0x3d7   : > { %1376 = vrot.lane.b32.xlu0 %v3718_v15, %s5141_s30 }
 0x3d9   : > { %1378 = vrot.lane.b32.xlu1 %v3722_v39, %s5141_s30 }
 0x3db   : > { %1436 = vrot.lane.b32.xlu0 %v3688_v34, %s5137_s10 }
 0x3dd   : > { %1438 = vrot.lane.b32.xlu1 %v3690_v27, %s5137_s10 }
 0x3df   : > { %1392 = vrot.lane.b32.xlu0 %v3718_v15, %s5142_s6 }
 0x3e1   : > { %1394 = vrot.lane.b32.xlu1 %v3722_v39, %s5142_s6 }
 0x3e3   : > { %1408 = vrot.lane.b32.xlu0 %v3718_v15, %s5106_s4 }
 0x3e5   : > { %1410 = vrot.lane.b32.xlu1 %v3722_v39, %s5106_s4 }
 0x3e7   : > { %1424 = vrot.lane.b32.xlu0 %v3718_v15, %s5110_s29 }
 0x3e9   : > { %1426 = vrot.lane.b32.xlu1 %v3722_v39, %s5110_s29 }
 0x3eb   : > { %1440 = vrot.lane.b32.xlu0 %v3718_v15, %s5137_s10 }
 0x3ed   : > { %1442 = vrot.lane.b32.xlu1 %v3722_v39, %s5137_s10 }
 0x3ef   : > { %1472 = vperm.xlu0 %3087, %v1322_v60  }
 0x3f1   : > { %1477 = vperm.xlu1 %3088, %v1323_v61  }
 0x421   : > { %v1325_v62 = vpop.permute.xlu0 %1324 }
 0x423   : > { %v1327_v47 = vpop.permute.xlu1 %1326 }
 0x425   : > { %v1341_v41 = vpop.permute.xlu0 %1340 }
 0x427   : > { %v1343_v63 = vpop.permute.xlu1 %1342 }
 0x429   : > { %v1357_v0 = vpop.permute.xlu0 %1356 }
 0x42b   : > { %v1359_v52 = vpop.permute.xlu1 %1358 }
 0x42d   : > { %v1373_v2 = vpop.permute.xlu0 %1372 }
 0x42f   : > { %v1375_v42 = vpop.permute.xlu1 %1374 }
 0x431   : > { %v3770_v3 = vpop.permute.xlu0 %1388 }
 0x433   : > { %v3772_v4 = vpop.permute.xlu1 %1390 }
 0x435   : > { %v3774_v5 = vpop.permute.xlu0 %1404 }
 0x437   : > { %v3776_v7 = vpop.permute.xlu1 %1406 }
 0x439   : > { %v3778_v8 = vpop.permute.xlu0 %1420 }
 0x43b   : > { %v3780_v55 = vpop.permute.xlu1 %1422 }
 0x43d   : > { %v1329_v11 = vpop.permute.xlu0 %1328 }
 0x43e   : > { %v1332_v43 = vsel %vm839_vm2, %v1325_v62, %v1329_v11  ;;  %v1334_v14 = vsel %vm839_vm2, %v1329_v11, %v1325_v62 }
 0x43f   : > { %v1331_v16 = vpop.permute.xlu1 %1330  ;;  %v1337_v18 = vmul.f32 %v1332_v43, %v3399_v54  ;;  %v1336_v9 = vmul.f32 %v1334_v14, %v3396_v53 }
 0x440   : > { %v1333_v17 = vsel %vm839_vm2, %v1327_v47, %v1331_v16  ;;  %v1335_v59 = vsel %vm839_vm2, %v1331_v16, %v1327_v47 }
 0x441   : > { %v1345_v44 = vpop.permute.xlu0 %1344  ;;  %v1339_v19 = vmul.f32 %v1333_v17, %v3399_v54  ;;  %v1338_v10 = vmul.f32 %v1335_v59, %v3396_v53 }
 0x442   : > { %v1348_v20 = vsel %vm856_vm3, %v1341_v41, %v1345_v44  ;;  %v1350_v12 = vsel %vm856_vm3, %v1345_v44, %v1341_v41 }
 0x443   : > { %v1347_v25 = vpop.permute.xlu1 %1346  ;;  %v1453_v30 = vpack.c.bf16 %v1339_v19, %v1337_v18  ;;  %v1452_v13 = vpack.c.bf16 %v1338_v10, %v1336_v9  ;;  %v1352_v45 = vmul.f32 %v1350_v12, %v3384_v48  ;;  %v1353_v46 = vmul.f32 %v1348_v20, %v3387_v49 }
 0x444   : > { %v1349_v37 = vsel %vm856_vm3, %v1343_v63, %v1347_v25  ;;  %v1351_v26 = vsel %vm856_vm3, %v1347_v25, %v1343_v63 }
 0x445   : > { %v1354_v38 = vmul.f32 %v1351_v26, %v3384_v48  ;;  %v1355_v40 = vmul.f32 %v1349_v37, %v3387_v49  ;;  %1492 = vmatprep.subr.bf16.mxu0 %v1453_v30  ;;  %1720 = vmatprep.subr.bf16.mxu1 %v1453_v30  ;;  %v1361_v60 = vpop.permute.xlu0 %1360 }
 0x446   : > { %v1364_v61 = vsel %vm873_vm1, %v1357_v0, %v1361_v60  ;;  %v1366_v62 = vsel %vm873_vm1, %v1361_v60, %v1357_v0  ;;  %1493 = vmatpush1.bf16.msra.mxu0 %v1452_v13  ;;  %1721 = vmatpush1.bf16.msra.mxu1 %v1452_v13 }
 0x447   : > { %v1363_v47 = vpop.permute.xlu1 %1362  ;;  %v3810_v41 = vpack.c.bf16 %v1355_v40, %v1353_v46  ;;  %v3812_v63 = vpack.c.bf16 %v1354_v38, %v1352_v45  ;;  %v1368_v14 = vmul.f32 %v1366_v62, %v3357_v32  ;;  %v1369_v16 = vmul.f32 %v1364_v61, %v3360_v33 }
 0x448   : > { %v1365_v11 = vsel %vm873_vm1, %v1359_v52, %v1363_v47  ;;  %v1367_v43 = vsel %vm873_vm1, %v1363_v47, %v1359_v52  ;;  %v3849_v46 = vpack.c.bf16 %v3722_v39, %v3718_v15  ;;  %v3867_v47 = vpack.c.bf16 %v3690_v27, %v3688_v34 }
 0x449   : > { %v1370_v17 = vmul.f32 %v1367_v43, %v3357_v32  ;;  %v1371_v0 = vmul.f32 %v1365_v11, %v3360_v33  ;;  %1494 = vmatprep.subr.bf16.mxu0 %v3810_v41  ;;  %v1377_v59 = vpop.permute.xlu0 %1376 }
 0x44a   : > { %v1380_v44 = vsel %vm890_vm0, %v1373_v2, %v1377_v59  ;;  %v1382_v18 = vsel %vm890_vm0, %v1377_v59, %v1373_v2  ;;  %1495 = vmatpush1.bf16.msra.mxu0 %v3812_v63 }
 0x44b   : > { %v1379_v52 = vpop.permute.xlu1 %1378  ;;  %v3828_v19 = vpack.c.bf16 %v1371_v0, %v1369_v16  ;;  %v3830_v9 = vpack.c.bf16 %v1370_v17, %v1368_v14  ;;  %v1384_v12 = vmul.f32 %v1382_v18, %v3351_v28  ;;  %v1385_v25 = vmul.f32 %v1380_v44, %v3354_v29 }
 0x44c   : > { %v1381_v10 = vsel %vm890_vm0, %v1375_v42, %v1379_v52  ;;  %v1383_v20 = vsel %vm890_vm0, %v1379_v52, %v1375_v42 }
 0x44d   : > { %v1386_v30 = vmul.f32 %v1383_v20, %v3351_v28  ;;  %v1387_v2 = vmul.f32 %v1381_v10, %v3354_v29  ;;  %1496 = vmatprep.subr.bf16.mxu0 %v3828_v19  ;;  %v1437_v13 = vpop.permute.xlu0 %1436 }
 0x44e   : > { %1497 = vmatpush1.bf16.msra.mxu0 %v3830_v9 }
 0x44f   : > { %v1439_v45 = vpop.permute.xlu1 %1438  ;;  %v3842_v37 = vpack.c.bf16 %v1387_v2, %v1385_v25  ;;  %v3844_v26 = vpack.c.bf16 %v1386_v30, %v1384_v12 }
 0x451   : > { %1498 = vmatprep.subr.bf16.mxu0 %v3842_v37  ;;  %v1393_v42 = vpop.permute.xlu0 %1392 }
 0x452   : > { %v1396_v38 = vsel %vm907_vm4, %v3770_v3, %v1393_v42  ;;  %v1398_v40 = vsel %vm907_vm4, %v1393_v42, %v3770_v3  ;;  %1499 = vmatpush1.bf16.msra.mxu0 %v3844_v26 }
 0x453   : > { %v1395_v60 = vpop.permute.xlu1 %1394  ;;  %1500 = vmatprep.subr.bf16.mxu0 %v3849_v46  ;;  %v1400_v11 = vmul.f32 %v1396_v38, %v3390_v50  ;;  %v1401_v3 = vmul.f32 %v1398_v40, %v3393_v51 }
 0x454   : > { %v1397_v61 = vsel %vm907_vm4, %v3772_v4, %v1395_v60  ;;  %v1399_v62 = vsel %vm907_vm4, %v1395_v60, %v3772_v4 }
 0x455   : > { %v1402_v43 = vmul.f32 %v1397_v61, %v3390_v50  ;;  %v1403_v14 = vmul.f32 %v1399_v62, %v3393_v51  ;;  %v1409_v16 = vpop.permute.xlu0 %1408 }
 0x456   : > { %v1412_v17 = vsel %vm924_vm5, %v3774_v5, %v1409_v16  ;;  %v1414_v4 = vsel %vm924_vm5, %v1409_v16, %v3774_v5  ;;  %1501 = vmatpush1.bf16.msra.mxu0 %v3867_v47 }
 0x457   : > { %v1411_v0 = vpop.permute.xlu1 %1410  ;;  %v3880_v59 = vpack.c.bf16 %v1403_v14, %v1401_v3  ;;  %v3882_v44 = vpack.c.bf16 %v1402_v43, %v1400_v11  ;;  %v1416_v10 = vmul.f32 %v1412_v17, %v3406_v57  ;;  %v1417_v20 = vmul.f32 %v1414_v4, %v3420_v6 }
 0x458   : > { %v1413_v18 = vsel %vm924_vm5, %v3776_v7, %v1411_v0  ;;  %v1415_v52 = vsel %vm924_vm5, %v1411_v0, %v3776_v7 }
 0x459   : > { %v1418_v5 = vmul.f32 %v1413_v18, %v3406_v57  ;;  %v1419_v12 = vmul.f32 %v1415_v52, %v3420_v6  ;;  %v1425_v25 = vpop.permute.xlu0 %1424  ;;  %1502 = vmatprep.subr.bf16.mxu0 %v3880_v59 }
 0x45a   : > { %v1428_v30 = vsel %vm941_vm7, %v3778_v8, %v1425_v25  ;;  %v1430_v2 = vsel %vm941_vm7, %v1425_v25, %v3778_v8  ;;  %1503 = vmatpush1.bf16.msra.mxu0 %v3882_v44 }
 0x45b   : > { %v1427_v7 = vpop.permute.xlu1 %1426  ;;  %v3902_v42 = vpack.c.bf16 %v1419_v12, %v1417_v20  ;;  %v3904_v38 = vpack.c.bf16 %v1418_v5, %v1416_v10  ;;  %v1432_v61 = vmul.f32 %v1428_v30, %v3434_v22  ;;  %v1433_v62 = vmul.f32 %v1430_v2, %v3437_v23 }
 0x45c   : > { %v1429_v40 = vsel %vm941_vm7, %v3780_v55, %v1427_v7  ;;  %v1431_v60 = vsel %vm941_vm7, %v1427_v7, %v3780_v55 }
 0x45d   : > { %v1434_v8 = vmul.f32 %v1429_v40, %v3434_v22  ;;  %v1435_v11 = vmul.f32 %v1431_v60, %v3437_v23  ;;  %v1441_v3 = vpop.permute.xlu0 %1440  ;;  %1504 = vmatprep.subr.bf16.mxu0 %v3902_v42 }
 0x45e   : > { %v1444_v43 = vsel %vm958_vm12, %v1437_v13, %v1441_v3  ;;  %v1446_v14 = vsel %vm958_vm12, %v1441_v3, %v1437_v13  ;;  %1505 = vmatpush1.bf16.msra.mxu0 %v3904_v38 }
 0x45f   : > { %v1443_v55 = vpop.permute.xlu1 %1442  ;;  %v3922_v16 = vpack.c.bf16 %v1435_v11, %v1433_v62  ;;  %v3924_v17 = vpack.c.bf16 %v1434_v8, %v1432_v61  ;;  %v1448_v18 = vmul.f32 %v3462_v56, %v1444_v43  ;;  %v1449_v52 = vmul.f32 %v3467_v58, %v1446_v14 }
 0x460   : > { %v1445_v4 = vsel %vm958_vm12, %v1439_v45, %v1443_v55  ;;  %v1447_v0 = vsel %vm958_vm12, %v1443_v55, %v1439_v45  ;;  %v3093_v45 = vld [vmem:[%s5143_s8] ss:$8 sps:$4 sm:$0xff]   ;;  %v3098_v55 = vld [vmem:[%s5147_s5 + $0x4] ss:$12 sps:$4 sm:$0xff]   ;;  %s5152_s8 = smov 112  }
 0x461   : > { %v1450_v10 = vmul.f32 %v3462_v56, %v1445_v4  ;;  %v1451_v13 = vmul.f32 %v3467_v58, %v1447_v0  ;;  %1506 = vmatprep.subr.bf16.mxu0 %v3922_v16  ;;  %1752 = vmatprep.mubr.bf16.mxu1 %v3098_v55  ;;  %v1543_v4 = vld [vmem:[%s5148_s11] sm:$0xff]  ;;  %v1544_v0 = vld [vmem:[%s5148_s11 + $0x8] sm:$0xff] }
 0x462   : > { %1507 = vmatpush1.bf16.msra.mxu0 %v3924_v17 }
 0x463   : > { %v3936_v20 = vpack.c.bf16 %v1451_v13, %v1449_v52  ;;  %v3938_v5 = vpack.c.bf16 %v1450_v10, %v1448_v18  ;;  %v1812_v18 = vld [vmem:[%s5149_s13] sm:$0xff]  ;;  %v1813_v52 = vld [vmem:[%s5149_s13 + $0x8] sm:$0xff] }
 0x465   : > { %1508 = vmatprep.subr.bf16.mxu0 %v3936_v20 }
 0x466   : > { %1509 = vmatpush1.bf16.msra.mxu0 %v3938_v5 }
 0x469   : > { %1525 = vmatmul.mubr.bf16.vlgmr.msra.gmra.mrb[0].mxu0 %v3093_v45 }
 0x46e   : > { %v1473_v56 = vpop.permute.xlu0 %1472 }
 0x470   : > { %v1478_v30 = vpop.permute.xlu1 %1477 }
 0x53c   : > { %v1526_v12 = vpop.f32.mrb[0].mxu0 }
 0x53d   : > { %v1527_v58 = vadd.f32 %v1526_v12, %v1473_v56  ;;  %v1528_v25 = vpop.f32.mrb[1].mxu0 }
 0x53e   : > { %v1529_v2 = vadd.f32 %v1528_v25, %v1473_v56  ;;  %v1530_v7 = vpop.f32.mrb[2].mxu0 }
 0x53f   : > { %v1535_v40 = vmax.f32 %v1527_v58, 0.0  ;;  %v1531_v60 = vadd.f32 %v1530_v7, %v1478_v30  ;;  %v1532_v61 = vpop.f32.mrb[3].mxu0 }
 0x540   : > { %v1533_v62 = vadd.f32 %v1532_v61, %v1478_v30  ;;  %v1536_v11 = vmax.f32 %v1529_v2, 0.0 }
 0x541   : > { %v1537_v8 = vmax.f32 %v1531_v60, 0.0  ;;  %1545 = vrot.lane.b32.xlu0 %v1535_v40, %s5145_s7 }
 0x542   : > { %v1538_v3 = vmax.f32 %v1533_v62, 0.0 }
 0x543   : > { %1547 = vrot.lane.b32.xlu1 %v1537_v8, %s5145_s7  ;;  %v3947_v43 = vpack.c.bf16 %v1537_v8, %v1535_v40 }
 0x544   : > { %v3949_v14 = vpack.c.bf16 %v1538_v3, %v1536_v11 }
 0x545   : > { %1549 = vrot.lane.b32.xlu0 %v1536_v11, %s5145_s7 }
 0x547   : > { %1551 = vrot.lane.b32.xlu1 %v1538_v3, %s5145_s7 }
 0x549   : > { %1561 = vrot.lane.b32.xlu0 %v1535_v40, %s5146_s28 }
 0x54b   : > { %1563 = vrot.lane.b32.xlu1 %v1537_v8, %s5146_s28 }
 0x54d   : > { %1565 = vrot.lane.b32.xlu0 %v1536_v11, %s5146_s28 }
 0x54f   : > { %1567 = vrot.lane.b32.xlu1 %v1538_v3, %s5146_s28 }
 0x551   : > { %1577 = vrot.lane.b32.xlu0 %v1535_v40, %s5140_s9 }
 0x553   : > { %1579 = vrot.lane.b32.xlu1 %v1537_v8, %s5140_s9 }
 0x555   : > { %1581 = vrot.lane.b32.xlu0 %v1536_v11, %s5140_s9 }
 0x557   : > { %1583 = vrot.lane.b32.xlu1 %v1538_v3, %s5140_s9 }
 0x559   : > { %1593 = vrot.lane.b32.xlu0 %v1535_v40, %s5141_s30 }
 0x55b   : > { %1595 = vrot.lane.b32.xlu1 %v1537_v8, %s5141_s30 }
 0x55d   : > { %1597 = vrot.lane.b32.xlu0 %v1536_v11, %s5141_s30 }
 0x55f   : > { %1599 = vrot.lane.b32.xlu1 %v1538_v3, %s5141_s30 }
 0x561   : > { %1609 = vrot.lane.b32.xlu0 %v1535_v40, %s5142_s6 }
 0x563   : > { %1611 = vrot.lane.b32.xlu1 %v1537_v8, %s5142_s6 }
 0x565   : > { %1613 = vrot.lane.b32.xlu0 %v1536_v11, %s5142_s6 }
 0x567   : > { %1615 = vrot.lane.b32.xlu1 %v1538_v3, %s5142_s6 }
 0x569   : > { %1625 = vrot.lane.b32.xlu0 %v1535_v40, %s5106_s4 }
 0x56b   : > { %1627 = vrot.lane.b32.xlu1 %v1537_v8, %s5106_s4 }
 0x56d   : > { %1629 = vrot.lane.b32.xlu0 %v1536_v11, %s5106_s4 }
 0x56f   : > { %1631 = vrot.lane.b32.xlu1 %v1538_v3, %s5106_s4  ;;  %s5154_s4 = sld [smem:[#allocation18_spill]] }
 0x571   : > { %1641 = vrot.lane.b32.xlu0 %v1535_v40, %s5110_s29 }
 0x573   : > { %1643 = vrot.lane.b32.xlu1 %v1537_v8, %s5110_s29 }
 0x575   : > { %1645 = vrot.lane.b32.xlu0 %v1536_v11, %s5110_s29 }
 0x577   : > { %1647 = vrot.lane.b32.xlu1 %v1538_v3, %s5110_s29 }
 0x579   : > { %1657 = vrot.lane.b32.xlu0 %v1535_v40, %s5137_s10 }
 0x57b   : > { %1659 = vrot.lane.b32.xlu1 %v1537_v8, %s5137_s10 }
 0x57d   : > { %1661 = vrot.lane.b32.xlu0 %v1536_v11, %s5137_s10 }
 0x57f   : > { %1663 = vrot.lane.b32.xlu1 %v1538_v3, %s5137_s10 }
 0x581   : > { %1693 = vperm.xlu0 %3087, %v1543_v4  }
 0x583   : > { %1698 = vperm.xlu1 %3088, %v1544_v0  }
 0x585   : > { %1818 = vperm.xlu0 %3087, %v1812_v18  }
 0x587   : > { %1823 = vperm.xlu1 %3088, %v1813_v52  }
 0x5b3   : > { %v1546_v10 = vpop.permute.xlu0 %1545 }
 0x5b5   : > { %v1548_v13 = vpop.permute.xlu1 %1547 }
 0x5b7   : > { %v1550_v45 = vpop.permute.xlu0 %1549 }
 0x5b8   : > { %v1553_v56 = vsel %vm839_vm2, %v1546_v10, %v1550_v45  ;;  %v1555_v12 = vsel %vm839_vm2, %v1550_v45, %v1546_v10 }
 0x5b9   : > { %v1552_v58 = vpop.permute.xlu1 %1551  ;;  %v1557_v2 = vmul.f32 %v1555_v12, %v3396_v53  ;;  %v1558_v7 = vmul.f32 %v1553_v56, %v3399_v54 }
 0x5ba   : > { %v1554_v25 = vsel %vm839_vm2, %v1548_v13, %v1552_v58  ;;  %v1556_v30 = vsel %vm839_vm2, %v1552_v58, %v1548_v13 }
 0x5bb   : > { %v1559_v40 = vmul.f32 %v1556_v30, %v3396_v53  ;;  %v1560_v60 = vmul.f32 %v1554_v25, %v3399_v54  ;;  %v1562_v61 = vpop.permute.xlu0 %1561 }
 0x5bd   : > { %v1673_v62 = vpack.c.bf16 %v1559_v40, %v1557_v2  ;;  %v1564_v8 = vpop.permute.xlu1 %1563  ;;  %v1674_v11 = vpack.c.bf16 %v1560_v60, %v1558_v7 }
 0x5bf   : > { %1722 = vmatprep.subr.bf16.mxu1 %v1674_v11  ;;  %v1566_v3 = vpop.permute.xlu0 %1565 }
 0x5c0   : > { %v1569_v55 = vsel %vm856_vm3, %v1562_v61, %v1566_v3  ;;  %v1571_v4 = vsel %vm856_vm3, %v1566_v3, %v1562_v61  ;;  %1723 = vmatpush1.bf16.msra.mxu1 %v1673_v62 }
 0x5c1   : > { %v1568_v0 = vpop.permute.xlu1 %1567  ;;  %1724 = vmatprep.subr.bf16.mxu1 %v3810_v41  ;;  %v1573_v10 = vmul.f32 %v1571_v4, %v3384_v48  ;;  %v1574_v13 = vmul.f32 %v1569_v55, %v3387_v49 }
 0x5c2   : > { %v1570_v18 = vsel %vm856_vm3, %v1564_v8, %v1568_v0  ;;  %v1572_v52 = vsel %vm856_vm3, %v1568_v0, %v1564_v8 }
 0x5c3   : > { %v1575_v45 = vmul.f32 %v1572_v52, %v3384_v48  ;;  %v1576_v56 = vmul.f32 %v1570_v18, %v3387_v49  ;;  %v1578_v12 = vpop.permute.xlu0 %1577 }
 0x5c4   : > { %1725 = vmatpush1.bf16.msra.mxu1 %v3812_v63 }
 0x5c5   : > { %v1675_v58 = vpack.c.bf16 %v1575_v45, %v1573_v10  ;;  %v1580_v25 = vpop.permute.xlu1 %1579  ;;  %v1676_v41 = vpack.c.bf16 %v1576_v56, %v1574_v13 }
 0x5c7   : > { %1726 = vmatprep.subr.bf16.mxu1 %v1676_v41  ;;  %v1582_v30 = vpop.permute.xlu0 %1581 }
 0x5c8   : > { %v1585_v2 = vsel %vm873_vm1, %v1578_v12, %v1582_v30  ;;  %v1587_v7 = vsel %vm873_vm1, %v1582_v30, %v1578_v12  ;;  %1727 = vmatpush1.bf16.msra.mxu1 %v1675_v58 }
 0x5c9   : > { %v1584_v40 = vpop.permute.xlu1 %1583  ;;  %1728 = vmatprep.subr.bf16.mxu1 %v3828_v19  ;;  %v1589_v61 = vmul.f32 %v1587_v7, %v3357_v32  ;;  %v1590_v62 = vmul.f32 %v1585_v2, %v3360_v33 }
 0x5ca   : > { %v1586_v60 = vsel %vm873_vm1, %v1580_v25, %v1584_v40  ;;  %v1588_v63 = vsel %vm873_vm1, %v1584_v40, %v1580_v25 }
 0x5cb   : > { %v1591_v8 = vmul.f32 %v1588_v63, %v3357_v32  ;;  %v1592_v11 = vmul.f32 %v1586_v60, %v3360_v33  ;;  %v1594_v3 = vpop.permute.xlu0 %1593 }
 0x5cc   : > { %1729 = vmatpush1.bf16.msra.mxu1 %v3830_v9 }
 0x5cd   : > { %v1677_v55 = vpack.c.bf16 %v1591_v8, %v1589_v61  ;;  %v1596_v4 = vpop.permute.xlu1 %1595  ;;  %v1678_v19 = vpack.c.bf16 %v1592_v11, %v1590_v62 }
 0x5cf   : > { %1730 = vmatprep.subr.bf16.mxu1 %v1678_v19  ;;  %v1598_v0 = vpop.permute.xlu0 %1597 }
 0x5d0   : > { %v1601_v18 = vsel %vm890_vm0, %v1594_v3, %v1598_v0  ;;  %v1603_v52 = vsel %vm890_vm0, %v1598_v0, %v1594_v3  ;;  %1731 = vmatpush1.bf16.msra.mxu1 %v1677_v55 }
 0x5d1   : > { %v1600_v10 = vpop.permute.xlu1 %1599  ;;  %1732 = vmatprep.subr.bf16.mxu1 %v3842_v37  ;;  %v1605_v45 = vmul.f32 %v1603_v52, %v3351_v28  ;;  %v1606_v56 = vmul.f32 %v1601_v18, %v3354_v29 }
 0x5d2   : > { %v1602_v13 = vsel %vm890_vm0, %v1596_v4, %v1600_v10  ;;  %v1604_v9 = vsel %vm890_vm0, %v1600_v10, %v1596_v4 }
 0x5d3   : > { %v1607_v12 = vmul.f32 %v1604_v9, %v3351_v28  ;;  %v1608_v58 = vmul.f32 %v1602_v13, %v3354_v29  ;;  %v1610_v25 = vpop.permute.xlu0 %1609 }
 0x5d4   : > { %1733 = vmatpush1.bf16.msra.mxu1 %v3844_v26 }
 0x5d5   : > { %v1679_v41 = vpack.c.bf16 %v1607_v12, %v1605_v45  ;;  %v1612_v30 = vpop.permute.xlu1 %1611  ;;  %v1680_v37 = vpack.c.bf16 %v1608_v58, %v1606_v56 }
 0x5d7   : > { %1734 = vmatprep.subr.bf16.mxu1 %v1680_v37  ;;  %v1614_v2 = vpop.permute.xlu0 %1613 }
 0x5d8   : > { %1735 = vmatpush1.bf16.msra.mxu1 %v1679_v41  ;;  %v1619_v26 = vsel %vm907_vm4, %v1614_v2, %v1610_v25  ;;  %v1617_v11 = vsel %vm907_vm4, %v1610_v25, %v1614_v2 }
 0x5d9   : > { %v1616_v7 = vpop.permute.xlu1 %1615  ;;  %1736 = vmatprep.subr.bf16.mxu1 %v3849_v46  ;;  %v1622_v3 = vmul.f32 %v1619_v26, %v3393_v51  ;;  %v1621_v18 = vmul.f32 %v1617_v11, %v3390_v50 }
 0x5da   : > { %v1620_v60 = vsel %vm907_vm4, %v1616_v7, %v1612_v30  ;;  %v1618_v61 = vsel %vm907_vm4, %v1612_v30, %v1616_v7 }
 0x5db   : > { %v1626_v40 = vpop.permute.xlu0 %1625  ;;  %v1624_v62 = vmul.f32 %v1620_v60, %v3393_v51  ;;  %v1623_v4 = vmul.f32 %v1618_v61, %v3390_v50 }
 0x5dc   : > { %1737 = vmatpush1.bf16.msra.mxu1 %v3867_v47 }
 0x5dd   : > { %v1628_v63 = vpop.permute.xlu1 %1627  ;;  %1738 = vmatprep.subr.bf16.mxu1 %v3949_v14  ;;  %v1684_v0 = vpack.c.bf16 %v1624_v62, %v1622_v3  ;;  %v1683_v13 = vpack.c.bf16 %v1623_v4, %v1621_v18 }
 0x5df   : > { %v1630_v8 = vpop.permute.xlu0 %1629 }
 0x5e0   : > { %1739 = vmatpush1.bf16.msra.mxu1 %v3947_v43  ;;  %v1635_v9 = vsel %vm924_vm5, %v1630_v8, %v1626_v40  ;;  %v1633_v12 = vsel %vm924_vm5, %v1626_v40, %v1630_v8 }
 0x5e1   : > { %v1632_v55 = vpop.permute.xlu1 %1631  ;;  %1740 = vmatprep.subr.bf16.mxu1 %v3880_v59  ;;  %v1638_v58 = vmul.f32 %v1635_v9, %v3420_v6  ;;  %v1637_v30 = vmul.f32 %v1633_v12, %v3406_v57 }
 0x5e2   : > { %v1636_v52 = vsel %vm924_vm5, %v1632_v55, %v1628_v63  ;;  %v1634_v59 = vsel %vm924_vm5, %v1628_v63, %v1632_v55 }
 0x5e3   : > { %v1642_v19 = vpop.permute.xlu0 %1641  ;;  %v1640_v45 = vmul.f32 %v1636_v52, %v3420_v6  ;;  %v3096_v52 = vld [vmem:[%s5147_s5] ss:$12 sps:$4 sm:$0xff]  }
 0x5e4   : > { %1741 = vmatpush1.bf16.msra.mxu1 %v3882_v44  ;;  %v1639_v44 = vmul.f32 %v1634_v59, %v3406_v57 }
 0x5e5   : > { %v1644_v10 = vpop.permute.xlu1 %1643  ;;  %1742 = vmatprep.subr.bf16.mxu1 %v1684_v0  ;;  %v1686_v41 = vpack.c.bf16 %v1640_v45, %v1638_v58 }
 0x5e6   : > { %v1685_v60 = vpack.c.bf16 %v1639_v44, %v1637_v30 }
 0x5e7   : > { %v1646_v56 = vpop.permute.xlu0 %1645 }
 0x5e8   : > { %1743 = vmatpush1.bf16.msra.mxu1 %v1683_v13  ;;  %v1651_v40 = vsel %vm941_vm7, %v1646_v56, %v1642_v19  ;;  %v1649_v26 = vsel %vm941_vm7, %v1642_v19, %v1646_v56  ;;  %v4118_v13 = vld [vmem:[%s5135_s0 + $0x10] ss:$0 sm:$0xff] }
 0x5e9   : > { %v1648_v25 = vpop.permute.xlu1 %1647  ;;  %1744 = vmatprep.subr.bf16.mxu1 %v3902_v42  ;;  %v1654_v61 = vmul.f32 %v1651_v40, %v3437_v23  ;;  %v1653_v3 = vmul.f32 %v1649_v26, %v3434_v22 }
 0x5ea   : > { %v1652_v37 = vsel %vm941_vm7, %v1648_v25, %v1644_v10  ;;  %v1650_v42 = vsel %vm941_vm7, %v1644_v10, %v1648_v25 }
 0x5eb   : > { %v1658_v2 = vpop.permute.xlu0 %1657  ;;  %v1656_v63 = vmul.f32 %v1652_v37, %v3437_v23 }
 0x5ec   : > { %1745 = vmatpush1.bf16.msra.mxu1 %v3904_v38  ;;  %v1655_v38 = vmul.f32 %v1650_v42, %v3434_v22 }
 0x5ed   : > { %v1660_v7 = vpop.permute.xlu1 %1659  ;;  %1746 = vmatprep.subr.bf16.mxu1 %v1686_v41  ;;  %v1688_v11 = vpack.c.bf16 %v1656_v63, %v1654_v61 }
 0x5ee   : > { %v1687_v4 = vpack.c.bf16 %v1655_v38, %v1653_v3 }
 0x5ef   : > { %v1662_v8 = vpop.permute.xlu0 %1661 }
 0x5f0   : > { %1747 = vmatpush1.bf16.msra.mxu1 %v1685_v60  ;;  %v1667_v19 = vsel %vm958_vm12, %v1662_v8, %v1658_v2 }
 0x5f1   : > { %v1664_v62 = vpop.permute.xlu1 %1663  ;;  %1748 = vmatprep.subr.bf16.mxu1 %v3922_v16  ;;  %v4105_v16 = vld [vmem:[%s5135_s0 + $0x18] ss:$0 sm:$0xff] }
 0x5f2   : > { %v1668_v55 = vsel %vm958_vm12, %v1664_v62, %v1660_v7  ;;  %v1666_v0 = vsel %vm958_vm12, %v1660_v7, %v1664_v62  ;;  %v1670_v10 = vmul.f32 %v4105_v16, %v1667_v19 }
 0x5f3   : > { %v1672_v18 = vmul.f32 %v4105_v16, %v1668_v55  ;;  %v1671_v9 = vmul.f32 %v4118_v13, %v1666_v0 }
 0x5f4   : > { %1749 = vmatpush1.bf16.msra.mxu1 %v3924_v17  ;;  %v1665_v17 = vsel %vm958_vm12, %v1658_v2, %v1662_v8 }
 0x5f5   : > { %1750 = vmatprep.subr.bf16.mxu1 %v1688_v11  ;;  %v1690_v59 = vpack.c.bf16 %v1672_v18, %v1670_v10  ;;  %v1669_v45 = vmul.f32 %v4118_v13, %v1665_v17  ;;  %v1885_v17 = vld [vmem:[%s5071_s15 + $0x8] sm:$0xff] }
 0x5f7   : > { %v1689_v56 = vpack.c.bf16 %v1671_v9, %v1669_v45 }
 0x5f8   : > { %1751 = vmatpush1.bf16.msra.mxu1 %v1687_v4 }
 0x5f9   : > { %1763 = vmatprep.subr.bf16.mxu1 %v3936_v20  ;;  %v3099_v20 = vld [vmem:[%s5147_s5 + $0x8] ss:$12 sps:$4 sm:$0xff]  }
 0x5fb   : > { %1753 = vmatmul.mubr.bf16.vlgmr.msra.gmra.mrb[8].mxu1 %v3096_v52 }
 0x5fc   : > { %1764 = vmatpush1.bf16.msra.mxu1 %v3938_v5  ;;  %1795 = vmatprep.mubr.bf16.mxu1 %v3128_v1 }
 0x5fd   : > { %1765 = vmatprep.subr.bf16.mxu1 %v1690_v59 }
 0x600   : > { %1766 = vmatpush1.bf16.msra.mxu1 %v1689_v56  ;;  %v1694_v5 = vpop.permute.xlu0 %1693 }
 0x601   : > { %1835 = vmatprep.subr.bf16.mxu1 %v3849_v46 }
 0x602   : > { %v1699_v46 = vpop.permute.xlu1 %1698 }
 0x606   : > { %v1824_v38 = vpop.permute.xlu1 %1823 }
 0x607   : > { %3028 = vmatmul.mubr.msk.bf16.vlgmr.msra.gmra.mrb[8].mxu1 %vm1716_vm8, %v3099_v20 }
 0x608   : > { %1836 = vmatpush1.bf16.msra.mxu1 %v3867_v47  ;;  %1867 = vmatprep.mubr.bf16.mxu1 %v3128_v1 }
 0x609   : > { %1837 = vmatprep.subr.bf16.mxu1 %v3949_v14  ;;  %v1819_v14 = vpop.permute.xlu0 %1818 }
 0x60c   : > { %1838 = vmatpush1.bf16.msra.mxu1 %v3947_v43  ;;  %v3100_v43 = vld [vmem:[%s5150_s12] sm:$0xff]  }
 0x6da   : > { %v1797_v12 = vpop.f32.mrb[8].mxu1 }
 0x6db   : > { %v3052_v58 = vadd.f32 %v1797_v12, %v1694_v5  ;;  %v1799_v25 = vpop.f32.mrb[9].mxu1 }
 0x6dc   : > { %v3053_v44 = vadd.f32 %v1799_v25, %v1694_v5  ;;  %v1801_v41 = vpop.f32.mrb[10].mxu1 }
 0x6dd   : > { %v3054_v30 = vadd.f32 %v1801_v41, %v1699_v46  ;;  %v1803_v37 = vpop.f32.mrb[11].mxu1  ;;  %v1806_v7 = vmax.f32 %v3052_v58, 0.0 }
 0x6de   : > { %v3055_v2 = vadd.f32 %v1803_v37, %v1699_v46  ;;  %v1807_v40 = vmax.f32 %v3053_v44, 0.0 }
 0x6df   : > { %v1808_v60 = vmax.f32 %v3054_v30, 0.0 }
 0x6e0   : > { %v1809_v47 = vmax.f32 %v3055_v2, 0.0 }
 0x6e1   : > { %v1814_v42 = vpack.c.bf16 %v1808_v60, %v1806_v7 }
 0x6e2   : > { %v1815_v63 = vpack.c.bf16 %v1809_v47, %v1807_v40 }
 0x6e4   : > { %1839 = vmatprep.subr.bf16.mxu1 %v1815_v63 }
 0x6e5   : > { %1840 = vmatpush1.bf16.msra.mxu1 %v1814_v42 }
 0x6e8   : > { %3030 = vmatmul.mubr.msk.bf16.vlgmr.msra.gmra.mrb[12].mxu1 %vm1831_vm9, %v3100_v43 }
 0x6e9   : > { %2427 = vmatprep.mubr.bf16.mxu1 %v3128_v1 }
 0x7bb   : > { %v1869_v26 = vpop.f32.mrb[12].mxu1 }
 0x7bc   : > { %v1870_v61 = vadd.f32 %v1869_v26, %v1819_v14  ;;  %v1871_v62 = vpop.f32.mrb[13].mxu1 }
 0x7bd   : > { %v1872_v8 = vadd.f32 %v1871_v62, %v1819_v14  ;;  %v1873_v11 = vpop.f32.mrb[14].mxu1 }
 0x7be   : > { %v4139_v3 = vadd.f32 %v1870_v61, %v3688_v34  ;;  %v1874_v55 = vadd.f32 %v1873_v11, %v1824_v38  ;;  %v1875_v4 = vpop.f32.mrb[15].mxu1 }
 0x7bf   : > { %v1876_v19 = vadd.f32 %v1875_v4, %v1824_v38  ;;  %v4147_v18 = vadd.f32 %v1872_v8, %v3718_v15  ;;  %v3101_v15 = vld [vmem:[%s5070_s14 + $0x4] ss:$8 sps:$4 sm:$0xff]  }
 0x7c0   : > { %v4142_v0 = vadd.f32 %v1874_v55, %v3690_v27  ;;  %1886 = vrot.lane.b32.xlu0 %v4139_v3, %s5145_s7  ;;  %3033 = vmatprep.mubr.msk.bf16.mxu0 %vm1273_vm6, %v3101_v15 }
 0x7c1   : > { %v4150_v52 = vadd.f32 %v1876_v19, %v3722_v39  ;;  %v1884_v39 = vld [vmem:[%s5071_s15] sm:$0xff] }
 0x7c2   : > { %1888 = vrot.lane.b32.xlu1 %v4142_v0, %s5145_s7  ;;  %v4162_v27 = vpack.c.bf16 %v4142_v0, %v4139_v3 }
 0x7c3   : > { %v4156_v34 = vpack.c.bf16 %v4150_v52, %v4147_v18 }
 0x7c4   : > { %1902 = vrot.lane.b32.xlu0 %v4139_v3, %s5146_s28 }
 0x7c5   : > { %2395 = vmatprep.subr.bf16.mxu1 %v4156_v34 }
 0x7c6   : > { %1904 = vrot.lane.b32.xlu1 %v4142_v0, %s5146_s28  ;;  %2396 = vmatpush1.bf16.msra.mxu1 %v4162_v27 }
 0x7c8   : > { %1918 = vrot.lane.b32.xlu0 %v4139_v3, %s5140_s9 }
 0x7ca   : > { %1920 = vrot.lane.b32.xlu1 %v4142_v0, %s5140_s9 }
 0x7cc   : > { %1934 = vrot.lane.b32.xlu0 %v4139_v3, %s5141_s30 }
 0x7ce   : > { %1936 = vrot.lane.b32.xlu1 %v4142_v0, %s5141_s30 }
 0x7d0   : > { %1950 = vrot.lane.b32.xlu0 %v4139_v3, %s5142_s6 }
 0x7d2   : > { %1952 = vrot.lane.b32.xlu1 %v4142_v0, %s5142_s6 }
 0x7d4   : > { %1966 = vrot.lane.b32.xlu0 %v4139_v3, %s5151_s3 }
 0x7d6   : > { %1968 = vrot.lane.b32.xlu1 %v4142_v0, %s5151_s3 }
 0x7d8   : > { %1982 = vrot.lane.b32.xlu0 %v4139_v3, %s5152_s8 }
 0x7da   : > { %1984 = vrot.lane.b32.xlu1 %v4142_v0, %s5152_s8 }
 0x7dc   : > { %1890 = vrot.lane.b32.xlu0 %v4147_v18, %s5145_s7 }
 0x7de   : > { %1892 = vrot.lane.b32.xlu1 %v4150_v52, %s5145_s7 }
 0x7e0   : > { %1906 = vrot.lane.b32.xlu0 %v4147_v18, %s5146_s28 }
 0x7e2   : > { %1908 = vrot.lane.b32.xlu1 %v4150_v52, %s5146_s28 }
 0x7e4   : > { %1922 = vrot.lane.b32.xlu0 %v4147_v18, %s5140_s9 }
 0x7e6   : > { %1924 = vrot.lane.b32.xlu1 %v4150_v52, %s5140_s9 }
 0x7e8   : > { %1938 = vrot.lane.b32.xlu0 %v4147_v18, %s5141_s30 }
 0x7ea   : > { %1940 = vrot.lane.b32.xlu1 %v4150_v52, %s5141_s30 }
 0x7ec   : > { %1998 = vrot.lane.b32.xlu0 %v4139_v3, %s5137_s10 }
 0x7ee   : > { %2000 = vrot.lane.b32.xlu1 %v4142_v0, %s5137_s10 }
 0x7f0   : > { %1954 = vrot.lane.b32.xlu0 %v4147_v18, %s5142_s6 }
 0x7f2   : > { %1956 = vrot.lane.b32.xlu1 %v4150_v52, %s5142_s6 }
 0x7f4   : > { %1970 = vrot.lane.b32.xlu0 %v4147_v18, %s5151_s3 }
 0x7f6   : > { %1972 = vrot.lane.b32.xlu1 %v4150_v52, %s5151_s3 }
 0x7f8   : > { %1986 = vrot.lane.b32.xlu0 %v4147_v18, %s5152_s8 }
 0x7fa   : > { %1988 = vrot.lane.b32.xlu1 %v4150_v52, %s5152_s8 }
 0x7fc   : > { %2002 = vrot.lane.b32.xlu0 %v4147_v18, %s5137_s10 }
 0x7fe   : > { %2004 = vrot.lane.b32.xlu1 %v4150_v52, %s5137_s10 }
 0x800   : > { %2034 = vperm.xlu0 %3087, %v1884_v39  }
 0x802   : > { %2039 = vperm.xlu1 %3088, %v1885_v17  }
 0x832   : > { %v1887_v10 = vpop.permute.xlu0 %1886 }
 0x834   : > { %v1889_v9 = vpop.permute.xlu1 %1888 }
 0x836   : > { %v1903_v59 = vpop.permute.xlu0 %1902 }
 0x838   : > { %v1905_v45 = vpop.permute.xlu1 %1904 }
 0x83a   : > { %v1919_v56 = vpop.permute.xlu0 %1918 }
 0x83c   : > { %v1921_v20 = vpop.permute.xlu1 %1920 }
 0x83e   : > { %v1935_v5 = vpop.permute.xlu0 %1934 }
 0x840   : > { %v1937_v12 = vpop.permute.xlu1 %1936 }
 0x842   : > { %v4234_v58 = vpop.permute.xlu0 %1950 }
 0x844   : > { %v4236_v25 = vpop.permute.xlu1 %1952 }
 0x846   : > { %v4238_v46 = vpop.permute.xlu0 %1966 }
 0x848   : > { %v4240_v44 = vpop.permute.xlu1 %1968 }
 0x84a   : > { %v4242_v41 = vpop.permute.xlu0 %1982 }
 0x84c   : > { %v4244_v30 = vpop.permute.xlu1 %1984 }
 0x84e   : > { %v1891_v37 = vpop.permute.xlu0 %1890 }
 0x84f   : > { %v1894_v2 = vsel %vm839_vm2, %v1887_v10, %v1891_v37  ;;  %v1896_v7 = vsel %vm839_vm2, %v1891_v37, %v1887_v10 }
 0x850   : > { %v1893_v60 = vpop.permute.xlu1 %1892  ;;  %v1898_v42 = vmul.f32 %v1896_v7, %v3396_v53  ;;  %v1899_v63 = vmul.f32 %v1894_v2, %v3399_v54 }
 0x851   : > { %v1895_v40 = vsel %vm839_vm2, %v1889_v9, %v1893_v60  ;;  %v1897_v47 = vsel %vm839_vm2, %v1893_v60, %v1889_v9 }
 0x852   : > { %v1900_v43 = vmul.f32 %v1897_v47, %v3396_v53  ;;  %v1901_v14 = vmul.f32 %v1895_v40, %v3399_v54  ;;  %v1907_v26 = vpop.permute.xlu0 %1906 }
 0x853   : > { %v1910_v61 = vsel %vm856_vm3, %v1903_v59, %v1907_v26  ;;  %v1912_v62 = vsel %vm856_vm3, %v1907_v26, %v1903_v59 }
 0x854   : > { %v4262_v38 = vpack.c.bf16 %v1900_v43, %v1898_v42  ;;  %v1909_v8 = vpop.permute.xlu1 %1908  ;;  %v4264_v11 = vpack.c.bf16 %v1901_v14, %v1899_v63  ;;  %v1914_v19 = vmul.f32 %v1912_v62, %v3384_v48  ;;  %v1915_v15 = vmul.f32 %v1910_v61, %v3387_v49 }
 0x855   : > { %v1911_v55 = vsel %vm856_vm3, %v1905_v45, %v1909_v8  ;;  %v1913_v4 = vsel %vm856_vm3, %v1909_v8, %v1905_v45 }
 0x856   : > { %v1916_v39 = vmul.f32 %v1913_v4, %v3384_v48  ;;  %v1917_v17 = vmul.f32 %v1911_v55, %v3387_v49  ;;  %2054 = vmatprep.subr.bf16.mxu0 %v4264_v11  ;;  %v1923_v10 = vpop.permute.xlu0 %1922 }
 0x857   : > { %v1926_v9 = vsel %vm873_vm1, %v1919_v56, %v1923_v10  ;;  %v1928_v59 = vsel %vm873_vm1, %v1923_v10, %v1919_v56  ;;  %2055 = vmatpush1.bf16.msra.mxu0 %v4262_v38 }
 0x858   : > { %v4280_v45 = vpack.c.bf16 %v1916_v39, %v1914_v19  ;;  %v1925_v37 = vpop.permute.xlu1 %1924  ;;  %v4282_v2 = vpack.c.bf16 %v1917_v17, %v1915_v15  ;;  %v1930_v40 = vmul.f32 %v1928_v59, %v3357_v32  ;;  %v1931_v47 = vmul.f32 %v1926_v9, %v3360_v33 }
 0x859   : > { %v1927_v7 = vsel %vm873_vm1, %v1921_v20, %v1925_v37  ;;  %v1929_v60 = vsel %vm873_vm1, %v1925_v37, %v1921_v20 }
 0x85a   : > { %v1932_v42 = vmul.f32 %v1929_v60, %v3357_v32  ;;  %v1933_v56 = vmul.f32 %v1927_v7, %v3360_v33  ;;  %2056 = vmatprep.subr.bf16.mxu0 %v4282_v2  ;;  %v1939_v63 = vpop.permute.xlu0 %1938 }
 0x85b   : > { %v1942_v43 = vsel %vm890_vm0, %v1935_v5, %v1939_v63  ;;  %v1944_v14 = vsel %vm890_vm0, %v1939_v63, %v1935_v5  ;;  %2057 = vmatpush1.bf16.msra.mxu0 %v4280_v45 }
 0x85c   : > { %v4298_v20 = vpack.c.bf16 %v1932_v42, %v1930_v40  ;;  %v1941_v26 = vpop.permute.xlu1 %1940  ;;  %v4300_v61 = vpack.c.bf16 %v1933_v56, %v1931_v47  ;;  %v1946_v55 = vmul.f32 %v1944_v14, %v3351_v28  ;;  %v1947_v4 = vmul.f32 %v1942_v43, %v3354_v29 }
 0x85d   : > { %v1943_v62 = vsel %vm890_vm0, %v1937_v12, %v1941_v26  ;;  %v1945_v8 = vsel %vm890_vm0, %v1941_v26, %v1937_v12 }
 0x85e   : > { %v1948_v19 = vmul.f32 %v1945_v8, %v3351_v28  ;;  %v1949_v5 = vmul.f32 %v1943_v62, %v3354_v29  ;;  %2058 = vmatprep.subr.bf16.mxu0 %v4300_v61  ;;  %v1999_v15 = vpop.permute.xlu0 %1998 }
 0x85f   : > { %2059 = vmatpush1.bf16.msra.mxu0 %v4298_v20 }
 0x860   : > { %v4312_v39 = vpack.c.bf16 %v1948_v19, %v1946_v55  ;;  %v2001_v17 = vpop.permute.xlu1 %2000  ;;  %v4314_v10 = vpack.c.bf16 %v1949_v5, %v1947_v4 }
 0x862   : > { %2060 = vmatprep.subr.bf16.mxu0 %v4314_v10  ;;  %v1955_v12 = vpop.permute.xlu0 %1954 }
 0x863   : > { %v1958_v9 = vsel %vm907_vm4, %v4234_v58, %v1955_v12  ;;  %v1960_v59 = vsel %vm907_vm4, %v1955_v12, %v4234_v58  ;;  %2061 = vmatpush1.bf16.msra.mxu0 %v4312_v39 }
 0x864   : > { %v1957_v37 = vpop.permute.xlu1 %1956  ;;  %2062 = vmatprep.subr.bf16.mxu0 %v4156_v34  ;;  %v1962_v40 = vmul.f32 %v1958_v9, %v3390_v50  ;;  %v1963_v47 = vmul.f32 %v1960_v59, %v3393_v51 }
 0x865   : > { %v1959_v7 = vsel %vm907_vm4, %v4236_v25, %v1957_v37  ;;  %v1961_v60 = vsel %vm907_vm4, %v1957_v37, %v4236_v25 }
 0x866   : > { %v1964_v42 = vmul.f32 %v1959_v7, %v3390_v50  ;;  %v1965_v58 = vmul.f32 %v1961_v60, %v3393_v51  ;;  %v1971_v56 = vpop.permute.xlu0 %1970 }
 0x867   : > { %v1974_v63 = vsel %vm924_vm5, %v4238_v46, %v1971_v56  ;;  %v1976_v43 = vsel %vm924_vm5, %v1971_v56, %v4238_v46  ;;  %2063 = vmatpush1.bf16.msra.mxu0 %v4162_v27 }
 0x868   : > { %v4342_v25 = vpack.c.bf16 %v1964_v42, %v1962_v40  ;;  %v1973_v14 = vpop.permute.xlu1 %1972  ;;  %v4344_v26 = vpack.c.bf16 %v1965_v58, %v1963_v47  ;;  %v1978_v55 = vmul.f32 %v1974_v63, %v3406_v57  ;;  %v1979_v4 = vmul.f32 %v1976_v43, %v3420_v6 }
 0x869   : > { %v1975_v62 = vsel %vm924_vm5, %v4240_v44, %v1973_v14  ;;  %v1977_v8 = vsel %vm924_vm5, %v1973_v14, %v4240_v44 }
 0x86a   : > { %v1980_v46 = vmul.f32 %v1975_v62, %v3406_v57  ;;  %v1981_v19 = vmul.f32 %v1977_v8, %v3420_v6  ;;  %v1987_v5 = vpop.permute.xlu0 %1986  ;;  %2064 = vmatprep.subr.bf16.mxu0 %v4344_v26 }
 0x86b   : > { %v1990_v12 = vsel %vm941_vm7, %v4242_v41, %v1987_v5  ;;  %v1992_v9 = vsel %vm941_vm7, %v1987_v5, %v4242_v41  ;;  %2065 = vmatpush1.bf16.msra.mxu0 %v4342_v25 }
 0x86c   : > { %v4364_v44 = vpack.c.bf16 %v1980_v46, %v1978_v55  ;;  %v1989_v59 = vpop.permute.xlu1 %1988  ;;  %v4366_v37 = vpack.c.bf16 %v1981_v19, %v1979_v4  ;;  %v1994_v40 = vmul.f32 %v1990_v12, %v3434_v22  ;;  %v1995_v47 = vmul.f32 %v1992_v9, %v3437_v23 }
 0x86d   : > { %v1991_v7 = vsel %vm941_vm7, %v4244_v30, %v1989_v59  ;;  %v1993_v60 = vsel %vm941_vm7, %v1989_v59, %v4244_v30 }
 0x86e   : > { %v1996_v41 = vmul.f32 %v1991_v7, %v3434_v22  ;;  %v1997_v42 = vmul.f32 %v1993_v60, %v3437_v23  ;;  %v2003_v58 = vpop.permute.xlu0 %2002  ;;  %2066 = vmatprep.subr.bf16.mxu0 %v4366_v37 }
 0x86f   : > { %v2006_v56 = vsel %vm958_vm12, %v1999_v15, %v2003_v58  ;;  %v2008_v63 = vsel %vm958_vm12, %v2003_v58, %v1999_v15  ;;  %2067 = vmatpush1.bf16.msra.mxu0 %v4364_v44 }
 0x870   : > { %v4384_v30 = vpack.c.bf16 %v1996_v41, %v1994_v40  ;;  %v2005_v43 = vpop.permute.xlu1 %2004  ;;  %v4386_v14 = vpack.c.bf16 %v1997_v42, %v1995_v47  ;;  %v2010_v55 = vmul.f32 %v4118_v13, %v2006_v56  ;;  %v2011_v4 = vmul.f32 %v4105_v16, %v2008_v63 }
 0x871   : > { %v2007_v62 = vsel %vm958_vm12, %v2001_v17, %v2005_v43  ;;  %v2009_v8 = vsel %vm958_vm12, %v2005_v43, %v2001_v17  ;;  %v3103_v17 = vld [vmem:[%s5070_s14] ss:$8 sps:$4 sm:$0xff]  }
 0x872   : > { %v2012_v46 = vmul.f32 %v4118_v13, %v2007_v62  ;;  %v2013_v15 = vmul.f32 %v4105_v16, %v2009_v8  ;;  %2068 = vmatprep.subr.bf16.mxu0 %v4386_v14  ;;  %v3106_v8 = vld [vmem:[%s5072_s16 + $0x4] ss:$12 sps:$4 sm:$0xff]  }
 0x873   : > { %2069 = vmatpush1.bf16.msra.mxu0 %v4384_v30 }
 0x874   : > { %v4398_v19 = vpack.c.bf16 %v2012_v46, %v2010_v55  ;;  %v4400_v5 = vpack.c.bf16 %v2013_v15, %v2011_v4  ;;  %v2105_v55 = vld [vmem:[%s5073_s17] sm:$0xff]  ;;  %v2106_v4 = vld [vmem:[%s5073_s17 + $0x8] sm:$0xff] }
 0x875   : > { %v2373_v46 = vld [vmem:[%s5075_s19] sm:$0xff]  ;;  %v2374_v15 = vld [vmem:[%s5075_s19 + $0x8] sm:$0xff] }
 0x876   : > { %2070 = vmatprep.subr.bf16.mxu0 %v4400_v5 }
 0x877   : > { %2071 = vmatpush1.bf16.msra.mxu0 %v4398_v19 }
 0x878   : > { %2281 = vmatprep.subr.bf16.mxu0 %v4264_v11 }
 0x87a   : > { %2087 = vmatmul.mubr.bf16.vlgmr.msra.gmra.mrb[4].mxu0 %v3103_v17  ;;  %v2444_v17 = vld [vmem:[%s5077_s21] sm:$0xff] }
 0x87b   : > { %2282 = vmatpush1.bf16.msra.mxu0 %v4262_v38  ;;  %2313 = vmatprep.mubr.bf16.mxu0 %v3106_v8 }
 0x87f   : > { %v2035_v12 = vpop.permute.xlu0 %2034 }
 0x881   : > { %v2040_v60 = vpop.permute.xlu1 %2039 }
 0x94d   : > { %v2088_v9 = vpop.f32.mrb[4].mxu0 }
 0x94e   : > { %v2089_v59 = vadd.f32 %v2088_v9, %v2035_v12  ;;  %v2090_v7 = vpop.f32.mrb[5].mxu0 }
 0x94f   : > { %v2091_v40 = vadd.f32 %v2090_v7, %v2035_v12  ;;  %v2092_v47 = vpop.f32.mrb[6].mxu0  ;;  %v2445_v12 = vld [vmem:[%s5077_s21 + $0x8] sm:$0xff] }
 0x950   : > { %v2097_v41 = vmax.f32 %v2089_v59, 0.0  ;;  %v2093_v42 = vadd.f32 %v2092_v47, %v2040_v60  ;;  %v2094_v58 = vpop.f32.mrb[7].mxu0 }
 0x951   : > { %v2095_v56 = vadd.f32 %v2094_v58, %v2040_v60  ;;  %v2098_v43 = vmax.f32 %v2091_v40, 0.0 }
 0x952   : > { %v2099_v63 = vmax.f32 %v2093_v42, 0.0  ;;  %2107 = vrot.lane.b32.xlu0 %v2097_v41, %s5145_s7 }
 0x953   : > { %v2100_v62 = vmax.f32 %v2095_v56, 0.0 }
 0x954   : > { %2109 = vrot.lane.b32.xlu1 %v2099_v63, %s5145_s7  ;;  %v4411_v11 = vpack.c.bf16 %v2099_v63, %v2097_v41 }
 0x955   : > { %v4413_v38 = vpack.c.bf16 %v2100_v62, %v2098_v43 }
 0x956   : > { %2111 = vrot.lane.b32.xlu0 %v2098_v43, %s5145_s7 }
 0x957   : > { %2397 = vmatprep.subr.bf16.mxu1 %v4413_v38 }
 0x958   : > { %2113 = vrot.lane.b32.xlu1 %v2100_v62, %s5145_s7  ;;  %2398 = vmatpush1.bf16.msra.mxu1 %v4411_v11 }
 0x95a   : > { %2123 = vrot.lane.b32.xlu0 %v2097_v41, %s5146_s28 }
 0x95c   : > { %2125 = vrot.lane.b32.xlu1 %v2099_v63, %s5146_s28 }
 0x95e   : > { %2127 = vrot.lane.b32.xlu0 %v2098_v43, %s5146_s28 }
 0x960   : > { %2129 = vrot.lane.b32.xlu1 %v2100_v62, %s5146_s28 }
 0x962   : > { %2139 = vrot.lane.b32.xlu0 %v2097_v41, %s5140_s9 }
 0x964   : > { %2141 = vrot.lane.b32.xlu1 %v2099_v63, %s5140_s9 }
 0x966   : > { %2143 = vrot.lane.b32.xlu0 %v2098_v43, %s5140_s9 }
 0x968   : > { %2145 = vrot.lane.b32.xlu1 %v2100_v62, %s5140_s9 }
 0x96a   : > { %2155 = vrot.lane.b32.xlu0 %v2097_v41, %s5141_s30 }
 0x96c   : > { %2157 = vrot.lane.b32.xlu1 %v2099_v63, %s5141_s30 }
 0x96e   : > { %2159 = vrot.lane.b32.xlu0 %v2098_v43, %s5141_s30 }
 0x970   : > { %2161 = vrot.lane.b32.xlu1 %v2100_v62, %s5141_s30 }
 0x972   : > { %2171 = vrot.lane.b32.xlu0 %v2097_v41, %s5142_s6 }
 0x974   : > { %2173 = vrot.lane.b32.xlu1 %v2099_v63, %s5142_s6 }
 0x976   : > { %2175 = vrot.lane.b32.xlu0 %v2098_v43, %s5142_s6 }
 0x978   : > { %2177 = vrot.lane.b32.xlu1 %v2100_v62, %s5142_s6 }
 0x97a   : > { %2187 = vrot.lane.b32.xlu0 %v2097_v41, %s5151_s3 }
 0x97c   : > { %2189 = vrot.lane.b32.xlu1 %v2099_v63, %s5151_s3 }
 0x97e   : > { %2191 = vrot.lane.b32.xlu0 %v2098_v43, %s5151_s3 }
 0x980   : > { %2193 = vrot.lane.b32.xlu1 %v2100_v62, %s5151_s3 }
 0x982   : > { %2203 = vrot.lane.b32.xlu0 %v2097_v41, %s5152_s8 }
 0x984   : > { %2205 = vrot.lane.b32.xlu1 %v2099_v63, %s5152_s8 }
 0x986   : > { %2207 = vrot.lane.b32.xlu0 %v2098_v43, %s5152_s8 }
 0x988   : > { %2209 = vrot.lane.b32.xlu1 %v2100_v62, %s5152_s8 }
 0x98a   : > { %2219 = vrot.lane.b32.xlu0 %v2097_v41, %s5137_s10 }
 0x98c   : > { %2221 = vrot.lane.b32.xlu1 %v2099_v63, %s5137_s10 }
 0x98e   : > { %2223 = vrot.lane.b32.xlu0 %v2098_v43, %s5137_s10 }
 0x990   : > { %2225 = vrot.lane.b32.xlu1 %v2100_v62, %s5137_s10 }
 0x992   : > { %2255 = vperm.xlu0 %3087, %v2105_v55  }
 0x994   : > { %2260 = vperm.xlu1 %3088, %v2106_v4  }
 0x996   : > { %2379 = vperm.xlu0 %3087, %v2373_v46  }
 0x998   : > { %2384 = vperm.xlu1 %3088, %v2374_v15  }
 0x99a   : > { %2450 = vperm.xlu0 %3087, %v2444_v17  }
 0x99c   : > { %2455 = vperm.xlu1 %3088, %v2445_v12  }
 0x9c4   : > { %v2108_v9 = vpop.permute.xlu0 %2107 }
 0x9c6   : > { %v2110_v59 = vpop.permute.xlu1 %2109 }
 0x9c8   : > { %v2112_v7 = vpop.permute.xlu0 %2111 }
 0x9c9   : > { %v2115_v60 = vsel %vm839_vm2, %v2108_v9, %v2112_v7  ;;  %v2117_v40 = vsel %vm839_vm2, %v2112_v7, %v2108_v9 }
 0x9ca   : > { %v2114_v47 = vpop.permute.xlu1 %2113  ;;  %v2119_v58 = vmul.f32 %v2117_v40, %v3396_v53  ;;  %v2120_v56 = vmul.f32 %v2115_v60, %v3399_v54 }
 0x9cb   : > { %v2116_v41 = vsel %vm839_vm2, %v2110_v59, %v2114_v47  ;;  %v2118_v42 = vsel %vm839_vm2, %v2114_v47, %v2110_v59 }
 0x9cc   : > { %v2121_v63 = vmul.f32 %v2118_v42, %v3396_v53  ;;  %v2122_v43 = vmul.f32 %v2116_v41, %v3399_v54  ;;  %v2124_v62 = vpop.permute.xlu0 %2123 }
 0x9ce   : > { %v2235_v8 = vpack.c.bf16 %v2121_v63, %v2119_v58  ;;  %v2126_v55 = vpop.permute.xlu1 %2125  ;;  %v2236_v4 = vpack.c.bf16 %v2122_v43, %v2120_v56 }
 0x9d0   : > { %2283 = vmatprep.subr.bf16.mxu0 %v2236_v4  ;;  %v2128_v46 = vpop.permute.xlu0 %2127 }
 0x9d1   : > { %v2131_v15 = vsel %vm856_vm3, %v2124_v62, %v2128_v46  ;;  %v2133_v17 = vsel %vm856_vm3, %v2128_v46, %v2124_v62  ;;  %2284 = vmatpush1.bf16.msra.mxu0 %v2235_v8 }
 0x9d2   : > { %v2130_v12 = vpop.permute.xlu1 %2129  ;;  %2285 = vmatprep.subr.bf16.mxu0 %v4282_v2  ;;  %v2135_v7 = vmul.f32 %v2133_v17, %v3384_v48  ;;  %v2136_v60 = vmul.f32 %v2131_v15, %v3387_v49 }
 0x9d3   : > { %v2132_v9 = vsel %vm856_vm3, %v2126_v55, %v2130_v12  ;;  %v2134_v59 = vsel %vm856_vm3, %v2130_v12, %v2126_v55 }
 0x9d4   : > { %v2137_v40 = vmul.f32 %v2134_v59, %v3384_v48  ;;  %v2138_v47 = vmul.f32 %v2132_v9, %v3387_v49  ;;  %v2140_v41 = vpop.permute.xlu0 %2139 }
 0x9d5   : > { %2286 = vmatpush1.bf16.msra.mxu0 %v4280_v45 }
 0x9d6   : > { %v2237_v42 = vpack.c.bf16 %v2137_v40, %v2135_v7  ;;  %v2142_v58 = vpop.permute.xlu1 %2141  ;;  %v2238_v2 = vpack.c.bf16 %v2138_v47, %v2136_v60 }
 0x9d8   : > { %2287 = vmatprep.subr.bf16.mxu0 %v2238_v2  ;;  %v2144_v56 = vpop.permute.xlu0 %2143 }
 0x9d9   : > { %v2147_v63 = vsel %vm873_vm1, %v2140_v41, %v2144_v56  ;;  %v2149_v43 = vsel %vm873_vm1, %v2144_v56, %v2140_v41  ;;  %2288 = vmatpush1.bf16.msra.mxu0 %v2237_v42 }
 0x9da   : > { %v2146_v62 = vpop.permute.xlu1 %2145  ;;  %2289 = vmatprep.subr.bf16.mxu0 %v4300_v61  ;;  %v2151_v55 = vmul.f32 %v2149_v43, %v3357_v32  ;;  %v2152_v4 = vmul.f32 %v2147_v63, %v3360_v33 }
 0x9db   : > { %v2148_v8 = vsel %vm873_vm1, %v2142_v58, %v2146_v62  ;;  %v2150_v45 = vsel %vm873_vm1, %v2146_v62, %v2142_v58 }
 0x9dc   : > { %v2153_v46 = vmul.f32 %v2150_v45, %v3357_v32  ;;  %v2154_v15 = vmul.f32 %v2148_v8, %v3360_v33  ;;  %v2156_v17 = vpop.permute.xlu0 %2155 }
 0x9dd   : > { %2290 = vmatpush1.bf16.msra.mxu0 %v4298_v20 }
 0x9de   : > { %v2239_v12 = vpack.c.bf16 %v2153_v46, %v2151_v55  ;;  %v2158_v9 = vpop.permute.xlu1 %2157  ;;  %v2240_v61 = vpack.c.bf16 %v2154_v15, %v2152_v4 }
 0x9e0   : > { %2291 = vmatprep.subr.bf16.mxu0 %v2240_v61  ;;  %v2160_v59 = vpop.permute.xlu0 %2159 }
 0x9e1   : > { %v2163_v7 = vsel %vm890_vm0, %v2156_v17, %v2160_v59  ;;  %v2165_v60 = vsel %vm890_vm0, %v2160_v59, %v2156_v17  ;;  %2292 = vmatpush1.bf16.msra.mxu0 %v2239_v12 }
 0x9e2   : > { %v2162_v40 = vpop.permute.xlu1 %2161  ;;  %2293 = vmatprep.subr.bf16.mxu0 %v4314_v10  ;;  %v2167_v41 = vmul.f32 %v2165_v60, %v3351_v28  ;;  %v2168_v42 = vmul.f32 %v2163_v7, %v3354_v29 }
 0x9e3   : > { %v2164_v47 = vsel %vm890_vm0, %v2158_v9, %v2162_v40  ;;  %v2166_v20 = vsel %vm890_vm0, %v2162_v40, %v2158_v9 }
 0x9e4   : > { %v2169_v58 = vmul.f32 %v2166_v20, %v3351_v28  ;;  %v2170_v2 = vmul.f32 %v2164_v47, %v3354_v29  ;;  %v2172_v56 = vpop.permute.xlu0 %2171 }
 0x9e5   : > { %2294 = vmatpush1.bf16.msra.mxu0 %v4312_v39 }
 0x9e6   : > { %v2241_v63 = vpack.c.bf16 %v2169_v58, %v2167_v41  ;;  %v2174_v43 = vpop.permute.xlu1 %2173  ;;  %v2242_v10 = vpack.c.bf16 %v2170_v2, %v2168_v42 }
 0x9e8   : > { %2295 = vmatprep.subr.bf16.mxu0 %v2242_v10  ;;  %v2176_v62 = vpop.permute.xlu0 %2175 }
 0x9e9   : > { %2296 = vmatpush1.bf16.msra.mxu0 %v2241_v63  ;;  %v2181_v39 = vsel %vm907_vm4, %v2176_v62, %v2172_v56  ;;  %v2179_v12 = vsel %vm907_vm4, %v2172_v56, %v2176_v62 }
 0x9ea   : > { %v2178_v8 = vpop.permute.xlu1 %2177  ;;  %2297 = vmatprep.subr.bf16.mxu0 %v4156_v34  ;;  %v2184_v9 = vmul.f32 %v2181_v39, %v3393_v51  ;;  %v2183_v60 = vmul.f32 %v2179_v12, %v3390_v50 }
 0x9eb   : > { %v2182_v55 = vsel %vm907_vm4, %v2178_v8, %v2174_v43  ;;  %v2180_v46 = vsel %vm907_vm4, %v2174_v43, %v2178_v8 }
 0x9ec   : > { %v2188_v45 = vpop.permute.xlu0 %2187  ;;  %v2186_v15 = vmul.f32 %v2182_v55, %v3393_v51 }
 0x9ed   : > { %2298 = vmatpush1.bf16.msra.mxu0 %v4162_v27 }
 0x9ee   : > { %v2190_v4 = vpop.permute.xlu1 %2189  ;;  %2299 = vmatprep.subr.bf16.mxu0 %v4413_v38  ;;  %v2185_v38 = vmul.f32 %v2180_v46, %v3390_v50  ;;  %v2246_v7 = vpack.c.bf16 %v2186_v15, %v2184_v9 }
 0x9f0   : > { %v2192_v17 = vpop.permute.xlu0 %2191  ;;  %v2245_v47 = vpack.c.bf16 %v2185_v38, %v2183_v60  ;;  %v3104_v60 = vld [vmem:[%s5072_s16] ss:$12 sps:$4 sm:$0xff]  }
 0x9f1   : > { %2300 = vmatpush1.bf16.msra.mxu0 %v4411_v11  ;;  %v2197_v20 = vsel %vm924_vm5, %v2192_v17, %v2188_v45  ;;  %v2195_v58 = vsel %vm924_vm5, %v2188_v45, %v2192_v17 }
 0x9f2   : > { %v2194_v61 = vpop.permute.xlu1 %2193  ;;  %2301 = vmatprep.subr.bf16.mxu0 %v4344_v26  ;;  %v2200_v2 = vmul.f32 %v2197_v20, %v3420_v6  ;;  %v2199_v43 = vmul.f32 %v2195_v58, %v3406_v57 }
 0x9f3   : > { %v2198_v40 = vsel %vm924_vm5, %v2194_v61, %v2190_v4  ;;  %v2196_v26 = vsel %vm924_vm5, %v2190_v4, %v2194_v61 }
 0x9f4   : > { %v2204_v59 = vpop.permute.xlu0 %2203  ;;  %v2202_v41 = vmul.f32 %v2198_v40, %v3420_v6 }
 0x9f5   : > { %2302 = vmatpush1.bf16.msra.mxu0 %v4342_v25  ;;  %v2201_v25 = vmul.f32 %v2196_v26, %v3406_v57 }
 0x9f6   : > { %v2206_v11 = vpop.permute.xlu1 %2205  ;;  %2303 = vmatprep.subr.bf16.mxu0 %v2246_v7  ;;  %v2248_v63 = vpack.c.bf16 %v2202_v41, %v2200_v2  ;;  %v3107_v41 = vld [vmem:[%s5072_s16 + $0x8] ss:$12 sps:$4 sm:$0xff]  }
 0x9f7   : > { %v2247_v55 = vpack.c.bf16 %v2201_v25, %v2199_v43 }
 0x9f8   : > { %v2208_v42 = vpop.permute.xlu0 %2207 }
 0x9f9   : > { %2304 = vmatpush1.bf16.msra.mxu0 %v2245_v47  ;;  %v2213_v45 = vsel %vm941_vm7, %v2208_v42, %v2204_v59  ;;  %v2211_v39 = vsel %vm941_vm7, %v2204_v59, %v2208_v42 }
 0x9fa   : > { %v2210_v56 = vpop.permute.xlu1 %2209  ;;  %2305 = vmatprep.subr.bf16.mxu0 %v4366_v37  ;;  %v2216_v46 = vmul.f32 %v2213_v45, %v3437_v23  ;;  %v2215_v9 = vmul.f32 %v2211_v39, %v3434_v22 }
 0x9fb   : > { %v2214_v10 = vsel %vm941_vm7, %v2210_v56, %v2206_v11  ;;  %v2212_v37 = vsel %vm941_vm7, %v2206_v11, %v2210_v56 }
 0x9fc   : > { %v2220_v62 = vpop.permute.xlu0 %2219  ;;  %v2218_v4 = vmul.f32 %v2214_v10, %v3437_v23 }
 0x9fd   : > { %2306 = vmatpush1.bf16.msra.mxu0 %v4364_v44  ;;  %v2217_v44 = vmul.f32 %v2212_v37, %v3434_v22  ;;  %v3108_v37 = vld [vmem:[%s5074_s18] sm:$0xff]  }
 0x9fe   : > { %v2222_v8 = vpop.permute.xlu1 %2221  ;;  %2307 = vmatprep.subr.bf16.mxu0 %v2248_v63  ;;  %v2250_v12 = vpack.c.bf16 %v2218_v4, %v2216_v46 }
 0x9ff   : > { %v2249_v38 = vpack.c.bf16 %v2217_v44, %v2215_v9 }
 0xa00   : > { %v2224_v17 = vpop.permute.xlu0 %2223 }
 0xa01   : > { %2308 = vmatpush1.bf16.msra.mxu0 %v2247_v55  ;;  %v2229_v59 = vsel %vm958_vm12, %v2224_v17, %v2220_v62  ;;  %v2227_v40 = vsel %vm958_vm12, %v2220_v62, %v2224_v17 }
 0xa02   : > { %v2226_v15 = vpop.permute.xlu1 %2225  ;;  %2309 = vmatprep.subr.bf16.mxu0 %v4386_v14  ;;  %v2231_v20 = vmul.f32 %v4118_v13, %v2227_v40 }
 0xa03   : > { %v2230_v61 = vsel %vm958_vm12, %v2226_v15, %v2222_v8  ;;  %v2228_v7 = vsel %vm958_vm12, %v2222_v8, %v2226_v15 }
 0xa04   : > { %v2234_v14 = vmul.f32 %v4105_v16, %v2230_v61  ;;  %v2233_v11 = vmul.f32 %v4118_v13, %v2228_v7 }
 0xa05   : > { %2310 = vmatpush1.bf16.msra.mxu0 %v4384_v30  ;;  %v2232_v30 = vmul.f32 %v4105_v16, %v2229_v59 }
 0xa06   : > { %2311 = vmatprep.subr.bf16.mxu0 %v2250_v12  ;;  %v2251_v26 = vpack.c.bf16 %v2233_v11, %v2231_v20 }
 0xa07   : > { %v2252_v47 = vpack.c.bf16 %v2234_v14, %v2232_v30 }
 0xa09   : > { %2312 = vmatpush1.bf16.msra.mxu0 %v2249_v38 }
 0xa0a   : > { %2324 = vmatprep.subr.bf16.mxu0 %v4400_v5 }
 0xa0c   : > { %2314 = vmatmul.mubr.bf16.vlgmr.msra.gmra.mrb[8].mxu0 %v3104_v60  ;;  %v3109_v60 = vld [vmem:[%s5076_s20] sm:$0xff]  }
 0xa0d   : > { %2325 = vmatpush1.bf16.msra.mxu0 %v4398_v19  ;;  %2356 = vmatprep.mubr.bf16.mxu0 %v3128_v1 }
 0xa0e   : > { %2326 = vmatprep.subr.bf16.mxu0 %v2252_v47 }
 0xa11   : > { %2327 = vmatpush1.bf16.msra.mxu0 %v2251_v26  ;;  %v2256_v16 = vpop.permute.xlu0 %2255 }
 0xa13   : > { %v2261_v2 = vpop.permute.xlu1 %2260 }
 0xa15   : > { %v2380_v4 = vpop.permute.xlu0 %2379 }
 0xa17   : > { %v2385_v44 = vpop.permute.xlu1 %2384 }
 0xa18   : > { %3037 = vmatmul.mubr.msk.bf16.vlgmr.msra.gmra.mrb[8].mxu0 %vm1716_vm8, %v3107_v41 }
 0xa19   : > { %v2451_v40 = vpop.permute.xlu0 %2450 }
 0xaeb   : > { %v2358_v5 = vpop.f32.mrb[8].mxu0 }
 0xaec   : > { %v3056_v42 = vadd.f32 %v2358_v5, %v2256_v16  ;;  %v2360_v58 = vpop.f32.mrb[9].mxu0  ;;  %v3110_v5 = vld [vmem:[%s5078_s22 + $0x4] ss:$8 sps:$4 sm:$0xff]  }
 0xaed   : > { %v3057_v56 = vadd.f32 %v2360_v58, %v2256_v16  ;;  %v2362_v13 = vpop.f32.mrb[10].mxu0  ;;  %v2512_v58 = vld [vmem:[%s5079_s23 + $0x8] sm:$0xff] }
 0xaee   : > { %v3058_v25 = vadd.f32 %v2362_v13, %v2261_v2  ;;  %v2364_v19 = vpop.f32.mrb[11].mxu0  ;;  %v2367_v43 = vmax.f32 %v3056_v42, 0.0  ;;  %v2511_v42 = vld [vmem:[%s5079_s23] sm:$0xff] }
 0xaef   : > { %v3059_v63 = vadd.f32 %v2364_v19, %v2261_v2  ;;  %v2368_v62 = vmax.f32 %v3057_v56, 0.0 }
 0xaf0   : > { %v2369_v10 = vmax.f32 %v3058_v25, 0.0 }
 0xaf1   : > { %v2370_v8 = vmax.f32 %v3059_v63, 0.0 }
 0xaf2   : > { %v2375_v55 = vpack.c.bf16 %v2369_v10, %v2367_v43 }
 0xaf3   : > { %v2376_v45 = vpack.c.bf16 %v2370_v8, %v2368_v62 }
 0xaf5   : > { %2399 = vmatprep.subr.bf16.mxu1 %v2376_v45 }
 0xaf6   : > { %2400 = vmatpush1.bf16.msra.mxu1 %v2375_v55 }
 0xaf7   : > { %2466 = vmatprep.subr.bf16.mxu1 %v4156_v34 }
 0xaf9   : > { %3039 = vmatmul.mubr.msk.bf16.vlgmr.msra.gmra.mrb[16].mxu1 %vm1831_vm9, %v3108_v37 }
 0xafa   : > { %2467 = vmatpush1.bf16.msra.mxu1 %v4162_v27  ;;  %2498 = vmatprep.mubr.bf16.mxu1 %v3128_v1 }
 0xbcc   : > { %v2429_v39 = vpop.f32.mrb[16].mxu1 }
 0xbcd   : > { %v2430_v46 = vadd.f32 %v2429_v39, %v2380_v4  ;;  %v2431_v15 = vpop.f32.mrb[17].mxu1 }
 0xbce   : > { %v2432_v17 = vadd.f32 %v2431_v15, %v2380_v4  ;;  %v2433_v12 = vpop.f32.mrb[18].mxu1 }
 0xbcf   : > { %v2434_v9 = vadd.f32 %v2433_v12, %v2385_v44  ;;  %v2435_v61 = vpop.f32.mrb[19].mxu1  ;;  %v2438_v59 = vadd.f32 %v2430_v46, %v4139_v3 }
 0xbd0   : > { %v2436_v38 = vadd.f32 %v2435_v61, %v2385_v44  ;;  %v2439_v7 = vadd.f32 %v2432_v17, %v4147_v18 }
 0xbd1   : > { %v2440_v34 = vadd.f32 %v2434_v9, %v4142_v0  ;;  %v2456_v0 = vpop.permute.xlu1 %2455 }
 0xbd2   : > { %v2441_v27 = vadd.f32 %v2436_v38, %v4150_v52 }
 0xbd3   : > { %v2446_v14 = vpack.c.bf16 %v2440_v34, %v2438_v59 }
 0xbd4   : > { %v2447_v1 = vpack.c.bf16 %v2441_v27, %v2439_v7 }
 0xbd6   : > { %2468 = vmatprep.subr.bf16.mxu1 %v2447_v1 }
 0xbd7   : > { %2469 = vmatpush1.bf16.msra.mxu1 %v2446_v14 }
 0xbda   : > { %3041 = vmatmul.mubr.msk.bf16.vlgmr.msra.gmra.mrb[20].mxu1 %vm1716_vm8, %v3109_v60 }
 0xbdb   : > { %3044 = vmatprep.mubr.msk.bf16.mxu1 %vm1273_vm6, %v3110_v5 }
 0xcad   : > { %v2500_v30 = vpop.f32.mrb[20].mxu1 }
 0xcae   : > { %v4605_v11 = vadd.f32 %v2500_v30, %v2451_v40  ;;  %v2502_v3 = vpop.f32.mrb[21].mxu1 }
 0xcaf   : > { %v2504_v47 = vpop.f32.mrb[22].mxu1  ;;  %v4611_v20 = vadd.f32 %v2502_v3, %v2451_v40 }
 0xcb0   : > { %v4607_v18 = vadd.f32 %v2504_v47, %v2456_v0  ;;  %v2506_v52 = vpop.f32.mrb[23].mxu1  ;;  %2513 = vrot.lane.b32.xlu0 %v4605_v11, %s5145_s7 }
 0xcb1   : > { %v4613_v26 = vadd.f32 %v2506_v52, %v2456_v0 }
 0xcb2   : > { %2515 = vrot.lane.b32.xlu1 %v4607_v18, %s5145_s7  ;;  %v2649_v41 = vpack.c.bf16 %v4607_v18, %v4605_v11 }
 0xcb3   : > { %v2650_v16 = vpack.c.bf16 %v4613_v26, %v4611_v20 }
 0xcb4   : > { %2529 = vrot.lane.b32.xlu0 %v4605_v11, %s5146_s28 }
 0xcb6   : > { %2531 = vrot.lane.b32.xlu1 %v4607_v18, %s5146_s28 }
 0xcb8   : > { %2545 = vrot.lane.b32.xlu0 %v4605_v11, %s5140_s9 }
 0xcba   : > { %2547 = vrot.lane.b32.xlu1 %v4607_v18, %s5140_s9 }
 0xcbc   : > { %2561 = vrot.lane.b32.xlu0 %v4605_v11, %s5141_s30 }
 0xcbe   : > { %2563 = vrot.lane.b32.xlu1 %v4607_v18, %s5141_s30 }
 0xcc0   : > { %2577 = vrot.lane.b32.xlu0 %v4605_v11, %s5142_s6 }
 0xcc2   : > { %2579 = vrot.lane.b32.xlu1 %v4607_v18, %s5142_s6 }
 0xcc4   : > { %2593 = vrot.lane.b32.xlu0 %v4605_v11, %s5151_s3 }
 0xcc6   : > { %2595 = vrot.lane.b32.xlu1 %v4607_v18, %s5151_s3 }
 0xcc8   : > { %2609 = vrot.lane.b32.xlu0 %v4605_v11, %s5152_s8 }
 0xcca   : > { %2611 = vrot.lane.b32.xlu1 %v4607_v18, %s5152_s8 }
 0xccc   : > { %2517 = vrot.lane.b32.xlu0 %v4611_v20, %s5145_s7 }
 0xcce   : > { %2519 = vrot.lane.b32.xlu1 %v4613_v26, %s5145_s7 }
 0xcd0   : > { %2533 = vrot.lane.b32.xlu0 %v4611_v20, %s5146_s28 }
 0xcd2   : > { %2535 = vrot.lane.b32.xlu1 %v4613_v26, %s5146_s28 }
 0xcd4   : > { %2549 = vrot.lane.b32.xlu0 %v4611_v20, %s5140_s9 }
 0xcd6   : > { %2551 = vrot.lane.b32.xlu1 %v4613_v26, %s5140_s9 }
 0xcd8   : > { %2565 = vrot.lane.b32.xlu0 %v4611_v20, %s5141_s30 }
 0xcda   : > { %2567 = vrot.lane.b32.xlu1 %v4613_v26, %s5141_s30 }
 0xcdc   : > { %2625 = vrot.lane.b32.xlu0 %v4605_v11, %s5137_s10 }
 0xcde   : > { %2627 = vrot.lane.b32.xlu1 %v4607_v18, %s5137_s10 }
 0xce0   : > { %2581 = vrot.lane.b32.xlu0 %v4611_v20, %s5142_s6 }
 0xce2   : > { %2583 = vrot.lane.b32.xlu1 %v4613_v26, %s5142_s6 }
 0xce4   : > { %2597 = vrot.lane.b32.xlu0 %v4611_v20, %s5151_s3 }
 0xce6   : > { %2599 = vrot.lane.b32.xlu1 %v4613_v26, %s5151_s3 }
 0xce8   : > { %2613 = vrot.lane.b32.xlu0 %v4611_v20, %s5152_s8 }
 0xcea   : > { %2615 = vrot.lane.b32.xlu1 %v4613_v26, %s5152_s8 }
 0xcec   : > { %2629 = vrot.lane.b32.xlu0 %v4611_v20, %s5137_s10 }
 0xcee   : > { %2631 = vrot.lane.b32.xlu1 %v4613_v26, %s5137_s10 }
 0xcf0   : > { %2661 = vperm.xlu0 %3087, %v2511_v42  }
 0xcf2   : > { %2666 = vperm.xlu1 %3088, %v2512_v58  }
 0xd22   : > { %v2514_v2 = vpop.permute.xlu0 %2513 }
 0xd24   : > { %v2516_v56 = vpop.permute.xlu1 %2515 }
 0xd26   : > { %v2530_v13 = vpop.permute.xlu0 %2529 }
 0xd28   : > { %v2532_v25 = vpop.permute.xlu1 %2531 }
 0xd2a   : > { %v2546_v19 = vpop.permute.xlu0 %2545 }
 0xd2c   : > { %v2548_v63 = vpop.permute.xlu1 %2547 }
 0xd2e   : > { %v2562_v43 = vpop.permute.xlu0 %2561 }
 0xd30   : > { %v2564_v10 = vpop.permute.xlu1 %2563 }
 0xd32   : > { %v4691_v62 = vpop.permute.xlu0 %2577 }
 0xd34   : > { %v4693_v8 = vpop.permute.xlu1 %2579 }
 0xd36   : > { %v4695_v55 = vpop.permute.xlu0 %2593 }
 0xd38   : > { %v4697_v45 = vpop.permute.xlu1 %2595 }
 0xd3a   : > { %v4699_v37 = vpop.permute.xlu0 %2609 }
 0xd3c   : > { %v4701_v4 = vpop.permute.xlu1 %2611 }
 0xd3e   : > { %v2518_v39 = vpop.permute.xlu0 %2517 }
 0xd3f   : > { %v2521_v46 = vsel %vm839_vm2, %v2514_v2, %v2518_v39  ;;  %v2523_v15 = vsel %vm839_vm2, %v2518_v39, %v2514_v2 }
 0xd40   : > { %v2520_v44 = vpop.permute.xlu1 %2519  ;;  %v2525_v9 = vmul.f32 %v2523_v15, %v3396_v53  ;;  %v2526_v61 = vmul.f32 %v2521_v46, %v3399_v54 }
 0xd41   : > { %v2522_v17 = vsel %vm839_vm2, %v2516_v56, %v2520_v44  ;;  %v2524_v12 = vsel %vm839_vm2, %v2520_v44, %v2516_v56 }
 0xd42   : > { %v2527_v38 = vmul.f32 %v2524_v12, %v3396_v53  ;;  %v2528_v59 = vmul.f32 %v2522_v17, %v3399_v54  ;;  %v2534_v34 = vpop.permute.xlu0 %2533 }
 0xd43   : > { %v2537_v7 = vsel %vm856_vm3, %v2530_v13, %v2534_v34  ;;  %v2539_v27 = vsel %vm856_vm3, %v2534_v34, %v2530_v13 }
 0xd44   : > { %v2641_v14 = vpack.c.bf16 %v2527_v38, %v2525_v9  ;;  %v2536_v1 = vpop.permute.xlu1 %2535  ;;  %v2642_v60 = vpack.c.bf16 %v2528_v59, %v2526_v61  ;;  %v2541_v3 = vmul.f32 %v2539_v27, %v3384_v48  ;;  %v2542_v0 = vmul.f32 %v2537_v7, %v3387_v49 }
 0xd45   : > { %v2538_v40 = vsel %vm856_vm3, %v2532_v25, %v2536_v1  ;;  %v2540_v30 = vsel %vm856_vm3, %v2536_v1, %v2532_v25 }
 0xd46   : > { %v2543_v47 = vmul.f32 %v2540_v30, %v3384_v48  ;;  %v2544_v52 = vmul.f32 %v2538_v40, %v3387_v49  ;;  %2681 = vmatprep.subr.bf16.mxu1 %v2642_v60  ;;  %v2550_v5 = vpop.permute.xlu0 %2549 }
 0xd47   : > { %v2553_v42 = vsel %vm873_vm1, %v2546_v19, %v2550_v5  ;;  %v2555_v58 = vsel %vm873_vm1, %v2550_v5, %v2546_v19  ;;  %2682 = vmatpush1.bf16.msra.mxu1 %v2641_v14 }
 0xd48   : > { %v2643_v2 = vpack.c.bf16 %v2543_v47, %v2541_v3  ;;  %v2552_v56 = vpop.permute.xlu1 %2551  ;;  %v2644_v13 = vpack.c.bf16 %v2544_v52, %v2542_v0  ;;  %v2557_v46 = vmul.f32 %v2555_v58, %v3357_v32  ;;  %v2558_v15 = vmul.f32 %v2553_v42, %v3360_v33 }
 0xd49   : > { %v2554_v25 = vsel %vm873_vm1, %v2548_v63, %v2552_v56  ;;  %v2556_v39 = vsel %vm873_vm1, %v2552_v56, %v2548_v63 }
 0xd4a   : > { %v2559_v44 = vmul.f32 %v2556_v39, %v3357_v32  ;;  %v2560_v17 = vmul.f32 %v2554_v25, %v3360_v33  ;;  %2683 = vmatprep.subr.bf16.mxu1 %v2644_v13  ;;  %v2566_v19 = vpop.permute.xlu0 %2565 }
 0xd4b   : > { %v2569_v12 = vsel %vm890_vm0, %v2562_v43, %v2566_v19  ;;  %v2571_v9 = vsel %vm890_vm0, %v2566_v19, %v2562_v43  ;;  %2684 = vmatpush1.bf16.msra.mxu1 %v2643_v2 }
 0xd4c   : > { %v2645_v61 = vpack.c.bf16 %v2559_v44, %v2557_v46  ;;  %v2568_v38 = vpop.permute.xlu1 %2567  ;;  %v2646_v63 = vpack.c.bf16 %v2560_v17, %v2558_v15  ;;  %v2573_v7 = vmul.f32 %v2571_v9, %v3351_v28  ;;  %v2574_v27 = vmul.f32 %v2569_v12, %v3354_v29 }
 0xd4d   : > { %v2570_v59 = vsel %vm890_vm0, %v2564_v10, %v2568_v38  ;;  %v2572_v34 = vsel %vm890_vm0, %v2568_v38, %v2564_v10 }
 0xd4e   : > { %v2575_v14 = vmul.f32 %v2572_v34, %v3351_v28  ;;  %v2576_v1 = vmul.f32 %v2570_v59, %v3354_v29  ;;  %2685 = vmatprep.subr.bf16.mxu1 %v2646_v63  ;;  %v2626_v43 = vpop.permute.xlu0 %2625 }
 0xd4f   : > { %2686 = vmatpush1.bf16.msra.mxu1 %v2645_v61 }
 0xd50   : > { %v2647_v60 = vpack.c.bf16 %v2575_v14, %v2573_v7  ;;  %v2628_v40 = vpop.permute.xlu1 %2627  ;;  %v2648_v30 = vpack.c.bf16 %v2576_v1, %v2574_v27 }
 0xd52   : > { %2687 = vmatprep.subr.bf16.mxu1 %v2648_v30  ;;  %v2582_v3 = vpop.permute.xlu0 %2581  ;;  %v4816_v30 = vld [vmem:[%s5135_s0 + $0x10] ss:$0 sm:$0xff] }
 0xd53   : > { %v2585_v10 = vsel %vm907_vm4, %v4691_v62, %v2582_v3  ;;  %v2587_v0 = vsel %vm907_vm4, %v2582_v3, %v4691_v62  ;;  %2688 = vmatpush1.bf16.msra.mxu1 %v2647_v60 }
 0xd54   : > { %v2584_v47 = vpop.permute.xlu1 %2583  ;;  %2689 = vmatprep.subr.bf16.mxu1 %v2650_v16  ;;  %v2589_v42 = vmul.f32 %v2585_v10, %v3390_v50  ;;  %v2590_v58 = vmul.f32 %v2587_v0, %v3393_v51 }
 0xd55   : > { %v2586_v52 = vsel %vm907_vm4, %v4693_v8, %v2584_v47  ;;  %v2588_v5 = vsel %vm907_vm4, %v2584_v47, %v4693_v8 }
 0xd56   : > { %v2591_v62 = vmul.f32 %v2586_v52, %v3390_v50  ;;  %v2592_v2 = vmul.f32 %v2588_v5, %v3393_v51  ;;  %v2598_v56 = vpop.permute.xlu0 %2597  ;;  %v3112_v5 = vld [vmem:[%s5078_s22] ss:$8 sps:$4 sm:$0xff]  }
 0xd57   : > { %v2601_v20 = vsel %vm924_vm5, %v4695_v55, %v2598_v56  ;;  %v2603_v26 = vsel %vm924_vm5, %v2598_v56, %v4695_v55  ;;  %2690 = vmatpush1.bf16.msra.mxu1 %v2649_v41 }
 0xd58   : > { %v2651_v16 = vpack.c.bf16 %v2591_v62, %v2589_v42  ;;  %v2600_v8 = vpop.permute.xlu1 %2599  ;;  %v2652_v13 = vpack.c.bf16 %v2592_v2, %v2590_v58  ;;  %v2605_v46 = vmul.f32 %v2601_v20, %v3406_v57  ;;  %v2606_v15 = vmul.f32 %v2603_v26, %v3420_v6 }
 0xd59   : > { %v2602_v25 = vsel %vm924_vm5, %v4697_v45, %v2600_v8  ;;  %v2604_v39 = vsel %vm924_vm5, %v2600_v8, %v4697_v45 }
 0xd5a   : > { %v2607_v55 = vmul.f32 %v2602_v25, %v3406_v57  ;;  %v2608_v11 = vmul.f32 %v2604_v39, %v3420_v6  ;;  %v2614_v18 = vpop.permute.xlu0 %2613  ;;  %2691 = vmatprep.subr.bf16.mxu1 %v2652_v13 }
 0xd5b   : > { %v2617_v41 = vsel %vm941_vm7, %v4699_v37, %v2614_v18  ;;  %v2619_v44 = vsel %vm941_vm7, %v2614_v18, %v4699_v37  ;;  %2692 = vmatpush1.bf16.msra.mxu1 %v2651_v16 }
 0xd5c   : > { %v2653_v45 = vpack.c.bf16 %v2607_v55, %v2605_v46  ;;  %v2616_v17 = vpop.permute.xlu1 %2615  ;;  %v2654_v19 = vpack.c.bf16 %v2608_v11, %v2606_v15  ;;  %v2621_v61 = vmul.f32 %v2617_v41, %v3434_v22  ;;  %v2622_v38 = vmul.f32 %v2619_v44, %v3437_v23 }
 0xd5d   : > { %v2618_v12 = vsel %vm941_vm7, %v4701_v4, %v2616_v17  ;;  %v2620_v9 = vsel %vm941_vm7, %v2616_v17, %v4701_v4 }
 0xd5e   : > { %v2623_v63 = vmul.f32 %v2618_v12, %v3434_v22  ;;  %v2624_v37 = vmul.f32 %v2620_v9, %v3437_v23  ;;  %v2630_v59 = vpop.permute.xlu0 %2629  ;;  %2693 = vmatprep.subr.bf16.mxu1 %v2654_v19 }
 0xd5f   : > { %v2633_v34 = vsel %vm958_vm12, %v2626_v43, %v2630_v59  ;;  %v2635_v7 = vsel %vm958_vm12, %v2630_v59, %v2626_v43  ;;  %2694 = vmatpush1.bf16.msra.mxu1 %v2653_v45  ;;  %v4822_v43 = vld [vmem:[%s5135_s0 + $0x18] ss:$0 sm:$0xff] }
 0xd60   : > { %v2655_v27 = vpack.c.bf16 %v2623_v63, %v2621_v61  ;;  %v2632_v14 = vpop.permute.xlu1 %2631  ;;  %v2656_v4 = vpack.c.bf16 %v2624_v37, %v2622_v38  ;;  %v2637_v3 = vmul.f32 %v4816_v30, %v2633_v34  ;;  %v2638_v10 = vmul.f32 %v4822_v43, %v2635_v7 }
 0xd61   : > { %v2634_v1 = vsel %vm958_vm12, %v2628_v40, %v2632_v14  ;;  %v2636_v60 = vsel %vm958_vm12, %v2632_v14, %v2628_v40 }
 0xd62   : > { %v2639_v0 = vmul.f32 %v4816_v30, %v2634_v1  ;;  %v2640_v47 = vmul.f32 %v4822_v43, %v2636_v60  ;;  %2695 = vmatprep.subr.bf16.mxu1 %v2656_v4 }
 0xd63   : > { %2696 = vmatpush1.bf16.msra.mxu1 %v2655_v27 }
 0xd64   : > { %v2657_v40 = vpack.c.bf16 %v2639_v0, %v2637_v3  ;;  %v2658_v52 = vpack.c.bf16 %v2640_v47, %v2638_v10 }
 0xd66   : > { %2697 = vmatprep.subr.bf16.mxu1 %v2658_v52 }
 0xd67   : > { %2698 = vmatpush1.bf16.msra.mxu1 %v2657_v40 }
 0xd6a   : > { %2714 = vmatmul.mubr.bf16.vlgmr.msra.gmra.mrb[24].mxu1 %v3112_v5 }
 0xd6f   : > { %v2662_v42 = vpop.permute.xlu0 %2661 }
 0xd71   : > { %v2667_v56 = vpop.permute.xlu1 %2666 }
 0xe3d   : > { %v2715_v58 = vpop.f32.mrb[24].mxu1 }
 0xe3e   : > { %v2716_v62 = vadd.f32 %v2715_v58, %v2662_v42  ;;  %v2717_v2 = vpop.f32.mrb[25].mxu1 }
 0xe3f   : > { %v2718_v20 = vadd.f32 %v2717_v2, %v2662_v42  ;;  %v2719_v26 = vpop.f32.mrb[26].mxu1 }
 0xe40   : > { %v4831_v16 = vadd.f32 %v2716_v62, %v3479_v24  ;;  %v2720_v8 = vadd.f32 %v2719_v26, %v2667_v56  ;;  %v2721_v13 = vpop.f32.mrb[27].mxu1 }
 0xe41   : > { %v2722_v25 = vadd.f32 %v2721_v13, %v2667_v56  ;;  %v4839_v46 = vadd.f32 %v2718_v20, %v3509_v35  ;;  %v2730_v35 = vld [vmem:[%s5081_s25] sm:$0xff] }
 0xe42   : > { %v4834_v39 = vadd.f32 %v2720_v8, %v3481_v31  ;;  %2732 = vrot.lane.b32.xlu0 %v4831_v16, %s5145_s7  ;;  %v3113_v31 = vld [vmem:[%s5080_s24 + $0x4] ss:$8 sps:$4 sm:$0xff]  }
 0xe43   : > { %v4842_v15 = vadd.f32 %v2722_v25, %v3513_v36  ;;  %3047 = vmatprep.mubr.msk.bf16.mxu0 %vm1273_vm6, %v3113_v31  ;;  %v2731_v36 = vld [vmem:[%s5081_s25 + $0x8] sm:$0xff] }
 0xe44   : > { %2734 = vrot.lane.b32.xlu1 %v4834_v39, %s5145_s7  ;;  %v2868_v24 = vpack.c.bf16 %v4834_v39, %v4831_v16 }
 0xe45   : > { %v2869_v55 = vpack.c.bf16 %v4842_v15, %v4839_v46 }
 0xe46   : > { %2748 = vrot.lane.b32.xlu0 %v4831_v16, %s5146_s28 }
 0xe48   : > { %2750 = vrot.lane.b32.xlu1 %v4834_v39, %s5146_s28 }
 0xe4a   : > { %2764 = vrot.lane.b32.xlu0 %v4831_v16, %s5140_s9 }
 0xe4c   : > { %2766 = vrot.lane.b32.xlu1 %v4834_v39, %s5140_s9 }
 0xe4e   : > { %2780 = vrot.lane.b32.xlu0 %v4831_v16, %s5141_s30 }
 0xe50   : > { %2782 = vrot.lane.b32.xlu1 %v4834_v39, %s5141_s30 }
 0xe52   : > { %2796 = vrot.lane.b32.xlu0 %v4831_v16, %s5142_s6 }
 0xe54   : > { %2798 = vrot.lane.b32.xlu1 %v4834_v39, %s5142_s6 }
 0xe56   : > { %2812 = vrot.lane.b32.xlu0 %v4831_v16, %s5151_s3 }
 0xe58   : > { %2814 = vrot.lane.b32.xlu1 %v4834_v39, %s5151_s3 }
 0xe5a   : > { %2828 = vrot.lane.b32.xlu0 %v4831_v16, %s5152_s8 }
 0xe5c   : > { %2830 = vrot.lane.b32.xlu1 %v4834_v39, %s5152_s8 }
 0xe5e   : > { %2736 = vrot.lane.b32.xlu0 %v4839_v46, %s5145_s7 }
 0xe60   : > { %2738 = vrot.lane.b32.xlu1 %v4842_v15, %s5145_s7 }
 0xe62   : > { %2752 = vrot.lane.b32.xlu0 %v4839_v46, %s5146_s28 }
 0xe64   : > { %2754 = vrot.lane.b32.xlu1 %v4842_v15, %s5146_s28 }
 0xe66   : > { %2768 = vrot.lane.b32.xlu0 %v4839_v46, %s5140_s9 }
 0xe68   : > { %2770 = vrot.lane.b32.xlu1 %v4842_v15, %s5140_s9 }
 0xe6a   : > { %2784 = vrot.lane.b32.xlu0 %v4839_v46, %s5141_s30 }
 0xe6c   : > { %2786 = vrot.lane.b32.xlu1 %v4842_v15, %s5141_s30 }
 0xe6e   : > { %2844 = vrot.lane.b32.xlu0 %v4831_v16, %s5137_s10 }
 0xe70   : > { %2846 = vrot.lane.b32.xlu1 %v4834_v39, %s5137_s10 }
 0xe72   : > { %2800 = vrot.lane.b32.xlu0 %v4839_v46, %s5142_s6 }
 0xe74   : > { %2802 = vrot.lane.b32.xlu1 %v4842_v15, %s5142_s6 }
 0xe76   : > { %2816 = vrot.lane.b32.xlu0 %v4839_v46, %s5151_s3 }
 0xe78   : > { %2818 = vrot.lane.b32.xlu1 %v4842_v15, %s5151_s3 }
 0xe7a   : > { %2832 = vrot.lane.b32.xlu0 %v4839_v46, %s5152_s8 }
 0xe7c   : > { %2834 = vrot.lane.b32.xlu1 %v4842_v15, %s5152_s8 }
 0xe7e   : > { %2848 = vrot.lane.b32.xlu0 %v4839_v46, %s5137_s10 }
 0xe80   : > { %2850 = vrot.lane.b32.xlu1 %v4842_v15, %s5137_s10  ;;  %s5153_s10 = sld [smem:[#allocation3_spill]] }
 0xe82   : > { %2880 = vperm.xlu0 %3087, %v2730_v35  }
 0xe84   : > { %2885 = vperm.xlu1 %3088, %v2731_v36  }
 0xe86   : > { %s3051_s12 = sshll.u32 %s5153_s10, 4 }
 0xe87   : > { %s791_s29 = scalar_lea.vmem %s5154_s4, %s3051_s12 }
 0xeb4   : > { %v2733_v11 = vpop.permute.xlu0 %2732 }
 0xeb6   : > { %v2735_v18 = vpop.permute.xlu1 %2734 }
 0xeb8   : > { %v2749_v41 = vpop.permute.xlu0 %2748 }
 0xeba   : > { %v2751_v44 = vpop.permute.xlu1 %2750 }
 0xebc   : > { %v2765_v45 = vpop.permute.xlu0 %2764 }
 0xebe   : > { %v2767_v17 = vpop.permute.xlu1 %2766 }
 0xec0   : > { %v2781_v19 = vpop.permute.xlu0 %2780 }
 0xec2   : > { %v2783_v12 = vpop.permute.xlu1 %2782 }
 0xec4   : > { %v4920_v9 = vpop.permute.xlu0 %2796 }
 0xec6   : > { %v4922_v61 = vpop.permute.xlu1 %2798 }
 0xec8   : > { %v4924_v38 = vpop.permute.xlu0 %2812 }
 0xeca   : > { %v4926_v63 = vpop.permute.xlu1 %2814 }
 0xecc   : > { %v4928_v37 = vpop.permute.xlu0 %2828 }
 0xece   : > { %v4930_v59 = vpop.permute.xlu1 %2830 }
 0xed0   : > { %v2737_v34 = vpop.permute.xlu0 %2736 }
 0xed1   : > { %v2740_v7 = vsel %vm839_vm2, %v2733_v11, %v2737_v34  ;;  %v2742_v27 = vsel %vm839_vm2, %v2737_v34, %v2733_v11 }
 0xed2   : > { %v2739_v14 = vpop.permute.xlu1 %2738  ;;  %v2744_v60 = vmul.f32 %v2742_v27, %v3396_v53  ;;  %v2745_v3 = vmul.f32 %v2740_v7, %v3399_v54 }
 0xed3   : > { %v2741_v4 = vsel %vm839_vm2, %v2735_v18, %v2739_v14  ;;  %v2743_v1 = vsel %vm839_vm2, %v2739_v14, %v2735_v18 }
 0xed4   : > { %v2746_v10 = vmul.f32 %v2743_v1, %v3396_v53  ;;  %v2747_v0 = vmul.f32 %v2741_v4, %v3399_v54  ;;  %v2753_v47 = vpop.permute.xlu0 %2752 }
 0xed5   : > { %v2756_v40 = vsel %vm856_vm3, %v2749_v41, %v2753_v47  ;;  %v2758_v52 = vsel %vm856_vm3, %v2753_v47, %v2749_v41 }
 0xed6   : > { %v2860_v5 = vpack.c.bf16 %v2746_v10, %v2744_v60  ;;  %v2755_v42 = vpop.permute.xlu1 %2754  ;;  %v2861_v58 = vpack.c.bf16 %v2747_v0, %v2745_v3  ;;  %v2760_v53 = vmul.f32 %v2758_v52, %v3384_v48  ;;  %v2761_v54 = vmul.f32 %v2756_v40, %v3387_v49 }
 0xed7   : > { %v2757_v62 = vsel %vm856_vm3, %v2751_v44, %v2755_v42  ;;  %v2759_v2 = vsel %vm856_vm3, %v2755_v42, %v2751_v44 }
 0xed8   : > { %v2762_v56 = vmul.f32 %v2759_v2, %v3384_v48  ;;  %v2763_v20 = vmul.f32 %v2757_v62, %v3387_v49  ;;  %2900 = vmatprep.subr.bf16.mxu0 %v2861_v58  ;;  %v2769_v26 = vpop.permute.xlu0 %2768 }
 0xed9   : > { %v2772_v8 = vsel %vm873_vm1, %v2765_v45, %v2769_v26  ;;  %v2774_v13 = vsel %vm873_vm1, %v2769_v26, %v2765_v45  ;;  %2901 = vmatpush1.bf16.msra.mxu0 %v2860_v5 }
 0xeda   : > { %v2862_v25 = vpack.c.bf16 %v2762_v56, %v2760_v53  ;;  %v2771_v31 = vpop.permute.xlu1 %2770  ;;  %v2863_v35 = vpack.c.bf16 %v2763_v20, %v2761_v54  ;;  %v2776_v49 = vmul.f32 %v2774_v13, %v3357_v32  ;;  %v2777_v11 = vmul.f32 %v2772_v8, %v3360_v33 }
 0xedb   : > { %v2773_v36 = vsel %vm873_vm1, %v2767_v17, %v2771_v31  ;;  %v2775_v48 = vsel %vm873_vm1, %v2771_v31, %v2767_v17 }
 0xedc   : > { %v2778_v18 = vmul.f32 %v2775_v48, %v3357_v32  ;;  %v2779_v41 = vmul.f32 %v2773_v36, %v3360_v33  ;;  %2902 = vmatprep.subr.bf16.mxu0 %v2863_v35  ;;  %v2785_v44 = vpop.permute.xlu0 %2784 }
 0xedd   : > { %v2788_v45 = vsel %vm890_vm0, %v2781_v19, %v2785_v44  ;;  %v2790_v34 = vsel %vm890_vm0, %v2785_v44, %v2781_v19  ;;  %2903 = vmatpush1.bf16.msra.mxu0 %v2862_v25 }
 0xede   : > { %v2864_v7 = vpack.c.bf16 %v2778_v18, %v2776_v49  ;;  %v2787_v27 = vpop.permute.xlu1 %2786  ;;  %v2865_v17 = vpack.c.bf16 %v2779_v41, %v2777_v11  ;;  %v2792_v33 = vmul.f32 %v2790_v34, %v3351_v28  ;;  %v2793_v4 = vmul.f32 %v2788_v45, %v3354_v29 }
 0xedf   : > { %v2789_v14 = vsel %vm890_vm0, %v2783_v12, %v2787_v27  ;;  %v2791_v32 = vsel %vm890_vm0, %v2787_v27, %v2783_v12 }
 0xee0   : > { %v2794_v1 = vmul.f32 %v2791_v32, %v3351_v28  ;;  %v2795_v60 = vmul.f32 %v2789_v14, %v3354_v29  ;;  %2904 = vmatprep.subr.bf16.mxu0 %v2865_v17  ;;  %v2845_v19 = vpop.permute.xlu0 %2844 }
 0xee1   : > { %2905 = vmatpush1.bf16.msra.mxu0 %v2864_v7  ;;  %v3115_v7 = vld [vmem:[%s5080_s24] ss:$8 sps:$4 sm:$0xff]  }
 0xee2   : > { %v2866_v3 = vpack.c.bf16 %v2794_v1, %v2792_v33  ;;  %v2847_v10 = vpop.permute.xlu1 %2846  ;;  %v2867_v0 = vpack.c.bf16 %v2795_v60, %v2793_v4 }
 0xee4   : > { %2906 = vmatprep.subr.bf16.mxu0 %v2867_v0  ;;  %v2801_v47 = vpop.permute.xlu0 %2800 }
 0xee5   : > { %v2804_v12 = vsel %vm907_vm4, %v4920_v9, %v2801_v47  ;;  %v2806_v40 = vsel %vm907_vm4, %v2801_v47, %v4920_v9  ;;  %2907 = vmatpush1.bf16.msra.mxu0 %v2866_v3 }
 0xee6   : > { %v2803_v28 = vpop.permute.xlu1 %2802  ;;  %2908 = vmatprep.subr.bf16.mxu0 %v2869_v55  ;;  %v2808_v5 = vmul.f32 %v2804_v12, %v3390_v50  ;;  %v2809_v42 = vmul.f32 %v2806_v40, %v3393_v51 }
 0xee7   : > { %v2805_v29 = vsel %vm907_vm4, %v4922_v61, %v2803_v28  ;;  %v2807_v52 = vsel %vm907_vm4, %v2803_v28, %v4922_v61 }
 0xee8   : > { %v2810_v9 = vmul.f32 %v2805_v29, %v3390_v50  ;;  %v2811_v58 = vmul.f32 %v2807_v52, %v3393_v51  ;;  %v2817_v62 = vpop.permute.xlu0 %2816 }
 0xee9   : > { %v2820_v46 = vsel %vm924_vm5, %v4924_v38, %v2817_v62  ;;  %v2822_v15 = vsel %vm924_vm5, %v2817_v62, %v4924_v38  ;;  %2909 = vmatpush1.bf16.msra.mxu0 %v2868_v24 }
 0xeea   : > { %v2870_v55 = vpack.c.bf16 %v2810_v9, %v2808_v5  ;;  %v2819_v61 = vpop.permute.xlu1 %2818  ;;  %v2871_v2 = vpack.c.bf16 %v2811_v58, %v2809_v42  ;;  %v2824_v53 = vmul.f32 %v2820_v46, %v3406_v57  ;;  %v2825_v54 = vmul.f32 %v2822_v15, %v3420_v6 }
 0xeeb   : > { %v2821_v50 = vsel %vm924_vm5, %v4926_v63, %v2819_v61  ;;  %v2823_v51 = vsel %vm924_vm5, %v2819_v61, %v4926_v63 }
 0xeec   : > { %v2826_v38 = vmul.f32 %v2821_v50, %v3406_v57  ;;  %v2827_v16 = vmul.f32 %v2823_v51, %v3420_v6  ;;  %v2833_v39 = vpop.permute.xlu0 %2832  ;;  %2910 = vmatprep.subr.bf16.mxu0 %v2871_v2 }
 0xeed   : > { %v2836_v24 = vsel %vm941_vm7, %v4928_v37, %v2833_v39  ;;  %v2838_v56 = vsel %vm941_vm7, %v2833_v39, %v4928_v37  ;;  %2911 = vmatpush1.bf16.msra.mxu0 %v2870_v55 }
 0xeee   : > { %v2872_v63 = vpack.c.bf16 %v2826_v38, %v2824_v53  ;;  %v2835_v20 = vpop.permute.xlu1 %2834  ;;  %v2873_v26 = vpack.c.bf16 %v2827_v16, %v2825_v54  ;;  %v2840_v8 = vmul.f32 %v2836_v24, %v3434_v22  ;;  %v2841_v13 = vmul.f32 %v2838_v56, %v3437_v23 }
 0xeef   : > { %v2837_v57 = vsel %vm941_vm7, %v4930_v59, %v2835_v20  ;;  %v2839_v6 = vsel %vm941_vm7, %v2835_v20, %v4930_v59 }
 0xef0   : > { %v2842_v25 = vmul.f32 %v2837_v57, %v3434_v22  ;;  %v2843_v37 = vmul.f32 %v2839_v6, %v3437_v23  ;;  %v2849_v31 = vpop.permute.xlu0 %2848  ;;  %2912 = vmatprep.subr.bf16.mxu0 %v2873_v26 }
 0xef1   : > { %v2852_v35 = vsel %vm958_vm12, %v2845_v19, %v2849_v31  ;;  %v2854_v36 = vsel %vm958_vm12, %v2849_v31, %v2845_v19  ;;  %2913 = vmatpush1.bf16.msra.mxu0 %v2872_v63 }
 0xef2   : > { %v2874_v48 = vpack.c.bf16 %v2842_v25, %v2840_v8  ;;  %v2851_v49 = vpop.permute.xlu1 %2850  ;;  %v2875_v59 = vpack.c.bf16 %v2843_v37, %v2841_v13  ;;  %v2856_v23 = vmul.f32 %v4816_v30, %v2852_v35  ;;  %v2857_v18 = vmul.f32 %v4822_v43, %v2854_v36 }
 0xef3   : > { %v2853_v11 = vsel %vm958_vm12, %v2847_v10, %v2851_v49  ;;  %v2855_v22 = vsel %vm958_vm12, %v2851_v49, %v2847_v10 }
 0xef4   : > { %v2858_v41 = vmul.f32 %v4816_v30, %v2853_v11  ;;  %v2859_v44 = vmul.f32 %v4822_v43, %v2855_v22  ;;  %2914 = vmatprep.subr.bf16.mxu0 %v2875_v59 }
 0xef5   : > { %2915 = vmatpush1.bf16.msra.mxu0 %v2874_v48 }
 0xef6   : > { %v2876_v45 = vpack.c.bf16 %v2858_v41, %v2856_v23  ;;  %v2877_v34 = vpack.c.bf16 %v2859_v44, %v2857_v18 }
 0xef8   : > { %2916 = vmatprep.subr.bf16.mxu0 %v2877_v34 }
 0xef9   : > { %2917 = vmatpush1.bf16.msra.mxu0 %v2876_v45 }
 0xefc   : > { %2933 = vmatmul.mubr.bf16.vlgmr.msra.gmra.mrb[12].mxu0 %v3115_v7 }
 0xf01   : > { %v2881_v21 = vpop.permute.xlu0 %2880 }
 0xf03   : > { %v2886_v32 = vpop.permute.xlu1 %2885 }
 0xfcf   : > { %v2934_v27 = vpop.f32.mrb[12].mxu0 }
 0xfd0   : > { %v2935_v17 = vadd.f32 %v2934_v27, %v2881_v21  ;;  %v2936_v14 = vpop.f32.mrb[13].mxu0 }
 0xfd1   : > { %v2937_v30 = vadd.f32 %v2936_v14, %v2881_v21  ;;  %v2938_v33 = vpop.f32.mrb[14].mxu0 }
 0xfd2   : > { %v2939_v43 = vadd.f32 %v2938_v33, %v2886_v32  ;;  %v2940_v4 = vpop.f32.mrb[15].mxu0  ;;  %v2943_v60 = vmax.f32 %v2935_v17, 0.0 }
 0xfd3   : > { %v2941_v1 = vadd.f32 %v2940_v4, %v2886_v32  ;;  %v2944_v3 = vmax.f32 %v2937_v30, 0.0 }
 0xfd4   : > { %v2945_v19 = vmax.f32 %v2939_v43, 0.0 }
 0xfd5   : > { %v2946_v10 = vmax.f32 %v2941_v1, 0.0 }
 0xfd6   : > { %v2947_v0 = vpack.c.bf16 %v2945_v19, %v2943_v60 }
 0xfd7   : > { %v2948_v47 = vpack.c.bf16 %v2946_v10, %v2944_v3 }
 0xfd8   : > { %2949 = vst [vmem:[%s791_s29] sm:$0xff] %v2947_v0 }
 0xfd9   : > { %2950 = vst [vmem:[%s791_s29 + $0x8] sm:$0xff] %v2948_v47 }
 0xfda PF: > { %s5155_s1 = sld [smem:[#allocation2_spill]] }
 0xfe0   : > { %s36_s27 = sadd.s32 1, %s5155_s1  }
 0xfe1   : > { %p33_p4 = scmp.ge.s32.totalorder %s36_s27, 4  }
 0xfe3   :  { %35 = sbr.rel (!%p33_p4) target bundleno = 16 (0x10), region = 154 }

</bundles_post_ra>
